<compile_context>
chip_gen: v7x
topology: tpu7x:2x2x1
jax: 0.10.0
libtpu: 0.0.40
codegen_flags: <defaults>
</compile_context>

<pallas_src>
import functools

import jax
import jax.numpy as jnp
from jax import lax
from jax.experimental import pallas as pl
from jax.experimental.pallas import tpu as pltpu

LN_EPS = 1e-5
SCAN_UNROLL = 4


def _sigmoid(x):
    # tanh-based logistic: stable for all x, runs on the EUP (no VPU divide).
    return 0.5 * (jnp.tanh(0.5 * x) + 1.0)


def _softplus(x):
    # numerically stable softplus (no exp overflow)
    return jnp.maximum(x, 0.0) + jnp.log(1.0 + jnp.exp(-jnp.abs(x)))


def _layernorm(x, w, b):
    mu = jnp.mean(x, axis=-1, keepdims=True)
    var = jnp.mean((x - mu) ** 2, axis=-1, keepdims=True)
    return (x - mu) * lax.rsqrt(var + LN_EPS) * w + b


# --------------------------- fused whole-model kernel ---------------------------


def fused_mamba_kernel(hid_ref,
                       ln_w_ref, ln_b_ref, in_w_ref, in_b_ref,
                       conv_w_ref, conv_b_ref, xdbc_w_ref,
                       dt_b_ref, a_neg_ref, d_ref,
                       out_w_ref, out_b_ref,
                       fln_w_ref, fln_b_ref, cls_w_ref, cls_b_ref,
                       hid_out_ref, logits_ref,
                       hid_s, da_s, dbx_s, hs_s, y_s,
                       *, batch, chunk, seq_real):
    li = pl.program_id(0)
    n_layers = pl.num_programs(0)

    SBp, H = hid_s.shape
    E = d_ref.shape[2]
    N = a_neg_ref.shape[1]
    K = conv_w_ref.shape[1]
    B = batch
    TC = chunk
    CB = TC * B
    n_chunks = SBp // CB

    # first grid step: load the embedded inputs into the persistent hidden scratch
    @pl.when(li == 0)
    def _():
        hid_s[...] = hid_ref[...]

    hid = hid_s[...]                                           # [SBp, H]

    ln = _layernorm(hid, ln_w_ref[0], ln_b_ref[0])             # [SBp, H]

    # in_proj (weight pre-transposed [H, 2E], bf16 operands, f32 accumulate)
    proj = jnp.dot(ln.astype(jnp.bfloat16), in_w_ref[0],
                   preferred_element_type=jnp.float32) + in_b_ref[0]
    x = proj[:, :E]                                            # [SBp, E]
    gate = proj[:, E:]                                         # [SBp, E]

    # causal depthwise conv1d over seq: shift of j timesteps == j*B flat rows
    conv_w = conv_w_ref[0]                                     # [K, E] (taps, channels)
    row = lax.broadcasted_iota(jnp.int32, (SBp, E), 0)
    acc = conv_b_ref[0] + x * conv_w[K - 1:K, :]
    for j in range(1, K):
        shifted = pltpu.roll(x, shift=j * B, axis=0)
        shifted = jnp.where(row >= j * B, shifted, 0.0)        # zero wrapped rows
        acc = acc + shifted * conv_w[K - 1 - j:K - j, :]
    x = acc
    x = x * _sigmoid(x)                                        # SiLU / swish

    # fused x_proj (+ folded dt_proj): one matmul -> [dt_raw | B | C]
    xdbc = jnp.dot(x.astype(jnp.bfloat16), xdbc_w_ref[0],
                   preferred_element_type=jnp.float32)         # [SBp, E+2N]
    dt = _softplus(xdbc[:, :E] + dt_b_ref[0])                  # [SBp, E]
    b_mat = xdbc[:, E:E + N]                                   # [SBp, N]
    c_mat = xdbc[:, E + N:E + 2 * N]                           # [SBp, N]
    a_neg = a_neg_ref[0]                                       # [N, E] (= -exp(A_log).T)
    dtx = dt * x                                               # [SBp, E]

    # ---------------- chunked selective scan ----------------
    # TODO(synk): lane-dense [TC, N, B*E] state packing skipped (see header comment).
    h = jnp.zeros((B, N, E), jnp.float32)                      # state, E on lanes
    for ci in range(n_chunks):
        lo = ci * CB
        # per-chunk decay / input terms (vectorized broadcasts, off the serial path)
        da_s[...] = jnp.exp(dt[lo:lo + CB][:, None, :] * a_neg[None, :, :])
        dbx_s[...] = dtx[lo:lo + CB][:, None, :] * b_mat[lo:lo + CB][:, :, None]

        def scan_body(tu, hc):
            # manual 4x unroll of the serial recurrence
            for u in range(SCAN_UNROLL):
                start = pl.multiple_of(tu * (SCAN_UNROLL * B) + u * B, B)
                sl = pl.ds(start, B)
                hc = da_s[sl] * hc + dbx_s[sl]                 # [B, N, E]
                hs_s[sl] = hc
            return hc

        h = lax.fori_loop(0, TC // SCAN_UNROLL, scan_body, h)

        # vectorized C-weighted reduction over the chunk's state history
        y_s[lo:lo + CB, :] = jnp.sum(
            hs_s[...] * c_mat[lo:lo + CB][:, :, None], axis=1)

    y = y_s[...] + d_ref[0] * x                                # D * x skip connection
    y = _sigmoid(gate) * y
    out = jnp.dot(y.astype(jnp.bfloat16), out_w_ref[0],
                  preferred_element_type=jnp.float32) + out_b_ref[0]
    new_hid = out + hid                                        # residual add
    hid_s[...] = new_hid
    # TODO(synk): FractalLayer / SSMLinearKernel sources are not in the reference module;
    # fractal_layer is treated as identity and the unused ssm_kernel omitted.

    # last grid step: final layernorm, mean pool over real seq rows, classifier
    @pl.when(li == n_layers - 1)
    def _():
        ln_f = _layernorm(new_hid, fln_w_ref[...], fln_b_ref[...])    # [SBp, H]
        hid_out_ref[...] = ln_f
        # mean-pool matrix built in-kernel from iota (padded rows excluded)
        col = lax.broadcasted_iota(jnp.int32, (B, SBp), 1)
        brow = lax.broadcasted_iota(jnp.int32, (B, SBp), 0)
        sel = jnp.logical_and(col % B == brow, col < seq_real * B)
        pool = jnp.where(sel, 1.0 / float(seq_real), 0.0)
        pooled = jnp.dot(pool, ln_f, preferred_element_type=jnp.float32)   # [B, H]
        logits_ref[...] = jnp.dot(pooled, cls_w_ref[...],
                                  preferred_element_type=jnp.float32) + cls_b_ref[...]


# ------------------------------ wrapper plumbing -------------------------------


def _prepare_operands(params):
    """Stack per-layer params, pre-transpose Linear/conv weights, fold dt_proj into
    x_proj, and pre-cast matmul weights to bf16 (f32 accumulation in-kernel)."""
    ls = params['layers']
    R = ls[0]['dt_w'].shape[1]
    N = (ls[0]['xproj_w'].shape[0] - R) // 2

    stack_vec = lambda k: jnp.stack([lp[k].reshape(1, -1) for lp in ls], 0)  # [L,1,X]

    def fused_xproj(lp):
        w_dt = lp['xproj_w'][:R].T @ lp['dt_w'].T              # [E, E]
        w_b = lp['xproj_w'][R:R + N].T                         # [E, N]
        w_c = lp['xproj_w'][R + N:].T                          # [E, N]
        return jnp.concatenate([w_dt, w_b, w_c], axis=1)       # [E, E+2N]

    return dict(
        ln_w=stack_vec('ln_w'), ln_b=stack_vec('ln_b'),
        in_w=jnp.stack([lp['in_w'].T for lp in ls], 0).astype(jnp.bfloat16),   # [L,H,2E]
        in_b=stack_vec('in_b'),
        conv_w=jnp.stack([lp['conv_w'].T for lp in ls], 0),                    # [L,K,E]
        conv_b=stack_vec('conv_b'),
        xdbc_w=jnp.stack([fused_xproj(lp) for lp in ls], 0).astype(jnp.bfloat16),
        dt_b=stack_vec('dt_b'),
        a_neg=jnp.stack([-jnp.exp(lp['A_log']).T for lp in ls], 0),            # [L,N,E]
        d=stack_vec('D'),
        out_w=jnp.stack([lp['out_w'].T for lp in ls], 0).astype(jnp.bfloat16), # [L,E,H]
        out_b=stack_vec('out_b'),
        fln_w=params['final_ln_w'].reshape(1, -1),
        fln_b=params['final_ln_b'].reshape(1, -1),
        cls_w=params['cls_w'].T,                                               # [H, NL]
        cls_b=params['cls_b'].reshape(1, -1),
    )


def _run_fused(hid_sm, ops, *, B, S):
    H = hid_sm.shape[1]
    L = ops['ln_w'].shape[0]
    E = ops['d'].shape[2]
    N = ops['a_neg'].shape[1]
    NL = ops['cls_w'].shape[1]

    # scan chunk length: multiple of the unroll factor; pad S so chunks divide evenly
    TC = min(64, S)
    TC = ((TC + SCAN_UNROLL - 1) // SCAN_UNROLL) * SCAN_UNROLL
    S_pad = ((S + TC - 1) // TC) * TC
    SBp = S_pad * B
    if S_pad != S:
        hid_sm = jnp.concatenate(
            [hid_sm, jnp.zeros(((S_pad - S) * B, H), hid_sm.dtype)], axis=0)
    CB = TC * B

    operands = [hid_sm,
                ops['ln_w'], ops['ln_b'], ops['in_w'], ops['in_b'],
                ops['conv_w'], ops['conv_b'], ops['xdbc_w'],
                ops['dt_b'], ops['a_neg'], ops['d'],
                ops['out_w'], ops['out_b'],
                ops['fln_w'], ops['fln_b'], ops['cls_w'], ops['cls_b']]

    def layer_spec(a):   # per-layer weights: streamed over the layer grid axis
        return pl.BlockSpec((1,) + a.shape[1:], lambda li: (li, 0, 0))

    def full2d_spec(a):  # resident across all layers
        return pl.BlockSpec(a.shape, lambda li: (0, 0))

    in_specs = ([full2d_spec(hid_sm)]
                + [layer_spec(a) for a in operands[1:13]]
                + [full2d_spec(a) for a in operands[13:]])

    kernel = functools.partial(fused_mamba_kernel, batch=B, chunk=TC, seq_real=S)
    hid_out, logits = pl.pallas_call(
        kernel,
        out_shape=(jax.ShapeDtypeStruct((SBp, H), jnp.float32),
                   jax.ShapeDtypeStruct((B, NL), jnp.float32)),
        grid=(L,),
        in_specs=in_specs,
        out_specs=(pl.BlockSpec((SBp, H), lambda li: (0, 0)),
                   pl.BlockSpec((B, NL), lambda li: (0, 0))),
        scratch_shapes=[pltpu.VMEM((SBp, H), jnp.float32),     # persistent hidden state
                        pltpu.VMEM((CB, N, E), jnp.float32),   # exp(dt*A) chunk
                        pltpu.VMEM((CB, N, E), jnp.float32),   # dt*B*x chunk
                        pltpu.VMEM((CB, N, E), jnp.float32),   # state history chunk
                        pltpu.VMEM((SBp, E), jnp.float32)],    # scan output y
        compiler_params=pltpu.CompilerParams(
            dimension_semantics=("arbitrary",),
            vmem_limit_bytes=64 * 1024 * 1024),
    )(*operands)
    return hid_out[:S * B], logits


# --------------------------- parameters & forward -----------------------------


def init_params(key, H=32, E=64, N=8, R=4, K=4, n_layers=2,
                vocab=64, max_pos=64, num_labels=2):
    keys = jax.random.split(key, 8 + n_layers)

    def nrm(k, shape, scale):
        return (scale * jax.random.normal(k, shape)).astype(jnp.float32)

    emb = nrm(keys[0], (vocab, H), 0.02)
    emb = emb.at[0].set(0.0)                                   # pad_token_id = 0
    pos_emb = nrm(keys[1], (max_pos, H), 0.02)

    layers = []
    for li in range(n_layers):
        lk = jax.random.split(keys[8 + li], 8)
        layers.append({
            'ln_w': jnp.ones((H,), jnp.float32),
            'ln_b': jnp.zeros((H,), jnp.float32),
            'in_w': nrm(lk[0], (2 * E, H), 1.0 / float(H) ** 0.5),     # [out, in]
            'in_b': jnp.zeros((2 * E,), jnp.float32),
            'conv_w': nrm(lk[1], (E, K), 1.0 / float(K) ** 0.5),       # [chan, tap]
            'conv_b': jnp.zeros((E,), jnp.float32),
            'xproj_w': nrm(lk[2], (R + 2 * N, E), 1.0 / float(E) ** 0.5),
            'dt_w': nrm(lk[3], (E, R), 1.0 / float(R) ** 0.5),
            'dt_b': jnp.full((E,), -2.0, jnp.float32),
            'A_log': jnp.log(jnp.broadcast_to(
                jnp.arange(1, N + 1, dtype=jnp.float32), (E, N))),
            'D': jnp.ones((E,), jnp.float32),
            'out_w': nrm(lk[4], (H, E), 1.0 / float(E) ** 0.5),
            'out_b': jnp.zeros((H,), jnp.float32),
        })

    return {
        'emb': emb,
        'pos_emb': pos_emb,
        'layers': layers,
        'final_ln_w': jnp.ones((H,), jnp.float32),
        'final_ln_b': jnp.zeros((H,), jnp.float32),
        'cls_w': nrm(keys[2], (num_labels, H), 1.0 / float(H) ** 0.5),
        'cls_b': jnp.zeros((num_labels,), jnp.float32),
    }


def fractal_mamba_classify(params, input_ids, position_ids=None):
    """Eval-mode forward of FractalMambaForSequenceClassification (labels=None)."""
    B, S = input_ids.shape
    if position_ids is None:
        position_ids = jnp.broadcast_to(jnp.arange(S, dtype=jnp.int32), (B, S))
    # embeddings + position embeddings (plain-JAX glue: gathers). dropout = identity.
    hidden = params['emb'][input_ids] + params['pos_emb'][position_ids]   # [B, S, H]
    # s-major flatten (row r = s*B + b) so batch folds into the matmul M dimension.
    hid_sm = jnp.transpose(hidden, (1, 0, 2)).reshape(S * B, hidden.shape[-1])
    ops = _prepare_operands(params)
    hid_out_sm, logits = _run_fused(hid_sm, ops, B=B, S=S)
    last_hidden = hid_out_sm.reshape(S, B, -1).transpose(1, 0, 2)         # [B, S, H]
    return {'loss': None, 'logits': logits, 'hidden_states': last_hidden}


if __name__ == "__main__":
    key = jax.random.PRNGKey(0)
    pkey, dkey = jax.random.split(key)

    # small config: hidden=32, expand=2 -> E=64, state=8, dt_rank=4, K=4, 2 layers
    params = init_params(pkey)

    B, S, H = 2, 8, 32
    input_ids = jax.random.randint(dkey, (B, S), 1, 64, dtype=jnp.int32)

    out = fractal_mamba_classify(params, input_ids)
    logits = jax.block_until_ready(out['logits'])
    hidden_states = jax.block_until_ready(out['hidden_states'])

    assert logits.shape == (B, 2)
    assert hidden_states.shape == (B, S, H)
    assert bool(jnp.all(jnp.isfinite(logits)))
    assert bool(jnp.all(jnp.isfinite(hidden_states)))
    print("KERNEL_OK")
</pallas_src>

<mosaic_0001>
module attributes {stable_mosaic.version = 11 : i64} {
  func.func @fused_mamba_kernel(%arg0: i32, %arg1: memref<16x32xf32, #tpu.memory_space<vmem>>, %arg2: memref<1x1x32xf32, #tpu.memory_space<vmem>>, %arg3: memref<1x1x32xf32, #tpu.memory_space<vmem>>, %arg4: memref<1x32x128xbf16, #tpu.memory_space<vmem>>, %arg5: memref<1x1x128xf32, #tpu.memory_space<vmem>>, %arg6: memref<1x4x64xf32, #tpu.memory_space<vmem>>, %arg7: memref<1x1x64xf32, #tpu.memory_space<vmem>>, %arg8: memref<1x64x80xbf16, #tpu.memory_space<vmem>>, %arg9: memref<1x1x64xf32, #tpu.memory_space<vmem>>, %arg10: memref<1x8x64xf32, #tpu.memory_space<vmem>>, %arg11: memref<1x1x64xf32, #tpu.memory_space<vmem>>, %arg12: memref<1x64x32xbf16, #tpu.memory_space<vmem>>, %arg13: memref<1x1x32xf32, #tpu.memory_space<vmem>>, %arg14: memref<1x32xf32, #tpu.memory_space<vmem>>, %arg15: memref<1x32xf32, #tpu.memory_space<vmem>>, %arg16: memref<32x2xf32, #tpu.memory_space<vmem>>, %arg17: memref<1x2xf32, #tpu.memory_space<vmem>>, %arg18: memref<16x32xf32, #tpu.memory_space<vmem>>, %arg19: memref<2x2xf32, #tpu.memory_space<vmem>>, %arg20: memref<16x32xf32, #tpu.memory_space<vmem>>, %arg21: memref<16x8x64xf32, #tpu.memory_space<vmem>>, %arg22: memref<16x8x64xf32, #tpu.memory_space<vmem>>, %arg23: memref<16x8x64xf32, #tpu.memory_space<vmem>>, %arg24: memref<16x64xf32, #tpu.memory_space<vmem>>) attributes {dimension_semantics = [#tpu.dimension_semantics<arbitrary>], iteration_bounds = array<i64: 2>, scalar_prefetch = 0 : i64, scratch_operands = 5 : i64, tpu.core_type = #tpu.core_type<tc>, window_params = [{pipeline_mode = #tpu.pipeline_mode<synchronous>, transform_indices = @transform_0, window_bounds = array<i64: 16, 32>}, {transform_indices = @transform_1, window_bounds = array<i64: 1, 1, 32>}, {transform_indices = @transform_2, window_bounds = array<i64: 1, 1, 32>}, {transform_indices = @transform_3, window_bounds = array<i64: 1, 32, 128>}, {transform_indices = @transform_4, window_bounds = array<i64: 1, 1, 128>}, {transform_indices = @transform_5, window_bounds = array<i64: 1, 4, 64>}, {transform_indices = @transform_6, window_bounds = array<i64: 1, 1, 64>}, {transform_indices = @transform_7, window_bounds = array<i64: 1, 64, 80>}, {transform_indices = @transform_8, window_bounds = array<i64: 1, 1, 64>}, {transform_indices = @transform_9, window_bounds = array<i64: 1, 8, 64>}, {transform_indices = @transform_10, window_bounds = array<i64: 1, 1, 64>}, {transform_indices = @transform_11, window_bounds = array<i64: 1, 64, 32>}, {transform_indices = @transform_12, window_bounds = array<i64: 1, 1, 32>}, {pipeline_mode = #tpu.pipeline_mode<synchronous>, transform_indices = @transform_13, window_bounds = array<i64: 1, 32>}, {pipeline_mode = #tpu.pipeline_mode<synchronous>, transform_indices = @transform_14, window_bounds = array<i64: 1, 32>}, {pipeline_mode = #tpu.pipeline_mode<synchronous>, transform_indices = @transform_15, window_bounds = array<i64: 32, 2>}, {pipeline_mode = #tpu.pipeline_mode<synchronous>, transform_indices = @transform_16, window_bounds = array<i64: 1, 2>}, {pipeline_mode = #tpu.pipeline_mode<synchronous>, transform_indices = @transform_17, window_bounds = array<i64: 16, 32>}, {pipeline_mode = #tpu.pipeline_mode<synchronous>, transform_indices = @transform_18, window_bounds = array<i64: 2, 2>}]} {
    %c0_i32 = arith.constant 0 : i32
    %0 = arith.cmpi eq, %arg0, %c0_i32 : i32
    %1 = arith.extui %0 : i1 to i32
    %c0_i32_0 = arith.constant 0 : i32
    %2 = arith.cmpi ne, %1, %c0_i32_0 : i32
    scf.if %2 {
      %c0_82 = arith.constant 0 : index
      %c0_83 = arith.constant 0 : index
      %158 = vector.load %arg1[%c0_82, %c0_83] : memref<16x32xf32, #tpu.memory_space<vmem>>, vector<16x32xf32>
      %c0_84 = arith.constant 0 : index
      %c0_85 = arith.constant 0 : index
      %159 = vector.load %arg20[%c0_84, %c0_85] : memref<16x32xf32, #tpu.memory_space<vmem>>, vector<16x32xf32>
      tpu.vector_store %arg20[%c0_84, %c0_85], %158 {strides = array<i32>} : memref<16x32xf32, #tpu.memory_space<vmem>>, vector<16x32xf32>,
    } else {
    }
    %c0 = arith.constant 0 : index
    %c0_1 = arith.constant 0 : index
    %3 = vector.load %arg20[%c0, %c0_1] : memref<16x32xf32, #tpu.memory_space<vmem>>, vector<16x32xf32>
    %c0_2 = arith.constant 0 : index
    %c0_3 = arith.constant 0 : index
    %c0_4 = arith.constant 0 : index
    %4 = vector.load %arg2[%c0_2, %c0_3, %c0_4] : memref<1x1x32xf32, #tpu.memory_space<vmem>>, vector<1x1x32xf32>
    %5 = vector.shape_cast %4 : vector<1x1x32xf32> to vector<1x32xf32>
    %c0_5 = arith.constant 0 : index
    %c0_6 = arith.constant 0 : index
    %c0_7 = arith.constant 0 : index
    %6 = vector.load %arg3[%c0_5, %c0_6, %c0_7] : memref<1x1x32xf32, #tpu.memory_space<vmem>>, vector<1x1x32xf32>
    %7 = vector.shape_cast %6 : vector<1x1x32xf32> to vector<1x32xf32>
    %cst = arith.constant dense<0.000000e+00> : vector<16xf32>
    %8 = vector.multi_reduction <add>, %3, %cst [1] : vector<16x32xf32> to vector<16xf32>
    %9 = vector.shape_cast %8 : vector<16xf32> to vector<16x1xf32>
    %cst_8 = arith.constant 3.200000e+01 : f32
    %10 = vector.broadcast %cst_8 : f32 to vector<16x1xf32>
    %11 = arith.divf %9, %10 : vector<16x1xf32>
    %12 = vector.broadcast %11 : vector<16x1xf32> to vector<16x32xf32>
    %13 = arith.subf %3, %12 : vector<16x32xf32>
    %14 = arith.mulf %13, %13 : vector<16x32xf32>
    %cst_9 = arith.constant dense<0.000000e+00> : vector<16xf32>
    %15 = vector.multi_reduction <add>, %14, %cst_9 [1] : vector<16x32xf32> to vector<16xf32>
    %16 = vector.shape_cast %15 : vector<16xf32> to vector<16x1xf32>
    %cst_10 = arith.constant 3.200000e+01 : f32
    %17 = vector.broadcast %cst_10 : f32 to vector<16x1xf32>
    %18 = arith.divf %16, %17 : vector<16x1xf32>
    %19 = vector.broadcast %11 : vector<16x1xf32> to vector<16x32xf32>
    %20 = arith.subf %3, %19 : vector<16x32xf32>
    %cst_11 = arith.constant 9.99999974E-6 : f32
    %21 = vector.broadcast %cst_11 : f32 to vector<16x1xf32>
    %22 = arith.addf %18, %21 : vector<16x1xf32>
    %23 = math.rsqrt %22 : vector<16x1xf32>
    %24 = vector.broadcast %23 : vector<16x1xf32> to vector<16x32xf32>
    %25 = arith.mulf %20, %24 : vector<16x32xf32>
    %26 = vector.broadcast %5 : vector<1x32xf32> to vector<16x32xf32>
    %27 = arith.mulf %25, %26 : vector<16x32xf32>
    %28 = vector.broadcast %7 : vector<1x32xf32> to vector<16x32xf32>
    %29 = arith.addf %27, %28 : vector<16x32xf32>
    %30 = arith.truncf %29 : vector<16x32xf32> to vector<16x32xbf16>
    %c0_12 = arith.constant 0 : index
    %c0_13 = arith.constant 0 : index
    %c0_14 = arith.constant 0 : index
    %31 = vector.load %arg4[%c0_12, %c0_13, %c0_14] : memref<1x32x128xbf16, #tpu.memory_space<vmem>>, vector<1x32x128xbf16>
    %32 = vector.shape_cast %31 : vector<1x32x128xbf16> to vector<32x128xbf16>
    %cst_15 = arith.constant dense<0.000000e+00> : vector<16x128xf32>
    %33 = tpu.matmul %30, %32, %cst_15 {dimension_numbers = #tpu.dot_dimension_numbers<[1], [0], [0], [1], [0, 0, 1, 1], [], []>} : vector<16x32xbf16>, vector<32x128xbf16>, vector<16x128xf32> -> vector<16x128xf32>
    %c0_16 = arith.constant 0 : index
    %c0_17 = arith.constant 0 : index
    %c0_18 = arith.constant 0 : index
    %34 = vector.load %arg5[%c0_16, %c0_17, %c0_18] : memref<1x1x128xf32, #tpu.memory_space<vmem>>, vector<1x1x128xf32>
    %35 = vector.shape_cast %34 : vector<1x1x128xf32> to vector<1x128xf32>
    %36 = vector.broadcast %35 : vector<1x128xf32> to vector<16x128xf32>
    %37 = arith.addf %33, %36 : vector<16x128xf32>
    %38 = vector.extract_strided_slice %37 {offsets = [0, 0], sizes = [16, 64], strides = [1, 1]} : vector<16x128xf32> to vector<16x64xf32>
    %39 = vector.extract_strided_slice %37 {offsets = [0, 64], sizes = [16, 64], strides = [1, 1]} : vector<16x128xf32> to vector<16x64xf32>
    %c0_19 = arith.constant 0 : index
    %c0_20 = arith.constant 0 : index
    %c0_21 = arith.constant 0 : index
    %40 = vector.load %arg6[%c0_19, %c0_20, %c0_21] : memref<1x4x64xf32, #tpu.memory_space<vmem>>, vector<1x4x64xf32>
    %41 = vector.shape_cast %40 : vector<1x4x64xf32> to vector<4x64xf32>
    %42 = tpu.iota {dimensions = array<i32: 0>} : vector<16x64xi32>
    %c0_22 = arith.constant 0 : index
    %c0_23 = arith.constant 0 : index
    %c0_24 = arith.constant 0 : index
    %43 = vector.load %arg7[%c0_22, %c0_23, %c0_24] : memref<1x1x64xf32, #tpu.memory_space<vmem>>, vector<1x1x64xf32>
    %44 = vector.shape_cast %43 : vector<1x1x64xf32> to vector<1x64xf32>
    %45 = vector.extract_strided_slice %41 {offsets = [3, 0], sizes = [1, 64], strides = [1, 1]} : vector<4x64xf32> to vector<1x64xf32>
    %46 = vector.broadcast %45 : vector<1x64xf32> to vector<16x64xf32>
    %47 = arith.mulf %38, %46 : vector<16x64xf32>
    %48 = vector.broadcast %44 : vector<1x64xf32> to vector<16x64xf32>
    %49 = arith.addf %48, %47 : vector<16x64xf32>
    %c2_i32 = arith.constant 2 : i32
    %50 = tpu.dynamic_rotate %38 by %c2_i32 dim 0 : vector<16x64xf32>, i32 -> vector<16x64xf32>
    %c2_i32_25 = arith.constant 2 : i32
    %51 = vector.broadcast %c2_i32_25 : i32 to vector<16x64xi32>
    %52 = arith.cmpi sge, %42, %51 : vector<16x64xi32>
    %cst_26 = arith.constant 0.000000e+00 : f32
    %53 = vector.broadcast %cst_26 : f32 to vector<16x64xf32>
    %54 = arith.select %52, %50, %53 : vector<16x64xi1>, vector<16x64xf32>
    %55 = vector.extract_strided_slice %41 {offsets = [2, 0], sizes = [1, 64], strides = [1, 1]} : vector<4x64xf32> to vector<1x64xf32>
    %56 = vector.broadcast %55 : vector<1x64xf32> to vector<16x64xf32>
    %57 = arith.mulf %54, %56 : vector<16x64xf32>
    %58 = arith.addf %49, %57 : vector<16x64xf32>
    %c4_i32 = arith.constant 4 : i32
    %59 = tpu.dynamic_rotate %38 by %c4_i32 dim 0 : vector<16x64xf32>, i32 -> vector<16x64xf32>
    %c4_i32_27 = arith.constant 4 : i32
    %60 = vector.broadcast %c4_i32_27 : i32 to vector<16x64xi32>
    %61 = arith.cmpi sge, %42, %60 : vector<16x64xi32>
    %cst_28 = arith.constant 0.000000e+00 : f32
    %62 = vector.broadcast %cst_28 : f32 to vector<16x64xf32>
    %63 = arith.select %61, %59, %62 : vector<16x64xi1>, vector<16x64xf32>
    %64 = vector.extract_strided_slice %41 {offsets = [1, 0], sizes = [1, 64], strides = [1, 1]} : vector<4x64xf32> to vector<1x64xf32>
    %65 = vector.broadcast %64 : vector<1x64xf32> to vector<16x64xf32>
    %66 = arith.mulf %63, %65 : vector<16x64xf32>
    %67 = arith.addf %58, %66 : vector<16x64xf32>
    %c6_i32 = arith.constant 6 : i32
    %68 = tpu.dynamic_rotate %38 by %c6_i32 dim 0 : vector<16x64xf32>, i32 -> vector<16x64xf32>
    %c6_i32_29 = arith.constant 6 : i32
    %69 = vector.broadcast %c6_i32_29 : i32 to vector<16x64xi32>
    %70 = arith.cmpi sge, %42, %69 : vector<16x64xi32>
    %cst_30 = arith.constant 0.000000e+00 : f32
    %71 = vector.broadcast %cst_30 : f32 to vector<16x64xf32>
    %72 = arith.select %70, %68, %71 : vector<16x64xi1>, vector<16x64xf32>
    %73 = vector.extract_strided_slice %41 {offsets = [0, 0], sizes = [1, 64], strides = [1, 1]} : vector<4x64xf32> to vector<1x64xf32>
    %74 = vector.broadcast %73 : vector<1x64xf32> to vector<16x64xf32>
    %75 = arith.mulf %72, %74 : vector<16x64xf32>
    %76 = arith.addf %67, %75 : vector<16x64xf32>
    %cst_31 = arith.constant 5.000000e-01 : f32
    %77 = vector.broadcast %cst_31 : f32 to vector<16x64xf32>
    %78 = arith.mulf %77, %76 : vector<16x64xf32>
    %79 = math.tanh %78 : vector<16x64xf32>
    %cst_32 = arith.constant 1.000000e+00 : f32
    %80 = vector.broadcast %cst_32 : f32 to vector<16x64xf32>
    %81 = arith.addf %79, %80 : vector<16x64xf32>
    %cst_33 = arith.constant 5.000000e-01 : f32
    %82 = vector.broadcast %cst_33 : f32 to vector<16x64xf32>
    %83 = arith.mulf %82, %81 : vector<16x64xf32>
    %84 = arith.mulf %76, %83 : vector<16x64xf32>
    %85 = arith.truncf %84 : vector<16x64xf32> to vector<16x64xbf16>
    %c0_34 = arith.constant 0 : index
    %c0_35 = arith.constant 0 : index
    %c0_36 = arith.constant 0 : index
    %86 = vector.load %arg8[%c0_34, %c0_35, %c0_36] : memref<1x64x80xbf16, #tpu.memory_space<vmem>>, vector<1x64x80xbf16>
    %87 = vector.shape_cast %86 : vector<1x64x80xbf16> to vector<64x80xbf16>
    %cst_37 = arith.constant dense<0.000000e+00> : vector<16x80xf32>
    %88 = tpu.matmul %85, %87, %cst_37 {dimension_numbers = #tpu.dot_dimension_numbers<[1], [0], [0], [1], [0, 0, 1, 1], [], []>} : vector<16x64xbf16>, vector<64x80xbf16>, vector<16x80xf32> -> vector<16x80xf32>
    %89 = vector.extract_strided_slice %88 {offsets = [0, 0], sizes = [16, 64], strides = [1, 1]} : vector<16x80xf32> to vector<16x64xf32>
    %c0_38 = arith.constant 0 : index
    %c0_39 = arith.constant 0 : index
    %c0_40 = arith.constant 0 : index
    %90 = vector.load %arg9[%c0_38, %c0_39, %c0_40] : memref<1x1x64xf32, #tpu.memory_space<vmem>>, vector<1x1x64xf32>
    %91 = vector.shape_cast %90 : vector<1x1x64xf32> to vector<1x64xf32>
    %92 = vector.broadcast %91 : vector<1x64xf32> to vector<16x64xf32>
    %93 = arith.addf %89, %92 : vector<16x64xf32>
    %cst_41 = arith.constant 0.000000e+00 : f32
    %94 = vector.broadcast %cst_41 : f32 to vector<16x64xf32>
    %95 = arith.maximumf %93, %94 : vector<16x64xf32>
    %96 = math.absf %93 : vector<16x64xf32>
    %cst_42 = arith.constant 0.000000e+00 : f32
    %97 = vector.broadcast %cst_42 : f32 to vector<16x64xf32>
    %98 = arith.subf %97, %96 : vector<16x64xf32>
    %99 = math.exp %98 : vector<16x64xf32>
    %cst_43 = arith.constant 1.000000e+00 : f32
    %100 = vector.broadcast %cst_43 : f32 to vector<16x64xf32>
    %101 = arith.addf %100, %99 : vector<16x64xf32>
    %102 = math.log %101 : vector<16x64xf32>
    %103 = arith.addf %95, %102 : vector<16x64xf32>
    %104 = vector.extract_strided_slice %88 {offsets = [0, 64], sizes = [16, 8], strides = [1, 1]} : vector<16x80xf32> to vector<16x8xf32>
    %105 = vector.extract_strided_slice %88 {offsets = [0, 72], sizes = [16, 8], strides = [1, 1]} : vector<16x80xf32> to vector<16x8xf32>
    %c0_44 = arith.constant 0 : index
    %c0_45 = arith.constant 0 : index
    %c0_46 = arith.constant 0 : index
    %106 = vector.load %arg10[%c0_44, %c0_45, %c0_46] : memref<1x8x64xf32, #tpu.memory_space<vmem>>, vector<1x8x64xf32>
    %107 = vector.shape_cast %106 : vector<1x8x64xf32> to vector<8x64xf32>
    %108 = arith.mulf %103, %84 : vector<16x64xf32>
    %cst_47 = arith.constant 0.000000e+00 : f32
    %109 = vector.broadcast %cst_47 : f32 to vector<2x8x64xf32>
    %110 = vector.shape_cast %103 : vector<16x64xf32> to vector<16x1x64xf32>
    %111 = vector.shape_cast %107 : vector<8x64xf32> to vector<1x8x64xf32>
    %112 = vector.broadcast %110 : vector<16x1x64xf32> to vector<16x8x64xf32>
    %113 = vector.broadcast %111 : vector<1x8x64xf32> to vector<16x8x64xf32>
    %114 = arith.mulf %112, %113 : vector<16x8x64xf32>
    %115 = math.exp %114 : vector<16x8x64xf32>
    %c0_48 = arith.constant 0 : index
    %c0_49 = arith.constant 0 : index
    %c0_50 = arith.constant 0 : index
    %116 = vector.load %arg21[%c0_48, %c0_49, %c0_50] : memref<16x8x64xf32, #tpu.memory_space<vmem>>, vector<16x8x64xf32>
    tpu.vector_store %arg21[%c0_48, %c0_49, %c0_50], %115 {strides = array<i32>} : memref<16x8x64xf32, #tpu.memory_space<vmem>>, vector<16x8x64xf32>,
    %117 = vector.shape_cast %108 : vector<16x64xf32> to vector<16x1x64xf32>
    %118 = vector.shape_cast %104 : vector<16x8xf32> to vector<16x8x1xf32>
    %119 = vector.broadcast %117 : vector<16x1x64xf32> to vector<16x8x64xf32>
    %120 = vector.broadcast %118 : vector<16x8x1xf32> to vector<16x8x64xf32>
    %121 = arith.mulf %119, %120 : vector<16x8x64xf32>
    %c0_51 = arith.constant 0 : index
    %c0_52 = arith.constant 0 : index
    %c0_53 = arith.constant 0 : index
    %122 = vector.load %arg22[%c0_51, %c0_52, %c0_53] : memref<16x8x64xf32, #tpu.memory_space<vmem>>, vector<16x8x64xf32>
    tpu.vector_store %arg22[%c0_51, %c0_52, %c0_53], %121 {strides = array<i32>} : memref<16x8x64xf32, #tpu.memory_space<vmem>>, vector<16x8x64xf32>,
    %c0_i32_54 = arith.constant 0 : i32
    %c2_i32_55 = arith.constant 2 : i32
    %123 = arith.addi %c0_i32_54, %c2_i32_55 : i32
    %c1_i32 = arith.constant 1 : i32
    %124 = scf.for %arg25 = %c0_i32_54 to %123 step %c1_i32 iter_args(%arg26 = %109) -> (vector<2x8x64xf32>)  : i32 {
      %c8_i32 = arith.constant 8 : i32
      %158 = arith.muli %arg25, %c8_i32 : i32
      %c0_i32_82 = arith.constant 0 : i32
      %159 = arith.addi %158, %c0_i32_82 : i32
      %160 = tpu.assume_multiple %159, 2 : i32
      %161 = arith.index_cast %160 : i32 to index
      %c0_83 = arith.constant 0 : index
      %c0_84 = arith.constant 0 : index
      %162 = vector.load %arg21[%161, %c0_83, %c0_84] : memref<16x8x64xf32, #tpu.memory_space<vmem>>, vector<2x8x64xf32>
      %163 = arith.mulf %162, %arg26 : vector<2x8x64xf32>
      %164 = arith.index_cast %160 : i32 to index
      %c0_85 = arith.constant 0 : index
      %c0_86 = arith.constant 0 : index
      %165 = vector.load %arg22[%164, %c0_85, %c0_86] : memref<16x8x64xf32, #tpu.memory_space<vmem>>, vector<2x8x64xf32>
      %166 = arith.addf %163, %165 : vector<2x8x64xf32>
      %167 = arith.index_cast %160 : i32 to index
      %c0_87 = arith.constant 0 : index
      %c0_88 = arith.constant 0 : index
      %168 = vector.load %arg23[%167, %c0_87, %c0_88] : memref<16x8x64xf32, #tpu.memory_space<vmem>>, vector<2x8x64xf32>
      tpu.vector_store %arg23[%167, %c0_87, %c0_88], %166 {strides = array<i32>} : memref<16x8x64xf32, #tpu.memory_space<vmem>>, vector<2x8x64xf32>,
      %c8_i32_89 = arith.constant 8 : i32
      %169 = arith.muli %arg25, %c8_i32_89 : i32
      %c2_i32_90 = arith.constant 2 : i32
      %170 = arith.addi %169, %c2_i32_90 : i32
      %171 = tpu.assume_multiple %170, 2 : i32
      %172 = arith.index_cast %171 : i32 to index
      %c0_91 = arith.constant 0 : index
      %c0_92 = arith.constant 0 : index
      %173 = vector.load %arg21[%172, %c0_91, %c0_92] : memref<16x8x64xf32, #tpu.memory_space<vmem>>, vector<2x8x64xf32>
      %174 = arith.mulf %173, %166 : vector<2x8x64xf32>
      %175 = arith.index_cast %171 : i32 to index
      %c0_93 = arith.constant 0 : index
      %c0_94 = arith.constant 0 : index
      %176 = vector.load %arg22[%175, %c0_93, %c0_94] : memref<16x8x64xf32, #tpu.memory_space<vmem>>, vector<2x8x64xf32>
      %177 = arith.addf %174, %176 : vector<2x8x64xf32>
      %178 = arith.index_cast %171 : i32 to index
      %c0_95 = arith.constant 0 : index
      %c0_96 = arith.constant 0 : index
      %179 = vector.load %arg23[%178, %c0_95, %c0_96] : memref<16x8x64xf32, #tpu.memory_space<vmem>>, vector<2x8x64xf32>
      tpu.vector_store %arg23[%178, %c0_95, %c0_96], %177 {strides = array<i32>} : memref<16x8x64xf32, #tpu.memory_space<vmem>>, vector<2x8x64xf32>,
      %c8_i32_97 = arith.constant 8 : i32
      %180 = arith.muli %arg25, %c8_i32_97 : i32
      %c4_i32_98 = arith.constant 4 : i32
      %181 = arith.addi %180, %c4_i32_98 : i32
      %182 = tpu.assume_multiple %181, 2 : i32
      %183 = arith.index_cast %182 : i32 to index
      %c0_99 = arith.constant 0 : index
      %c0_100 = arith.constant 0 : index
      %184 = vector.load %arg21[%183, %c0_99, %c0_100] : memref<16x8x64xf32, #tpu.memory_space<vmem>>, vector<2x8x64xf32>
      %185 = arith.mulf %184, %177 : vector<2x8x64xf32>
      %186 = arith.index_cast %182 : i32 to index
      %c0_101 = arith.constant 0 : index
      %c0_102 = arith.constant 0 : index
      %187 = vector.load %arg22[%186, %c0_101, %c0_102] : memref<16x8x64xf32, #tpu.memory_space<vmem>>, vector<2x8x64xf32>
      %188 = arith.addf %185, %187 : vector<2x8x64xf32>
      %189 = arith.index_cast %182 : i32 to index
      %c0_103 = arith.constant 0 : index
      %c0_104 = arith.constant 0 : index
      %190 = vector.load %arg23[%189, %c0_103, %c0_104] : memref<16x8x64xf32, #tpu.memory_space<vmem>>, vector<2x8x64xf32>
      tpu.vector_store %arg23[%189, %c0_103, %c0_104], %188 {strides = array<i32>} : memref<16x8x64xf32, #tpu.memory_space<vmem>>, vector<2x8x64xf32>,
      %c8_i32_105 = arith.constant 8 : i32
      %191 = arith.muli %arg25, %c8_i32_105 : i32
      %c6_i32_106 = arith.constant 6 : i32
      %192 = arith.addi %191, %c6_i32_106 : i32
      %193 = tpu.assume_multiple %192, 2 : i32
      %194 = arith.index_cast %193 : i32 to index
      %c0_107 = arith.constant 0 : index
      %c0_108 = arith.constant 0 : index
      %195 = vector.load %arg21[%194, %c0_107, %c0_108] : memref<16x8x64xf32, #tpu.memory_space<vmem>>, vector<2x8x64xf32>
      %196 = arith.mulf %195, %188 : vector<2x8x64xf32>
      %197 = arith.index_cast %193 : i32 to index
      %c0_109 = arith.constant 0 : index
      %c0_110 = arith.constant 0 : index
      %198 = vector.load %arg22[%197, %c0_109, %c0_110] : memref<16x8x64xf32, #tpu.memory_space<vmem>>, vector<2x8x64xf32>
      %199 = arith.addf %196, %198 : vector<2x8x64xf32>
      %200 = arith.index_cast %193 : i32 to index
      %c0_111 = arith.constant 0 : index
      %c0_112 = arith.constant 0 : index
      %201 = vector.load %arg23[%200, %c0_111, %c0_112] : memref<16x8x64xf32, #tpu.memory_space<vmem>>, vector<2x8x64xf32>
      tpu.vector_store %arg23[%200, %c0_111, %c0_112], %199 {strides = array<i32>} : memref<16x8x64xf32, #tpu.memory_space<vmem>>, vector<2x8x64xf32>,
      scf.yield %199 : vector<2x8x64xf32>
    }
    %c2_i32_56 = arith.constant 2 : i32
    %c0_57 = arith.constant 0 : index
    %c0_58 = arith.constant 0 : index
    %c0_59 = arith.constant 0 : index
    %125 = vector.load %arg23[%c0_57, %c0_58, %c0_59] : memref<16x8x64xf32, #tpu.memory_space<vmem>>, vector<16x8x64xf32>
    %126 = vector.shape_cast %105 : vector<16x8xf32> to vector<16x8x1xf32>
    %127 = vector.broadcast %126 : vector<16x8x1xf32> to vector<16x8x64xf32>
    %128 = arith.mulf %125, %127 : vector<16x8x64xf32>
    %cst_60 = arith.constant dense<0.000000e+00> : vector<16x64xf32>
    %129 = vector.multi_reduction <add>, %128, %cst_60 [1] : vector<16x8x64xf32> to vector<16x64xf32>
    %c0_61 = arith.constant 0 : index
    %c0_62 = arith.constant 0 : index
    %130 = vector.load %arg24[%c0_61, %c0_62] : memref<16x64xf32, #tpu.memory_space<vmem>>, vector<16x64xf32>
    tpu.vector_store %arg24[%c0_61, %c0_62], %129 {strides = array<i32>} : memref<16x64xf32, #tpu.memory_space<vmem>>, vector<16x64xf32>,
    %c0_63 = arith.constant 0 : index
    %c0_64 = arith.constant 0 : index
    %131 = vector.load %arg24[%c0_63, %c0_64] : memref<16x64xf32, #tpu.memory_space<vmem>>, vector<16x64xf32>
    %c0_65 = arith.constant 0 : index
    %c0_66 = arith.constant 0 : index
    %c0_67 = arith.constant 0 : index
    %132 = vector.load %arg11[%c0_65, %c0_66, %c0_67] : memref<1x1x64xf32, #tpu.memory_space<vmem>>, vector<1x1x64xf32>
    %133 = vector.shape_cast %132 : vector<1x1x64xf32> to vector<1x64xf32>
    %134 = vector.broadcast %133 : vector<1x64xf32> to vector<16x64xf32>
    %135 = arith.mulf %134, %84 : vector<16x64xf32>
    %136 = arith.addf %131, %135 : vector<16x64xf32>
    %cst_68 = arith.constant 5.000000e-01 : f32
    %137 = vector.broadcast %cst_68 : f32 to vector<16x64xf32>
    %138 = arith.mulf %137, %39 : vector<16x64xf32>
    %139 = math.tanh %138 : vector<16x64xf32>
    %cst_69 = arith.constant 1.000000e+00 : f32
    %140 = vector.broadcast %cst_69 : f32 to vector<16x64xf32>
    %141 = arith.addf %139, %140 : vector<16x64xf32>
    %cst_70 = arith.constant 5.000000e-01 : f32
    %142 = vector.broadcast %cst_70 : f32 to vector<16x64xf32>
    %143 = arith.mulf %142, %141 : vector<16x64xf32>
    %144 = arith.mulf %143, %136 : vector<16x64xf32>
    %145 = arith.truncf %144 : vector<16x64xf32> to vector<16x64xbf16>
    %c0_71 = arith.constant 0 : index
    %c0_72 = arith.constant 0 : index
    %c0_73 = arith.constant 0 : index
    %146 = vector.load %arg12[%c0_71, %c0_72, %c0_73] : memref<1x64x32xbf16, #tpu.memory_space<vmem>>, vector<1x64x32xbf16>
    %147 = vector.shape_cast %146 : vector<1x64x32xbf16> to vector<64x32xbf16>
    %cst_74 = arith.constant dense<0.000000e+00> : vector<16x32xf32>
    %148 = tpu.matmul %145, %147, %cst_74 {dimension_numbers = #tpu.dot_dimension_numbers<[1], [0], [0], [1], [0, 0, 1, 1], [], []>} : vector<16x64xbf16>, vector<64x32xbf16>, vector<16x32xf32> -> vector<16x32xf32>
    %c0_75 = arith.constant 0 : index
    %c0_76 = arith.constant 0 : index
    %c0_77 = arith.constant 0 : index
    %149 = vector.load %arg13[%c0_75, %c0_76, %c0_77] : memref<1x1x32xf32, #tpu.memory_space<vmem>>, vector<1x1x32xf32>
    %150 = vector.shape_cast %149 : vector<1x1x32xf32> to vector<1x32xf32>
    %151 = vector.broadcast %150 : vector<1x32xf32> to vector<16x32xf32>
    %152 = arith.addf %148, %151 : vector<16x32xf32>
    %153 = arith.addf %152, %3 : vector<16x32xf32>
    %c0_78 = arith.constant 0 : index
    %c0_79 = arith.constant 0 : index
    %154 = vector.load %arg20[%c0_78, %c0_79] : memref<16x32xf32, #tpu.memory_space<vmem>>, vector<16x32xf32>
    tpu.vector_store %arg20[%c0_78, %c0_79], %153 {strides = array<i32>} : memref<16x32xf32, #tpu.memory_space<vmem>>, vector<16x32xf32>,
    %c1_i32_80 = arith.constant 1 : i32
    %155 = arith.cmpi eq, %arg0, %c1_i32_80 : i32
    %156 = arith.extui %155 : i1 to i32
    %c0_i32_81 = arith.constant 0 : i32
    %157 = arith.cmpi ne, %156, %c0_i32_81 : i32
    scf.if %157 {
      %c0_82 = arith.constant 0 : index
      %c0_83 = arith.constant 0 : index
      %158 = vector.load %arg14[%c0_82, %c0_83] : memref<1x32xf32, #tpu.memory_space<vmem>>, vector<1x32xf32>
      %c0_84 = arith.constant 0 : index
      %c0_85 = arith.constant 0 : index
      %159 = vector.load %arg15[%c0_84, %c0_85] : memref<1x32xf32, #tpu.memory_space<vmem>>, vector<1x32xf32>
      %cst_86 = arith.constant dense<0.000000e+00> : vector<16xf32>
      %160 = vector.multi_reduction <add>, %153, %cst_86 [1] : vector<16x32xf32> to vector<16xf32>
      %161 = vector.shape_cast %160 : vector<16xf32> to vector<16x1xf32>
      %cst_87 = arith.constant 3.200000e+01 : f32
      %162 = vector.broadcast %cst_87 : f32 to vector<16x1xf32>
      %163 = arith.divf %161, %162 : vector<16x1xf32>
      %164 = vector.broadcast %163 : vector<16x1xf32> to vector<16x32xf32>
      %165 = arith.subf %153, %164 : vector<16x32xf32>
      %166 = arith.mulf %165, %165 : vector<16x32xf32>
      %cst_88 = arith.constant dense<0.000000e+00> : vector<16xf32>
      %167 = vector.multi_reduction <add>, %166, %cst_88 [1] : vector<16x32xf32> to vector<16xf32>
      %168 = vector.shape_cast %167 : vector<16xf32> to vector<16x1xf32>
      %cst_89 = arith.constant 3.200000e+01 : f32
      %169 = vector.broadcast %cst_89 : f32 to vector<16x1xf32>
      %170 = arith.divf %168, %169 : vector<16x1xf32>
      %171 = vector.broadcast %163 : vector<16x1xf32> to vector<16x32xf32>
      %172 = arith.subf %153, %171 : vector<16x32xf32>
      %cst_90 = arith.constant 9.99999974E-6 : f32
      %173 = vector.broadcast %cst_90 : f32 to vector<16x1xf32>
      %174 = arith.addf %170, %173 : vector<16x1xf32>
      %175 = math.rsqrt %174 : vector<16x1xf32>
      %176 = vector.broadcast %175 : vector<16x1xf32> to vector<16x32xf32>
      %177 = arith.mulf %172, %176 : vector<16x32xf32>
      %178 = vector.broadcast %158 : vector<1x32xf32> to vector<16x32xf32>
      %179 = arith.mulf %177, %178 : vector<16x32xf32>
      %180 = vector.broadcast %159 : vector<1x32xf32> to vector<16x32xf32>
      %181 = arith.addf %179, %180 : vector<16x32xf32>
      %c0_91 = arith.constant 0 : index
      %c0_92 = arith.constant 0 : index
      %182 = vector.load %arg18[%c0_91, %c0_92] : memref<16x32xf32, #tpu.memory_space<vmem>>, vector<16x32xf32>
      tpu.vector_store %arg18[%c0_91, %c0_92], %181 {strides = array<i32>} : memref<16x32xf32, #tpu.memory_space<vmem>>, vector<16x32xf32>,
      %183 = tpu.iota {dimensions = array<i32: 1>} : vector<2x16xi32>
      %184 = tpu.iota {dimensions = array<i32: 0>} : vector<2x16xi32>
      %c2_i32_93 = arith.constant 2 : i32
      %c0_i32_94 = arith.constant 0 : i32
      %185 = arith.cmpi eq, %c2_i32_93, %c0_i32_94 : i32
      %c1_i32_95 = arith.constant 1 : i32
      %186 = arith.select %185, %c1_i32_95, %c2_i32_93 : i32
      %187 = vector.broadcast %186 : i32 to vector<2x16xi32>
      %188 = arith.remsi %183, %187 : vector<2x16xi32>
      %c0_i32_96 = arith.constant 0 : i32
      %189 = vector.broadcast %c0_i32_96 : i32 to vector<2x16xi32>
      %190 = arith.cmpi ne, %188, %189 : vector<2x16xi32>
      %c0_i32_97 = arith.constant 0 : i32
      %191 = vector.broadcast %c0_i32_97 : i32 to vector<2x16xi32>
      %192 = arith.cmpi slt, %188, %191 : vector<2x16xi32>
      %c0_i32_98 = arith.constant 0 : i32
      %193 = arith.cmpi slt, %186, %c0_i32_98 : i32
      %194 = vector.broadcast %193 : i1 to vector<2x16xi1>
      %195 = vector.broadcast %194 : vector<2x16xi1> to vector<2x16xi1>
      %196 = arith.xori %192, %195 : vector<2x16xi1>
      %197 = arith.andi %196, %190 : vector<2x16xi1>
      %198 = vector.broadcast %186 : i32 to vector<2x16xi32>
      %199 = arith.addi %188, %198 : vector<2x16xi32>
      %200 = arith.select %197, %199, %188 : vector<2x16xi1>, vector<2x16xi32>
      %201 = arith.cmpi eq, %200, %184 : vector<2x16xi32>
      %c16_i32 = arith.constant 16 : i32
      %202 = vector.broadcast %c16_i32 : i32 to vector<2x16xi32>
      %203 = arith.cmpi slt, %183, %202 : vector<2x16xi32>
      %204 = arith.andi %201, %203 : vector<2x16xi1>
      %cst_99 = arith.constant 1.250000e-01 : f32
      %cst_100 = arith.constant 0.000000e+00 : f32
      %205 = vector.broadcast %cst_99 : f32 to vector<2x16xf32>
      %206 = vector.broadcast %cst_100 : f32 to vector<2x16xf32>
      %207 = arith.select %204, %205, %206 : vector<2x16xi1>, vector<2x16xf32>
      %cst_101 = arith.constant dense<0.000000e+00> : vector<2x32xf32>
      %208 = tpu.matmul %207, %181, %cst_101 {dimension_numbers = #tpu.dot_dimension_numbers<[1], [0], [0], [1], [0, 0, 1, 1], [], []>} : vector<2x16xf32>, vector<16x32xf32>, vector<2x32xf32> -> vector<2x32xf32>
      %c0_102 = arith.constant 0 : index
      %c0_103 = arith.constant 0 : index
      %209 = vector.load %arg16[%c0_102, %c0_103] : memref<32x2xf32, #tpu.memory_space<vmem>>, vector<32x2xf32>
      %cst_104 = arith.constant dense<0.000000e+00> : vector<2x2xf32>
      %210 = tpu.matmul %208, %209, %cst_104 {dimension_numbers = #tpu.dot_dimension_numbers<[1], [0], [0], [1], [0, 0, 1, 1], [], []>} : vector<2x32xf32>, vector<32x2xf32>, vector<2x2xf32> -> vector<2x2xf32>
      %c0_105 = arith.constant 0 : index
      %c0_106 = arith.constant 0 : index
      %211 = vector.load %arg17[%c0_105, %c0_106] : memref<1x2xf32, #tpu.memory_space<vmem>>, vector<1x2xf32>
      %212 = vector.broadcast %211 : vector<1x2xf32> to vector<2x2xf32>
      %213 = arith.addf %210, %212 : vector<2x2xf32>
      %c0_107 = arith.constant 0 : index
      %c0_108 = arith.constant 0 : index
      %214 = vector.load %arg19[%c0_107, %c0_108] : memref<2x2xf32, #tpu.memory_space<vmem>>, vector<2x2xf32>
      tpu.vector_store %arg19[%c0_107, %c0_108], %213 {strides = array<i32>} : memref<2x2xf32, #tpu.memory_space<vmem>>, vector<2x2xf32>,
    } else {
    }
    return
  }
  func.func @transform_0(%arg0: i32) -> (i32, i32) {
    %c0_i32 = arith.constant 0 : i32
    %c0_i32_0 = arith.constant 0 : i32
    %c0_i32_1 = arith.constant 0 : i32
    return %c0_i32, %c0_i32_0 : i32, i32
  }
  func.func @transform_1(%arg0: i32) -> (i32, i32, i32) {
    %c0_i32 = arith.constant 0 : i32
    %c0_i32_0 = arith.constant 0 : i32
    %c0_i32_1 = arith.constant 0 : i32
    return %arg0, %c0_i32, %c0_i32_0 : i32, i32, i32
  }
  func.func @transform_2(%arg0: i32) -> (i32, i32, i32) {
    %c0_i32 = arith.constant 0 : i32
    %c0_i32_0 = arith.constant 0 : i32
    %c0_i32_1 = arith.constant 0 : i32
    return %arg0, %c0_i32, %c0_i32_0 : i32, i32, i32
  }
  func.func @transform_3(%arg0: i32) -> (i32, i32, i32) {
    %c0_i32 = arith.constant 0 : i32
    %c0_i32_0 = arith.constant 0 : i32
    %c0_i32_1 = arith.constant 0 : i32
    return %arg0, %c0_i32, %c0_i32_0 : i32, i32, i32
  }
  func.func @transform_4(%arg0: i32) -> (i32, i32, i32) {
    %c0_i32 = arith.constant 0 : i32
    %c0_i32_0 = arith.constant 0 : i32
    %c0_i32_1 = arith.constant 0 : i32
    return %arg0, %c0_i32, %c0_i32_0 : i32, i32, i32
  }
  func.func @transform_5(%arg0: i32) -> (i32, i32, i32) {
    %c0_i32 = arith.constant 0 : i32
    %c0_i32_0 = arith.constant 0 : i32
    %c0_i32_1 = arith.constant 0 : i32
    return %arg0, %c0_i32, %c0_i32_0 : i32, i32, i32
  }
  func.func @transform_6(%arg0: i32) -> (i32, i32, i32) {
    %c0_i32 = arith.constant 0 : i32
    %c0_i32_0 = arith.constant 0 : i32
    %c0_i32_1 = arith.constant 0 : i32
    return %arg0, %c0_i32, %c0_i32_0 : i32, i32, i32
  }
  func.func @transform_7(%arg0: i32) -> (i32, i32, i32) {
    %c0_i32 = arith.constant 0 : i32
    %c0_i32_0 = arith.constant 0 : i32
    %c0_i32_1 = arith.constant 0 : i32
    return %arg0, %c0_i32, %c0_i32_0 : i32, i32, i32
  }
  func.func @transform_8(%arg0: i32) -> (i32, i32, i32) {
    %c0_i32 = arith.constant 0 : i32
    %c0_i32_0 = arith.constant 0 : i32
    %c0_i32_1 = arith.constant 0 : i32
    return %arg0, %c0_i32, %c0_i32_0 : i32, i32, i32
  }
  func.func @transform_9(%arg0: i32) -> (i32, i32, i32) {
    %c0_i32 = arith.constant 0 : i32
    %c0_i32_0 = arith.constant 0 : i32
    %c0_i32_1 = arith.constant 0 : i32
    return %arg0, %c0_i32, %c0_i32_0 : i32, i32, i32
  }
  func.func @transform_10(%arg0: i32) -> (i32, i32, i32) {
    %c0_i32 = arith.constant 0 : i32
    %c0_i32_0 = arith.constant 0 : i32
    %c0_i32_1 = arith.constant 0 : i32
    return %arg0, %c0_i32, %c0_i32_0 : i32, i32, i32
  }
  func.func @transform_11(%arg0: i32) -> (i32, i32, i32) {
    %c0_i32 = arith.constant 0 : i32
    %c0_i32_0 = arith.constant 0 : i32
    %c0_i32_1 = arith.constant 0 : i32
    return %arg0, %c0_i32, %c0_i32_0 : i32, i32, i32
  }
  func.func @transform_12(%arg0: i32) -> (i32, i32, i32) {
    %c0_i32 = arith.constant 0 : i32
    %c0_i32_0 = arith.constant 0 : i32
    %c0_i32_1 = arith.constant 0 : i32
    return %arg0, %c0_i32, %c0_i32_0 : i32, i32, i32
  }
  func.func @transform_13(%arg0: i32) -> (i32, i32) {
    %c0_i32 = arith.constant 0 : i32
    %c0_i32_0 = arith.constant 0 : i32
    %c0_i32_1 = arith.constant 0 : i32
    return %c0_i32, %c0_i32_0 : i32, i32
  }
  func.func @transform_14(%arg0: i32) -> (i32, i32) {
    %c0_i32 = arith.constant 0 : i32
    %c0_i32_0 = arith.constant 0 : i32
    %c0_i32_1 = arith.constant 0 : i32
    return %c0_i32, %c0_i32_0 : i32, i32
  }
  func.func @transform_15(%arg0: i32) -> (i32, i32) {
    %c0_i32 = arith.constant 0 : i32
    %c0_i32_0 = arith.constant 0 : i32
    %c0_i32_1 = arith.constant 0 : i32
    return %c0_i32, %c0_i32_0 : i32, i32
  }
  func.func @transform_16(%arg0: i32) -> (i32, i32) {
    %c0_i32 = arith.constant 0 : i32
    %c0_i32_0 = arith.constant 0 : i32
    %c0_i32_1 = arith.constant 0 : i32
    return %c0_i32, %c0_i32_0 : i32, i32
  }
  func.func @transform_17(%arg0: i32) -> (i32, i32) {
    %c0_i32 = arith.constant 0 : i32
    %c0_i32_0 = arith.constant 0 : i32
    %c0_i32_1 = arith.constant 0 : i32
    return %c0_i32, %c0_i32_0 : i32, i32
  }
  func.func @transform_18(%arg0: i32) -> (i32, i32) {
    %c0_i32 = arith.constant 0 : i32
    %c0_i32_0 = arith.constant 0 : i32
    %c0_i32_1 = arith.constant 0 : i32
    return %c0_i32, %c0_i32_0 : i32, i32
  }
}

</mosaic_0001>

<bundles_post_ra>
// kernel: tpu_custom_call.1
= control target key start
LH: loop header
LB: loop body
LE: loop exit
PB: predicated region body
PF: predicated region fallthrough
CT: control target
= control target key end

     0   :  { %s5343_s0 = inlined_call_operand.hbm [shape: f32[16,32], index: 0, kind: input, shape index: {}]   ;;  %s5344_s1 = inlined_call_operand.hbm [shape: f32[2,1,32], index: 1, kind: input, shape index: {}]   ;;  %s5345_s2 = inlined_call_operand.hbm [shape: f32[2,1,32], index: 2, kind: input, shape index: {}]   ;;  %s5346_s3 = inlined_call_operand.hbm [shape: bf16[2,32,128], index: 3, kind: input, shape index: {}]   ;;  %s5347_s4 = inlined_call_operand.hbm [shape: f32[2,1,128], index: 4, kind: input, shape index: {}]   ;;  %s5348_s5 = inlined_call_operand.hbm [shape: f32[2,4,64], index: 5, kind: input, shape index: {}]   ;;  %s5349_s6 = inlined_call_operand.hbm [shape: f32[2,1,64], index: 6, kind: input, shape index: {}]   ;;  %s5350_s7 = inlined_call_operand.hbm [shape: bf16[2,64,80], index: 7, kind: input, shape index: {}]   ;;  %s5351_s8 = inlined_call_operand.hbm [shape: f32[2,1,64], index: 8, kind: input, shape index: {}]   ;;  %s5352_s9 = inlined_call_operand.hbm [shape: f32[2,8,64], index: 9, kind: input, shape index: {}]   ;;  %s5353_s10 = inlined_call_operand.hbm [shape: f32[2,1,64], index: 10, kind: input, shape index: {}]   ;;  %s5354_s11 = inlined_call_operand.hbm [shape: bf16[2,64,32], index: 11, kind: input, shape index: {}]   ;;  %s5355_s12 = inlined_call_operand.hbm [shape: f32[2,1,32], index: 12, kind: input, shape index: {}]   ;;  %s5356_s13 = inlined_call_operand.hbm [shape: f32[1,32], index: 13, kind: input, shape index: {}]   ;;  %s5357_s14 = inlined_call_operand.hbm [shape: f32[1,32], index: 14, kind: input, shape index: {}]   ;;  %s5358_s15 = inlined_call_operand.hbm [shape: f32[32,2], index: 15, kind: input, shape index: {}]   ;;  %s5359_s16 = inlined_call_operand.hbm [shape: f32[1,2], index: 16, kind: input, shape index: {}]   ;;  %s5360_s17 = inlined_call_operand.hbm [shape: f32[16,32], index: 17, kind: output, shape index: {0}]   ;;  %s5361_s18 = inlined_call_operand.hbm [shape: f32[2,2], index: 18, kind: output, shape index: {1}]  }
   0x1   :  { %5403 = sst [smem:[#allocation55_spill]] %s5343_s0 }
   0x2   :  { %5404 = sst [smem:[#allocation56_spill]] %s5344_s1 }
   0x3   :  { %5405 = sst [smem:[#allocation57_spill]] %s5345_s2 }
   0x4   :  { %5406 = sst [smem:[#allocation58_spill]] %s5346_s3 }
   0x5   :  { %5407 = sst [smem:[#allocation59_spill]] %s5348_s5 }
   0x6   :  { %5408 = sst [smem:[#allocation60_spill]] %s5351_s8 }
   0x7   :  { %5409 = sst [smem:[#allocation61_spill]] %s5353_s10 }
   0x8   :  { %5410 = sst [smem:[#allocation62_spill]] %s5355_s12 }
   0x9   :  { %5411 = sst [smem:[#allocation63_spill]] %s5356_s13 }
   0xa   :  { %5412 = sst [smem:[#allocation64_spill]] %s5358_s15 }
   0xb   :  { %5413 = sst [smem:[#allocation65_spill]] %s5360_s17 }
   0xc   :  { %5414 = sst [smem:[#allocation66_spill]] %s5361_s18 }
   0xd   :  { %24 = vsyncpa [#allocation8], 0 }
   0xe   :  { %25 = vsyncpa [#allocation11], 0 }
   0xf   :  { %27 = vsyncpa [#allocation11 + $0x1], 0 }
  0x10   :  { %28 = vsyncpa [#allocation14], 0 }
  0x11   :  { %30 = vsyncpa [#allocation14 + $0x1], 0 }
  0x12   :  { %31 = vsyncpa [#allocation17], 0 }
  0x13   :  { %33 = vsyncpa [#allocation17 + $0x1], 0 }
  0x14   :  { %34 = vsyncpa [#allocation20], 0 }
  0x15   :  { %36 = vsyncpa [#allocation20 + $0x1], 0 }
  0x16   :  { %37 = vsyncpa [#allocation23], 0 }
  0x17   :  { %39 = vsyncpa [#allocation23 + $0x1], 0 }
  0x18   :  { %40 = vsyncpa [#allocation26], 0 }
  0x19   :  { %42 = vsyncpa [#allocation26 + $0x1], 0 }
  0x1a   :  { %43 = vsyncpa [#allocation29], 0 }
  0x1b   :  { %44 = vsyncpa [#allocation32], 0 }
  0x1c   :  { %45 = vsyncpa [#allocation9], 0 }
  0x1d   :  { %46 = vsyncpa [#allocation36], 0  ;;  %s4229_s27 = smov 0   ;;  %s4231_s28 = smov 0  }
  0x1e   :  { %s4233_s29 = smov 0   ;;  %s4235_s30 = smov 0  }
  0x1f LB: > { %5415 = sst [smem:[#allocation48_spill]] %s4080_s28  ;;  %s4248_s0 = sadd.s32 4294967295, %s4088_s30   ;;  %s4088_s30 = sphi %s4235_s30, %s5476_s30   ;;  %s4084_s29 = sphi %s4233_s29, %s5479_s29   ;;  %s4080_s28 = sphi %s4231_s28, %s5478_s28   ;;  %s4076_s27 = sphi %s4229_s27, %s5477_s27  }
  0x20   : > { %5416 = sst [smem:[#allocation49_spill]] %s4084_s29  ;;  %s4251_s19 = sadd.s32 1, %s4088_s30  }
  0x21   : > { %5417 = sst [smem:[#allocation50_spill]] %s4248_s0  ;;  %s77_s1 = ssub.s32 %s4088_s30, %s4251_s19 }
  0x22   : > { %5418 = sst [smem:[#allocation51_spill]] %s4251_s19  ;;  %s80_s20 = sadd.s32 1, %s4084_s29 }
  0x23   : > { %p78_p0 = scmp.eq.s32.totalorder %s77_s1, 0  ;;  %p87_p1 = scmp.ne.s32.totalorder %s4084_s29, %s4080_s28 }
  0x24   : > { %p88_p2 = scmp.eq.s32.totalorder %s4088_s30, 0  ;;  %p93_p3 = scmp.ne.s32.totalorder %s4080_s28, %s4076_s27 }
  0x25   : > { %s4261_s21 = scalar_select %p78_p0, %s4084_s29, %s80_s20  }
  0x26   : > { %p4263_p4 = por %p88_p2, %p87_p1  ;;  %p5370_p5 = scmp.eq.s32.totalorder %s4248_s0, 0 }
  0x27   : > { %5419 = sst [smem:[#allocation52_spill]] %s4261_s21  ;;  %p2986_p6 = scmp.ge.s32.totalorder %s4088_s30, 1 }
  0x28   : > { %p516_p7 = scmp.lt.s32.totalorder %s4088_s30, 3  ;;  %p4272_p8 = por %p5370_p5, %p93_p3 }
  0x29   : > { %s4102_s24 = smov [#allocation28]   ;;  %p3298_p12 = scmp.lt.s32.totalorder %s4088_s30, 2 }
  0x2a   : > { %s5421_s2 = scalar_select %p4272_p8, 1, 0 }
  0x2b   : > { %p4277_p10 = pnand %p2986_p6, %p516_p7  ;;  %s542_s25 = sshll.u32 %s4102_s24, 4  ;;  %s543_s25 = int_to_ptr.vmem [resolvable:$true] %s542_s25 }
  0x2c   : > { %5422 = sst [smem:[#allocation53_spill]] %s5421_s2  ;;  %s4285_s26 = sand.u32 1, %s4084_s29  }
  0x2d   : > { %s5423_s23 = scalar_select %p4277_p10, 1, 0 }
  0x2e   : > { %p3240_p11 = pneg %p4277_p10  ;;  %p4295_p0 = pnand %p3298_p12, %p4263_p4 }
  0x2f   : > { %5424 = sst [smem:[#allocation54_spill]] %s5423_s23  ;;  %s5427_s13 = sld [smem:[#allocation63_spill]] }
  0x30   : > { %p4289_p13 = pnand %p3240_p11, %p5370_p5 }
  0x31   : > { %s5426_s1 = scalar_select %p4295_p0, 1, 0 }
  0x32   : > { %s5425_s27 = scalar_select %p4289_p13, 1, 0 }
  0x33   : > { %p4307_p2 = pneg %p4289_p13 }
  0x35   : > { %s3450_s24 = scalar_lea.hbm %s5427_s13, 16 }
  0x36   : > { %p3451_p1 = scmp.ne.s32.totalorder %s5427_s13, %s3450_s24  ;;  %p3457_p6 = scmp.lt.u32.totalorder %s3450_s24, %s5427_s13 }
  0x37   : > { %s5428_s29 = scalar_select %p4307_p2, 1, 0 }
  0x38   : > { %p3453_p3 = pnand %p4307_p2, %p3451_p1 }
  0x3a   : > { %p3454_p4 = pneg %p3453_p3 }
  0x3c   : > { %p3459_p7 = pnand %p3457_p6, %p3454_p4 }
  0x3e   : > { %3462 = shalt.err (!%p3459_p7)
}
  0x3f   : > { %s3463_s21 = scalar_lea.vmem %s543_s25, 16  ;;  %s3470_s18 = scalar_lea.vmem %s543_s25, 32 }
  0x40   : > { %p3464_p11 = scmp.ne.s32.totalorder %s543_s25, %s3463_s21  ;;  %p3471_p5 = scmp.lt.s32.totalorder %s543_s25, %s543_s25 }
  0x41   : > { %p3472_p8 = scmp.lt.s32.totalorder %s3470_s18, %s3463_s21 }
  0x42   : > { %p3466_p12 = pnand %p3464_p11, %p4307_p2 }
  0x43   : > { %p3473_p10 = por %p3472_p8, %p3471_p5 }
  0x44   : > { %p3467_p9 = pneg %p3466_p12 }
  0x46   : > { %p3474_p0 = pnand %p3473_p10, %p3467_p9 }
  0x48   : > { %3477 = shalt.err (!%p3474_p0)
}
  0x49   : > { %3246 = dma.hbm_to_vmem [thread:$0]  (!%p4289_p13), %s5427_s13, 16, %s543_s25, [#allocation29]  }
  0x4a   : > { %s4103_s17 = smov [#allocation31]   ;;  %s4324_s22 = sand.u32 1, %s4088_s30  }
  0x4b   : > { %s563_s24 = sshll.u32 %s4103_s17, 4  ;;  %s5429_s15 = sld [smem:[#allocation64_spill]]  ;;  %s564_s24 = int_to_ptr.vmem [resolvable:$true] %s563_s24 }
  0x51   : > { %s3478_s21 = scalar_lea.hbm %s5429_s15, 512 }
  0x52   : > { %p3479_p5 = scmp.ne.s32.totalorder %s5429_s15, %s3478_s21  ;;  %p3485_p10 = scmp.lt.u32.totalorder %s3478_s21, %s5429_s15 }
  0x54   : > { %p3481_p8 = pnand %p3479_p5, %p4307_p2 }
  0x56   : > { %p3482_p9 = pneg %p3481_p8 }
  0x58   : > { %p3487_p0 = pnand %p3485_p10, %p3482_p9 }
  0x5a   : > { %3490 = shalt.err (!%p3487_p0)
}
  0x5b   : > { %s3491_s25 = scalar_lea.vmem %s564_s24, 512  ;;  %p3499_p6 = scmp.lt.s32.totalorder %s564_s24, %s564_s24 }
  0x5c   : > { %p3492_p1 = scmp.ne.s32.totalorder %s564_s24, %s3491_s25  ;;  %p3500_p7 = scmp.lt.s32.totalorder %s3491_s25, %s3491_s25 }
  0x5e   : > { %p3494_p3 = pnand %p3492_p1, %p4307_p2  ;;  %p3501_p11 = por %p3500_p7, %p3499_p6 }
  0x60   : > { %p3495_p4 = pneg %p3494_p3 }
  0x62   : > { %p3502_p12 = pnand %p3501_p11, %p3495_p4 }
  0x64   : > { %3505 = shalt.err (!%p3502_p12)
}
  0x65   : > { %s5383_s28 = smov 128   ;;  %s5388_s0 = smov 8  }
  0x66   : > { %3252 = dma.hbm_to_vmem [thread:$0]  (!%p4289_p13), %s5429_s15, 512, %s564_s24, [#allocation32], %s5383_s28, %s5383_s28, %s5388_s0  }
  0x67   : > { %s4348_s21 = sshll.u32 %s4088_s30, 4  ;;  %s591_s18 = scalar_lea.vmem [#allocation10], %s4285_s26 }
  0x68   : > { %s598_s19 = sshll.u32 %s591_s18, 4  ;;  %s5430_s13 = sld [smem:[#allocation56_spill]]  ;;  %s4357_s19 = int_to_ptr.vmem [resolvable:$true] %s598_s19 }
  0x69   : > { %s5390_s12 = scalar_lea.sflag [#allocation11], %s4324_s22  ;;  %p5431_p8 = scmp.ne.s32.totalorder %s5426_s1, 0 }
  0x6b   : > { %p4364_p9 = pneg %p5431_p8 }
  0x6d   : > { %s5432_s24 = scalar_select %p4364_p9, 1, 0 }
  0x6e   : > { %s4355_s23 = scalar_lea.hbm %s5430_s13, %s4348_s21  ;;  %s3511_s18 = scalar_lea.hbm %s5430_s13, 32 }
  0x6f   : > { %s3506_s10 = scalar_lea.hbm %s4355_s23, 16  ;;  %p3512_p1 = scmp.lt.u32.totalorder %s4355_s23, %s5430_s13 }
  0x70   : > { %p3507_p5 = scmp.ne.s32.totalorder %s4355_s23, %s3506_s10  ;;  %p3513_p3 = scmp.lt.u32.totalorder %s3511_s18, %s3506_s10 }
  0x71   : > { %p3515_p6 = scmp.lt.u32.totalorder %s3506_s10, %s4355_s23 }
  0x72   : > { %p3509_p10 = pnand %p4364_p9, %p3507_p5  ;;  %p3514_p4 = por %p3513_p3, %p3512_p1 }
  0x74   : > { %p3510_p0 = pneg %p3509_p10  ;;  %p3516_p7 = por %p3515_p6, %p3514_p4 }
  0x76   : > { %p3517_p11 = pnand %p3516_p7, %p3510_p0 }
  0x78   : > { %3520 = shalt.err (!%p3517_p11)
}
  0x79   : > { %s3521_s28 = scalar_lea.vmem %s4357_s19, 16  ;;  %s4106_s2 = smov [#allocation10]  }
  0x7a   : > { %p3522_p12 = scmp.ne.s32.totalorder %s4357_s19, %s3521_s28  ;;  %s3526_s17 = sshll.u32 %s4106_s2, 4  ;;  %s3527_s17 = int_to_ptr.vmem [resolvable:$false] %s3526_s17 }
  0x7b   : > { %s3528_s20 = scalar_lea.vmem %s3527_s17, 32  ;;  %p3529_p13 = scmp.lt.s32.totalorder %s4357_s19, %s3527_s17 }
  0x7c   : > { %p3524_p5 = pnand %p3522_p12, %p4364_p9  ;;  %p3530_p2 = scmp.lt.s32.totalorder %s3528_s20, %s3521_s28 }
  0x7e   : > { %p3525_p10 = pneg %p3524_p5  ;;  %p3531_p1 = por %p3530_p2, %p3529_p13 }
  0x80   : > { %p3532_p3 = pnand %p3531_p1, %p3525_p10 }
  0x82   : > { %3535 = shalt.err (!%p3532_p3)
}
  0x83   : > { %3259 = dma.hbm_to_vmem [thread:$0]  (!%p5431_p8), %s4355_s23, 16, %s4357_s19, %s5390_s12  }
  0x84   : > { %s2995_s10 = sshll.u32 %s4285_s26, 4  ;;  %s3095_s18 = sshll.u32 %s4088_s30, 8 }
  0x85   : > { %s5433_s3 = sld [smem:[#allocation58_spill]]  ;;  %s626_s17 = scalar_lea.vmem [#allocation13], %s2995_s10 }
  0x86   : > { %s633_s20 = sshll.u32 %s626_s17, 4  ;;  %s5393_s0 = scalar_lea.sflag [#allocation14], %s4324_s22  ;;  %s4396_s20 = int_to_ptr.vmem [resolvable:$true] %s633_s20 }
  0x8b   : > { %s4394_s28 = scalar_lea.hbm %s5433_s3, %s3095_s18  ;;  %s3541_s25 = scalar_lea.hbm %s5433_s3, 512 }
  0x8c   : > { %s3536_s13 = scalar_lea.hbm %s4394_s28, 256  ;;  %p3542_p4 = scmp.lt.u32.totalorder %s4394_s28, %s5433_s3 }
  0x8d   : > { %p3537_p13 = scmp.ne.s32.totalorder %s4394_s28, %s3536_s13  ;;  %p3543_p6 = scmp.lt.u32.totalorder %s3541_s25, %s3536_s13 }
  0x8e   : > { %p3545_p11 = scmp.lt.u32.totalorder %s3536_s13, %s4394_s28 }
  0x8f   : > { %p3539_p2 = pnand %p3537_p13, %p4364_p9  ;;  %p3544_p7 = por %p3543_p6, %p3542_p4 }
  0x91   : > { %p3540_p0 = pneg %p3539_p2  ;;  %p3546_p12 = por %p3545_p11, %p3544_p7 }
  0x93   : > { %p3547_p5 = pnand %p3546_p12, %p3540_p0 }
  0x95   : > { %3550 = shalt.err (!%p3547_p5)
}
  0x96   : > { %s3551_s10 = scalar_lea.vmem %s4396_s20, 256  ;;  %s4107_s17 = smov [#allocation13]  }
  0x97   : > { %p3552_p10 = scmp.ne.s32.totalorder %s4396_s20, %s3551_s10  ;;  %s3556_s23 = sshll.u32 %s4107_s17, 4  ;;  %s3557_s23 = int_to_ptr.vmem [resolvable:$false] %s3556_s23 }
  0x98   : > { %s3558_s19 = scalar_lea.vmem %s3557_s23, 512  ;;  %p3559_p13 = scmp.lt.s32.totalorder %s4396_s20, %s3557_s23 }
  0x99   : > { %p3554_p1 = pnand %p3552_p10, %p4364_p9  ;;  %p3560_p2 = scmp.lt.s32.totalorder %s3558_s19, %s3551_s10 }
  0x9b   : > { %p3555_p3 = pneg %p3554_p1  ;;  %p3561_p4 = por %p3560_p2, %p3559_p13 }
  0x9d   : > { %p3562_p6 = pnand %p3561_p4, %p3555_p3 }
  0x9f   : > { %3565 = shalt.err (!%p3562_p6)
}
  0xa0   : > { %s4108_s13 = smov 64   ;;  %s4109_s25 = smov 4  }
  0xa1   : > { %3265 = dma.hbm_to_vmem [thread:$0]  (!%p5431_p8), %s4394_s28, 256, %s4396_s20, %s5393_s0, %s4108_s13, %s4108_s13, %s4109_s25  }
  0xa2   : > { %s2999_s18 = sshll.u32 %s4285_s26, 2  ;;  %s3000_s2 = sshll.u32 %s4088_s30, 6 }
  0xa3   : > { %s5434_s5 = sld [smem:[#allocation59_spill]]  ;;  %s664_s19 = scalar_lea.vmem [#allocation16], %s2999_s18 }
  0xa4   : > { %s671_s12 = sshll.u32 %s664_s19, 4  ;;  %s5394_s3 = sshll.u32 %s4285_s26, 5  ;;  %s4432_s12 = int_to_ptr.vmem [resolvable:$true] %s671_s12 }
  0xa5   : > { %s5392_s15 = scalar_lea.sflag [#allocation17], %s4324_s22 }
  0xa9   : > { %s4430_s23 = scalar_lea.hbm %s5434_s5, %s3000_s2  ;;  %s3571_s2 = scalar_lea.hbm %s5434_s5, 128 }
  0xaa   : > { %s3566_s8 = scalar_lea.hbm %s4430_s23, 64  ;;  %p3572_p12 = scmp.lt.u32.totalorder %s4430_s23, %s5434_s5 }
  0xab   : > { %p3567_p0 = scmp.ne.s32.totalorder %s4430_s23, %s3566_s8  ;;  %p3573_p5 = scmp.lt.u32.totalorder %s3571_s2, %s3566_s8 }
  0xac   : > { %p3575_p1 = scmp.lt.u32.totalorder %s3566_s8, %s4430_s23 }
  0xad   : > { %p3569_p7 = pnand %p3567_p0, %p4364_p9  ;;  %p3574_p10 = por %p3573_p5, %p3572_p12 }
  0xaf   : > { %p3570_p11 = pneg %p3569_p7  ;;  %p3576_p3 = por %p3575_p1, %p3574_p10 }
  0xb1   : > { %p3577_p13 = pnand %p3576_p3, %p3570_p11 }
  0xb3   : > { %3580 = shalt.err (!%p3577_p13)
}
  0xb4   : > { %s3581_s18 = scalar_lea.vmem %s4432_s12, 64  ;;  %s4110_s19 = smov [#allocation16]  }
  0xb5   : > { %p3582_p2 = scmp.ne.s32.totalorder %s4432_s12, %s3581_s18  ;;  %s3586_s28 = sshll.u32 %s4110_s19, 4  ;;  %s3587_s28 = int_to_ptr.vmem [resolvable:$false] %s3586_s28 }
  0xb6   : > { %s3588_s20 = scalar_lea.vmem %s3587_s28, 128  ;;  %p3589_p0 = scmp.lt.s32.totalorder %s4432_s12, %s3587_s28 }
  0xb7   : > { %p3584_p4 = pnand %p3582_p2, %p4364_p9  ;;  %p3590_p7 = scmp.lt.s32.totalorder %s3588_s20, %s3581_s18 }
  0xb9   : > { %p3585_p6 = pneg %p3584_p4  ;;  %p3591_p12 = por %p3590_p7, %p3589_p0 }
  0xbb   : > { %p3592_p5 = pnand %p3591_p12, %p3585_p6 }
  0xbd   : > { %3595 = shalt.err (!%p3592_p5)
}
  0xbe   : > { %3271 = dma.hbm_to_vmem [thread:$0]  (!%p5431_p8), %s4430_s23, 64, %s4432_s12, %s5392_s15  }
  0xbf   : > { %s3096_s8 = sshll.u32 %s4088_s30, 9  ;;  %s699_s18 = scalar_lea.vmem [#allocation19], %s5394_s3 }
  0xc0   : > { %s4465_s17 = scalar_lea.hbm %s5350_s7, %s3096_s8  ;;  %s706_s19 = sshll.u32 %s699_s18, 4  ;;  %s4469_s19 = int_to_ptr.vmem [resolvable:$true] %s706_s19 }
  0xc1   : > { %s5395_s28 = scalar_lea.sflag [#allocation20], %s4324_s22  ;;  %s3596_s20 = scalar_lea.hbm %s4465_s17, 512 }
  0xc2   : > { %p3597_p11 = scmp.ne.s32.totalorder %s4465_s17, %s3596_s20  ;;  %s3601_s2 = scalar_lea.hbm %s5350_s7, 1024 }
  0xc3   : > { %p3602_p3 = scmp.lt.u32.totalorder %s4465_s17, %s5350_s7  ;;  %p3603_p13 = scmp.lt.u32.totalorder %s3601_s2, %s3596_s20 }
  0xc4   : > { %p3599_p10 = pnand %p3597_p11, %p4364_p9  ;;  %p3605_p4 = scmp.lt.u32.totalorder %s3596_s20, %s4465_s17 }
  0xc5   : > { %p3604_p2 = por %p3603_p13, %p3602_p3 }
  0xc6   : > { %p3600_p1 = pneg %p3599_p10 }
  0xc7   : > { %p3606_p6 = por %p3605_p4, %p3604_p2 }
  0xc9   : > { %p3607_p0 = pnand %p3606_p6, %p3600_p1 }
  0xcb   : > { %3610 = shalt.err (!%p3607_p0)
}
  0xcc   : > { %s3611_s18 = scalar_lea.vmem %s4469_s19, 512  ;;  %s4111_s12 = smov [#allocation19]  }
  0xcd   : > { %p3612_p7 = scmp.ne.s32.totalorder %s4469_s19, %s3611_s18  ;;  %s3616_s23 = sshll.u32 %s4111_s12, 4  ;;  %s3617_s23 = int_to_ptr.vmem [resolvable:$false] %s3616_s23 }
  0xce   : > { %s3618_s15 = scalar_lea.vmem %s3617_s23, 1024  ;;  %p3619_p11 = scmp.lt.s32.totalorder %s4469_s19, %s3617_s23 }
  0xcf   : > { %p3614_p12 = pnand %p3612_p7, %p4364_p9  ;;  %p3620_p10 = scmp.lt.s32.totalorder %s3618_s15, %s3611_s18 }
  0xd1   : > { %p3615_p5 = pneg %p3614_p12  ;;  %p3621_p3 = por %p3620_p10, %p3619_p11 }
  0xd3   : > { %p3622_p13 = pnand %p3621_p3, %p3615_p5 }
  0xd5   : > { %3625 = shalt.err (!%p3622_p13)
}
  0xd6   : > { %3277 = dma.hbm_to_vmem [thread:$0]  (!%p5431_p8), %s4465_s17, 512, %s4469_s19, %s5395_s28, %s4108_s13, %s4108_s13, %s4109_s25  }
  0xd7   : > { %s3006_s20 = sshll.u32 %s4285_s26, 3  ;;  %s3007_s2 = sshll.u32 %s4088_s30, 7 }
  0xd8   : > { %s4503_s12 = scalar_lea.hbm %s5352_s9, %s3007_s2  ;;  %s737_s23 = scalar_lea.vmem [#allocation22], %s3006_s20 }
  0xd9   : > { %s744_s15 = sshll.u32 %s737_s23, 4  ;;  %s5397_s0 = scalar_lea.sflag [#allocation23], %s4324_s22  ;;  %s745_s15 = int_to_ptr.vmem [resolvable:$true] %s744_s15 }
  0xda   : > { %s3626_s3 = scalar_lea.hbm %s4503_s12, 128  ;;  %s3631_s28 = scalar_lea.hbm %s5352_s9, 256 }
  0xdb   : > { %p3627_p1 = scmp.ne.s32.totalorder %s4503_s12, %s3626_s3  ;;  %p3632_p6 = scmp.lt.u32.totalorder %s4503_s12, %s5352_s9 }
  0xdc   : > { %p3633_p0 = scmp.lt.u32.totalorder %s3631_s28, %s3626_s3  ;;  %p3635_p12 = scmp.lt.u32.totalorder %s3626_s3, %s4503_s12 }
  0xdd   : > { %p3629_p2 = pnand %p3627_p1, %p4364_p9 }
  0xde   : > { %p3634_p7 = por %p3633_p0, %p3632_p6 }
  0xdf   : > { %p3630_p4 = pneg %p3629_p2 }
  0xe0   : > { %p3636_p5 = por %p3635_p12, %p3634_p7 }
  0xe2   : > { %p3637_p11 = pnand %p3636_p5, %p3630_p4 }
  0xe4   : > { %3640 = shalt.err (!%p3637_p11)
}
  0xe5   : > { %s3641_s20 = scalar_lea.vmem %s745_s15, 128  ;;  %s4112_s18 = smov [#allocation22]  }
  0xe6   : > { %p3642_p10 = scmp.ne.s32.totalorder %s745_s15, %s3641_s20  ;;  %s3646_s23 = sshll.u32 %s4112_s18, 4  ;;  %s3647_s23 = int_to_ptr.vmem [resolvable:$false] %s3646_s23 }
  0xe7   : > { %s3648_s17 = scalar_lea.vmem %s3647_s23, 256  ;;  %p3649_p1 = scmp.lt.s32.totalorder %s745_s15, %s3647_s23 }
  0xe8   : > { %p3644_p3 = pnand %p3642_p10, %p4364_p9  ;;  %p3650_p2 = scmp.lt.s32.totalorder %s3648_s17, %s3641_s20 }
  0xea   : > { %p3645_p13 = pneg %p3644_p3  ;;  %p3651_p8 = por %p3650_p2, %p3649_p1 }
  0xec   : > { %p3652_p0 = pnand %p3651_p8, %p3645_p13 }
  0xee   : > { %3655 = shalt.err (!%p3652_p0)
}
  0xef   : > { %p5435_p6 = scmp.ne.s32.totalorder %s5426_s1, 0  ;;  %s4530_s19 = scalar_lea.hbm %s5354_s11, %s3096_s8 }
  0xf0   : > { %s5436_s10 = sshll.u32 %s4285_s26, 5  ;;  %s5401_s18 = scalar_lea.sflag [#allocation26], %s4324_s22 }
  0xf1   : > { %3283 = dma.hbm_to_vmem [thread:$0]  (!%p5435_p6), %s4503_s12, 128, %s745_s15, %s5397_s0  }
  0xf2   : > { %s772_s2 = scalar_lea.vmem [#allocation25], %s5436_s10  ;;  %s3656_s23 = scalar_lea.hbm %s4530_s19, 512 }
  0xf3   : > { %s779_s20 = sshll.u32 %s772_s2, 4  ;;  %p3657_p8 = scmp.ne.s32.totalorder %s4530_s19, %s3656_s23  ;;  %s4534_s20 = int_to_ptr.vmem [resolvable:$true] %s779_s20 }
  0xf4   : > { %s3661_s8 = scalar_lea.hbm %s5354_s11, 1024  ;;  %p3662_p12 = scmp.lt.u32.totalorder %s4530_s19, %s5354_s11 }
  0xf5   : > { %p3659_p4 = pnand %p3657_p8, %p4364_p9  ;;  %p3663_p5 = scmp.lt.u32.totalorder %s3661_s8, %s3656_s23 }
  0xf6   : > { %p3665_p10 = scmp.lt.u32.totalorder %s3656_s23, %s4530_s19 }
  0xf7   : > { %p3660_p7 = pneg %p3659_p4  ;;  %p3664_p11 = por %p3663_p5, %p3662_p12 }
  0xf9   : > { %p3666_p3 = por %p3665_p10, %p3664_p11 }
  0xfb   : > { %p3667_p13 = pnand %p3666_p3, %p3660_p7 }
  0xfd   : > { %3670 = shalt.err (!%p3667_p13)
}
  0xfe   : > { %s3671_s3 = scalar_lea.vmem %s4534_s20, 512  ;;  %s4113_s28 = smov [#allocation25]  }
  0xff   : > { %p3672_p1 = scmp.ne.s32.totalorder %s4534_s20, %s3671_s3  ;;  %s3676_s10 = sshll.u32 %s4113_s28, 4  ;;  %s3677_s10 = int_to_ptr.vmem [resolvable:$false] %s3676_s10 }
 0x100   : > { %s3678_s2 = scalar_lea.vmem %s3677_s10, 1024  ;;  %p3679_p8 = scmp.lt.s32.totalorder %s4534_s20, %s3677_s10 }
 0x101   : > { %p3674_p2 = pnand %p3672_p1, %p4364_p9  ;;  %p3680_p4 = scmp.lt.s32.totalorder %s3678_s2, %s3671_s3 }
 0x103   : > { %p3675_p0 = pneg %p3674_p2  ;;  %p3681_p12 = por %p3680_p4, %p3679_p8 }
 0x105   : > { %p3682_p5 = pnand %p3681_p12, %p3675_p0 }
 0x107   : > { %3685 = shalt.err (!%p3682_p5)
}
 0x108   : > { %3289 = dma.hbm_to_vmem [thread:$0]  (!%p5435_p6), %s4530_s19, 512, %s4534_s20, %s5401_s18, %s4108_s13, %s4108_s13, %s4109_s25  }
 0x109   : > { %s4114_s23 = smov [#allocation7]   ;;  %s4115_s12 = smov [#allocation30]  }
 0x10a   : > { %s528_s30 = sshll.u32 %s4114_s23, 4  ;;  %s553_s8 = sshll.u32 %s4115_s12, 4  ;;  %s529_s30 = int_to_ptr.vmem [resolvable:$true] %s528_s30  ;;  %s554_s8 = int_to_ptr.vmem [resolvable:$true] %s553_s8 }
 0x10b   : > { %s5437_s3 = sld [smem:[#allocation55_spill]]  ;;  %p5438_p11 = scmp.ne.s32.totalorder %s5428_s29, 0 }
 0x111   : > { %s3686_s28 = scalar_lea.hbm %s5437_s3, 256 }
 0x112   : > { %p3687_p7 = scmp.ne.s32.totalorder %s5437_s3, %s3686_s28  ;;  %p3693_p13 = scmp.lt.u32.totalorder %s3686_s28, %s5437_s3 }
 0x114   : > { %p3689_p10 = pnand %p3687_p7, %p5438_p11 }
 0x116   : > { %p3690_p3 = pneg %p3689_p10 }
 0x118   : > { %p3695_p1 = pnand %p3693_p13, %p3690_p3 }
 0x11a   : > { %3698 = shalt.err (!%p3695_p1)
}
 0x11b   : > { %s3699_s13 = scalar_lea.vmem %s529_s30, 256  ;;  %p3707_p4 = scmp.lt.s32.totalorder %s529_s30, %s529_s30 }
 0x11c   : > { %p3700_p2 = scmp.ne.s32.totalorder %s529_s30, %s3699_s13  ;;  %p3708_p12 = scmp.lt.s32.totalorder %s3699_s13, %s3699_s13 }
 0x11e   : > { %p3702_p0 = pnand %p3700_p2, %p5438_p11  ;;  %p3709_p5 = por %p3708_p12, %p3707_p4 }
 0x120   : > { %p3703_p8 = pneg %p3702_p0 }
 0x122   : > { %p3710_p6 = pnand %p3709_p5, %p3703_p8 }
 0x124   : > { %3713 = shalt.err (!%p3710_p6)
}
 0x125   : > { %p5439_p7 = scmp.ne.s32.totalorder %s5425_s27, 0  ;;  %s5440_s25 = smov 8  }
 0x126   : > { %s5441_s19 = smov 128   ;;  %s3714_s12 = scalar_lea.hbm %s5357_s14, 16 }
 0x127   : > { %3243 = dma.hbm_to_vmem [thread:$0]  (!%p5439_p7), %s5437_s3, 256, %s529_s30, [#allocation8], %s5441_s19, %s5441_s19, %s5440_s25  }
 0x128   : > { %p3715_p10 = scmp.ne.s32.totalorder %s5357_s14, %s3714_s12  ;;  %p3721_p13 = scmp.lt.u32.totalorder %s3714_s12, %s5357_s14 }
 0x12a   : > { %p3717_p6 = pnand %p3715_p10, %p5438_p11 }
 0x12c   : > { %p3718_p3 = pneg %p3717_p6 }
 0x12e   : > { %p3723_p1 = pnand %p3721_p13, %p3718_p3 }
 0x130   : > { %3726 = shalt.err (!%p3723_p1)
}
 0x131   : > { %s3727_s2 = scalar_lea.vmem %s554_s8, 16  ;;  %s3734_s30 = scalar_lea.vmem %s554_s8, 32 }
 0x132   : > { %p3728_p2 = scmp.ne.s32.totalorder %s554_s8, %s3727_s2  ;;  %p3735_p4 = scmp.lt.s32.totalorder %s554_s8, %s554_s8 }
 0x133   : > { %p3736_p12 = scmp.lt.s32.totalorder %s3734_s30, %s3727_s2 }
 0x134   : > { %p3730_p0 = pnand %p3728_p2, %p5438_p11 }
 0x135   : > { %p3737_p5 = por %p3736_p12, %p3735_p4 }
 0x136   : > { %p3731_p8 = pneg %p3730_p0 }
 0x138   : > { %p3738_p9 = pnand %p3737_p5, %p3731_p8 }
 0x13a   : > { %3741 = shalt.err (!%p3738_p9)
}
 0x13b   : > { %3249 = dma.hbm_to_vmem [thread:$0]  (!%p5439_p7), %s5357_s14, 16, %s554_s8, [#allocation29]  }
 0x13c   : > { %s4116_s19 = smov [#allocation33]   ;;  %s5442_s23 = sld [smem:[#allocation57_spill]] }
 0x13d   : > { %s577_s5 = sshll.u32 %s4116_s19, 4  ;;  %s3742_s28 = scalar_lea.hbm %s5359_s16, 16  ;;  %s578_s5 = int_to_ptr.vmem [resolvable:$true] %s577_s5 }
 0x13e   : > { %p3743_p9 = scmp.ne.s32.totalorder %s5359_s16, %s3742_s28  ;;  %p3749_p3 = scmp.lt.u32.totalorder %s3742_s28, %s5359_s16 }
 0x140   : > { %p3745_p10 = pnand %p3743_p9, %p5438_p11 }
 0x142   : > { %s4606_s12 = scalar_lea.hbm %s5442_s23, %s4348_s21  ;;  %p3746_p6 = pneg %p3745_p10 }
 0x144   : > { %p3751_p13 = pnand %p3749_p3, %p3746_p6 }
 0x146   : > { %3754 = shalt.err (!%p3751_p13)
}
 0x147   : > { %s3755_s13 = scalar_lea.vmem %s578_s5, 16  ;;  %s3762_s25 = scalar_lea.vmem %s578_s5, 32 }
 0x148   : > { %p3756_p1 = scmp.ne.s32.totalorder %s578_s5, %s3755_s13  ;;  %p3763_p8 = scmp.lt.s32.totalorder %s578_s5, %s578_s5 }
 0x149   : > { %p3764_p4 = scmp.lt.s32.totalorder %s3762_s25, %s3755_s13 }
 0x14a   : > { %p3758_p2 = pnand %p3756_p1, %p5438_p11 }
 0x14b   : > { %p3765_p12 = por %p3764_p4, %p3763_p8 }
 0x14c   : > { %p3759_p0 = pneg %p3758_p2 }
 0x14e   : > { %p3766_p5 = pnand %p3765_p12, %p3759_p0 }
 0x150   : > { %3769 = shalt.err (!%p3766_p5)
}
 0x151   : > { %3255 = dma.hbm_to_vmem [thread:$0]  (!%p5439_p7), %s5359_s16, 16, %s578_s5, [#allocation32]  }
 0x152   : > { %s608_s29 = scalar_lea.vmem [#allocation12], %s4285_s26  ;;  %s4631_s28 = scalar_lea.hbm %s5347_s4, %s4348_s21 }
 0x153   : > { %s615_s20 = sshll.u32 %s608_s29, 4  ;;  %s3770_s27 = scalar_lea.hbm %s4606_s12, 16  ;;  %s616_s20 = int_to_ptr.vmem [resolvable:$true] %s615_s20 }
 0x154   : > { %p3771_p11 = scmp.ne.s32.totalorder %s4606_s12, %s3770_s27  ;;  %p5443_p9 = scmp.ne.s32.totalorder %s5432_s24, 0 }
 0x155   : > { %s3775_s8 = scalar_lea.hbm %s5442_s23, 32  ;;  %p3776_p7 = scmp.lt.u32.totalorder %s4606_s12, %s5442_s23 }
 0x156   : > { %p3773_p10 = pnand %p3771_p11, %p5443_p9  ;;  %p3777_p3 = scmp.lt.u32.totalorder %s3775_s8, %s3770_s27 }
 0x157   : > { %p3779_p1 = scmp.lt.u32.totalorder %s3770_s27, %s4606_s12 }
 0x158   : > { %p3774_p6 = pneg %p3773_p10  ;;  %p3778_p13 = por %p3777_p3, %p3776_p7 }
 0x15a   : > { %p3780_p2 = por %p3779_p1, %p3778_p13 }
 0x15c   : > { %p3781_p0 = pnand %p3780_p2, %p3774_p6 }
 0x15e   : > { %3784 = shalt.err (!%p3781_p0)
}
 0x15f   : > { %s3785_s5 = scalar_lea.vmem %s616_s20, 16  ;;  %s4117_s25 = smov [#allocation12]  }
 0x160   : > { %p3786_p8 = scmp.ne.s32.totalorder %s616_s20, %s3785_s5  ;;  %s3790_s19 = sshll.u32 %s4117_s25, 4  ;;  %s3791_s19 = int_to_ptr.vmem [resolvable:$false] %s3790_s19 }
 0x161   : > { %s3792_s0 = scalar_lea.vmem %s3791_s19, 32  ;;  %p3793_p5 = scmp.lt.s32.totalorder %s616_s20, %s3791_s19 }
 0x162   : > { %p3788_p4 = pnand %p3786_p8, %p5443_p9  ;;  %p3794_p11 = scmp.lt.s32.totalorder %s3792_s0, %s3785_s5 }
 0x164   : > { %p3789_p12 = pneg %p3788_p4  ;;  %p3795_p10 = por %p3794_p11, %p3793_p5 }
 0x166   : > { %p3796_p3 = pnand %p3795_p10, %p3789_p12 }
 0x168   : > { %3799 = shalt.err (!%p3796_p3)
}
 0x169   : > { %p5444_p7 = scmp.ne.s32.totalorder %s5426_s1, 0  ;;  %s5445_s29 = scalar_lea.sflag [#allocation11], %s4324_s22 }
 0x16a   : > { %s646_s15 = scalar_lea.vmem [#allocation15], %s4285_s26  ;;  %s4657_s2 = scalar_lea.hbm %s5349_s6, %s4348_s21 }
 0x16b   : > { %3262 = dma.hbm_to_vmem [thread:$0]  (!%p5444_p7), %s4606_s12, 16, %s616_s20, %s5445_s29  }
 0x16c   : > { %s653_s17 = sshll.u32 %s646_s15, 4  ;;  %s3800_s8 = scalar_lea.hbm %s4631_s28, 16  ;;  %s654_s17 = int_to_ptr.vmem [resolvable:$true] %s653_s17 }
 0x16d   : > { %p3801_p6 = scmp.ne.s32.totalorder %s4631_s28, %s3800_s8  ;;  %s3805_s5 = scalar_lea.hbm %s5347_s4, 32 }
 0x16e   : > { %p3806_p2 = scmp.lt.u32.totalorder %s4631_s28, %s5347_s4  ;;  %p3807_p0 = scmp.lt.u32.totalorder %s3805_s5, %s3800_s8 }
 0x16f   : > { %p3803_p13 = pnand %p3801_p6, %p5443_p9  ;;  %p3809_p4 = scmp.lt.u32.totalorder %s3800_s8, %s4631_s28 }
 0x170   : > { %p3808_p8 = por %p3807_p0, %p3806_p2 }
 0x171   : > { %p3804_p1 = pneg %p3803_p13 }
 0x172   : > { %p3810_p12 = por %p3809_p4, %p3808_p8 }
 0x174   : > { %p3811_p5 = pnand %p3810_p12, %p3804_p1 }
 0x176   : > { %3814 = shalt.err (!%p3811_p5)
}
 0x177   : > { %s3815_s12 = scalar_lea.vmem %s654_s17, 16  ;;  %s4118_s20 = smov [#allocation15]  }
 0x178   : > { %p3816_p11 = scmp.ne.s32.totalorder %s654_s17, %s3815_s12  ;;  %s3820_s0 = sshll.u32 %s4118_s20, 4  ;;  %s3821_s0 = int_to_ptr.vmem [resolvable:$false] %s3820_s0 }
 0x179   : > { %s3822_s29 = scalar_lea.vmem %s3821_s0, 32  ;;  %p3823_p6 = scmp.lt.s32.totalorder %s654_s17, %s3821_s0 }
 0x17a   : > { %p3818_p10 = pnand %p3816_p11, %p5443_p9  ;;  %p3824_p13 = scmp.lt.s32.totalorder %s3822_s29, %s3815_s12 }
 0x17c   : > { %p3819_p3 = pneg %p3818_p10  ;;  %p3825_p7 = por %p3824_p13, %p3823_p6 }
 0x17e   : > { %p3826_p0 = pnand %p3825_p7, %p3819_p3 }
 0x180   : > { %3829 = shalt.err (!%p3826_p0)
}
 0x181   : > { %p5446_p2 = scmp.ne.s32.totalorder %s5426_s1, 0  ;;  %s5447_s15 = scalar_lea.sflag [#allocation14], %s4324_s22 }
 0x182   : > { %s681_s27 = scalar_lea.vmem [#allocation18], %s4285_s26  ;;  %s5448_s13 = sld [smem:[#allocation60_spill]] }
 0x183   : > { %3268 = dma.hbm_to_vmem [thread:$0]  (!%p5446_p2), %s4631_s28, 16, %s654_s17, %s5447_s15  }
 0x184   : > { %s688_s10 = sshll.u32 %s681_s27, 4  ;;  %s3830_s25 = scalar_lea.hbm %s4657_s2, 16  ;;  %s689_s10 = int_to_ptr.vmem [resolvable:$true] %s688_s10 }
 0x185   : > { %p3831_p7 = scmp.ne.s32.totalorder %s4657_s2, %s3830_s25  ;;  %s3835_s20 = scalar_lea.hbm %s5349_s6, 32 }
 0x186   : > { %p3836_p4 = scmp.lt.u32.totalorder %s4657_s2, %s5349_s6  ;;  %p3837_p12 = scmp.lt.u32.totalorder %s3835_s20, %s3830_s25 }
 0x187   : > { %p3833_p1 = pnand %p3831_p7, %p5443_p9  ;;  %p3839_p11 = scmp.lt.u32.totalorder %s3830_s25, %s4657_s2 }
 0x188   : > { %s4683_s5 = scalar_lea.hbm %s5448_s13, %s4348_s21  ;;  %p3838_p5 = por %p3837_p12, %p3836_p4 }
 0x189   : > { %p3834_p8 = pneg %p3833_p1 }
 0x18a   : > { %p3840_p10 = por %p3839_p11, %p3838_p5 }
 0x18c   : > { %p3841_p3 = pnand %p3840_p10, %p3834_p8 }
 0x18e   : > { %3844 = shalt.err (!%p3841_p3)
}
 0x18f   : > { %s3845_s28 = scalar_lea.vmem %s689_s10, 16  ;;  %s4119_s17 = smov [#allocation18]  }
 0x190   : > { %p3846_p6 = scmp.ne.s32.totalorder %s689_s10, %s3845_s28  ;;  %s3850_s15 = sshll.u32 %s4119_s17, 4  ;;  %s3851_s15 = int_to_ptr.vmem [resolvable:$false] %s3850_s15 }
 0x191   : > { %s3852_s27 = scalar_lea.vmem %s3851_s15, 32  ;;  %p3853_p7 = scmp.lt.s32.totalorder %s689_s10, %s3851_s15 }
 0x192   : > { %p3848_p13 = pnand %p3846_p6, %p5443_p9  ;;  %p3854_p1 = scmp.lt.s32.totalorder %s3852_s27, %s3845_s28 }
 0x194   : > { %p3849_p0 = pneg %p3848_p13  ;;  %p3855_p2 = por %p3854_p1, %p3853_p7 }
 0x196   : > { %p3856_p4 = pnand %p3855_p2, %p3849_p0 }
 0x198   : > { %3859 = shalt.err (!%p3856_p4)
}
 0x199   : > { %p5449_p12 = scmp.ne.s32.totalorder %s5426_s1, 0  ;;  %s5450_s8 = scalar_lea.sflag [#allocation17], %s4324_s22 }
 0x19a   : > { %s719_s30 = scalar_lea.vmem [#allocation21], %s4285_s26  ;;  %s5451_s20 = sld [smem:[#allocation61_spill]] }
 0x19b   : > { %3274 = dma.hbm_to_vmem [thread:$0]  (!%p5449_p12), %s4657_s2, 16, %s689_s10, %s5450_s8  }
 0x19c   : > { %s726_s25 = sshll.u32 %s719_s30, 4  ;;  %s3860_s29 = scalar_lea.hbm %s4683_s5, 16  ;;  %s727_s25 = int_to_ptr.vmem [resolvable:$true] %s726_s25 }
 0x19d   : > { %p3861_p2 = scmp.ne.s32.totalorder %s4683_s5, %s3860_s29  ;;  %s3865_s15 = scalar_lea.hbm %s5448_s13, 32 }
 0x19e   : > { %p3866_p11 = scmp.lt.u32.totalorder %s4683_s5, %s5448_s13  ;;  %p3867_p10 = scmp.lt.u32.totalorder %s3865_s15, %s3860_s29 }
 0x19f   : > { %p3863_p8 = pnand %p3861_p2, %p5443_p9  ;;  %p3869_p6 = scmp.lt.u32.totalorder %s3860_s29, %s4683_s5 }
 0x1a0   : > { %s4709_s0 = scalar_lea.hbm %s5451_s20, %s4348_s21  ;;  %p3868_p3 = por %p3867_p10, %p3866_p11 }
 0x1a1   : > { %p3864_p5 = pneg %p3863_p8 }
 0x1a2   : > { %p3870_p13 = por %p3869_p6, %p3868_p3 }
 0x1a4   : > { %p3871_p0 = pnand %p3870_p13, %p3864_p5 }
 0x1a6   : > { %3874 = shalt.err (!%p3871_p0)
}
 0x1a7   : > { %s3875_s2 = scalar_lea.vmem %s727_s25, 16  ;;  %s4120_s10 = smov [#allocation21]  }
 0x1a8   : > { %p3876_p7 = scmp.ne.s32.totalorder %s727_s25, %s3875_s2  ;;  %s3880_s8 = sshll.u32 %s4120_s10, 4  ;;  %s3881_s8 = int_to_ptr.vmem [resolvable:$false] %s3880_s8 }
 0x1a9   : > { %s3882_s30 = scalar_lea.vmem %s3881_s8, 32  ;;  %p3883_p2 = scmp.lt.s32.totalorder %s727_s25, %s3881_s8 }
 0x1aa   : > { %p3878_p1 = pnand %p3876_p7, %p5443_p9  ;;  %p3884_p8 = scmp.lt.s32.totalorder %s3882_s30, %s3875_s2 }
 0x1ac   : > { %p3879_p4 = pneg %p3878_p1  ;;  %p3885_p12 = por %p3884_p8, %p3883_p2 }
 0x1ae   : > { %p3886_p10 = pnand %p3885_p12, %p3879_p4 }
 0x1b0   : > { %3889 = shalt.err (!%p3886_p10)
}
 0x1b1   : > { %p5452_p11 = scmp.ne.s32.totalorder %s5426_s1, 0  ;;  %s5453_s18 = scalar_lea.sflag [#allocation20], %s4324_s22 }
 0x1b2   : > { %s754_s19 = scalar_lea.vmem [#allocation24], %s4285_s26  ;;  %s5454_s17 = sld [smem:[#allocation62_spill]] }
 0x1b3   : > { %3280 = dma.hbm_to_vmem [thread:$0]  (!%p5452_p11), %s4683_s5, 16, %s727_s25, %s5453_s18  }
 0x1b4   : > { %s761_s12 = sshll.u32 %s754_s19, 4  ;;  %s3890_s27 = scalar_lea.hbm %s4709_s0, 16  ;;  %s762_s12 = int_to_ptr.vmem [resolvable:$true] %s761_s12 }
 0x1b5   : > { %p3891_p12 = scmp.ne.s32.totalorder %s4709_s0, %s3890_s27  ;;  %s3895_s8 = scalar_lea.hbm %s5451_s20, 32 }
 0x1b6   : > { %p3896_p6 = scmp.lt.u32.totalorder %s4709_s0, %s5451_s20  ;;  %p3897_p13 = scmp.lt.u32.totalorder %s3895_s8, %s3890_s27 }
 0x1b7   : > { %p3893_p5 = pnand %p3891_p12, %p5443_p9  ;;  %p3899_p7 = scmp.lt.u32.totalorder %s3890_s27, %s4709_s0 }
 0x1b8   : > { %s4735_s15 = scalar_lea.hbm %s5454_s17, %s4348_s21  ;;  %p3898_p0 = por %p3897_p13, %p3896_p6 }
 0x1b9   : > { %p3894_p3 = pneg %p3893_p5 }
 0x1ba   : > { %p3900_p1 = por %p3899_p7, %p3898_p0 }
 0x1bc   : > { %p3901_p4 = pnand %p3900_p1, %p3894_p3 }
 0x1be   : > { %3904 = shalt.err (!%p3901_p4)
}
 0x1bf   : > { %s3905_s21 = scalar_lea.vmem %s762_s12, 16  ;;  %s4121_s5 = smov [#allocation24]  }
 0x1c0   : > { %p3906_p2 = scmp.ne.s32.totalorder %s762_s12, %s3905_s21  ;;  %s3910_s25 = sshll.u32 %s4121_s5, 4  ;;  %s3911_s25 = int_to_ptr.vmem [resolvable:$false] %s3910_s25 }
 0x1c1   : > { %s3912_s18 = scalar_lea.vmem %s3911_s25, 32  ;;  %p3913_p12 = scmp.lt.s32.totalorder %s762_s12, %s3911_s25 }
 0x1c2   : > { %p3908_p8 = pnand %p3906_p2, %p5443_p9  ;;  %p3914_p5 = scmp.lt.s32.totalorder %s3912_s18, %s3905_s21 }
 0x1c4   : > { %p3909_p10 = pneg %p3908_p8  ;;  %p3915_p11 = por %p3914_p5, %p3913_p12 }
 0x1c6   : > { %p3916_p6 = pnand %p3915_p11, %p3909_p10 }
 0x1c8   : > { %3919 = shalt.err (!%p3916_p6)
}
 0x1c9   : > { %p5455_p13 = scmp.ne.s32.totalorder %s5426_s1, 0  ;;  %s5456_s3 = scalar_lea.sflag [#allocation23], %s4324_s22 }
 0x1ca   : > { %s792_s19 = scalar_lea.vmem [#allocation27], %s4285_s26  ;;  %s3920_s28 = scalar_lea.hbm %s4735_s15, 16 }
 0x1cb   : > { %3286 = dma.hbm_to_vmem [thread:$0]  (!%p5455_p13), %s4709_s0, 16, %s762_s12, %s5456_s3  }
 0x1cc   : > { %s799_s29 = sshll.u32 %s792_s19, 4  ;;  %p3921_p3 = scmp.ne.s32.totalorder %s4735_s15, %s3920_s28  ;;  %s800_s29 = int_to_ptr.vmem [resolvable:$true] %s799_s29 }
 0x1cd   : > { %s3925_s10 = scalar_lea.hbm %s5454_s17, 32  ;;  %p3926_p7 = scmp.lt.u32.totalorder %s4735_s15, %s5454_s17 }
 0x1ce   : > { %p3923_p11 = pnand %p3921_p3, %p5443_p9  ;;  %p3927_p1 = scmp.lt.u32.totalorder %s3925_s10, %s3920_s28 }
 0x1cf   : > { %p3929_p2 = scmp.lt.u32.totalorder %s3920_s28, %s4735_s15 }
 0x1d0   : > { %p3924_p0 = pneg %p3923_p11  ;;  %p3928_p4 = por %p3927_p1, %p3926_p7 }
 0x1d2   : > { %p3930_p8 = por %p3929_p2, %p3928_p4 }
 0x1d4   : > { %p3931_p10 = pnand %p3930_p8, %p3924_p0 }
 0x1d6   : > { %3934 = shalt.err (!%p3931_p10)
}
 0x1d7   : > { %s3935_s26 = scalar_lea.vmem %s800_s29, 16  ;;  %s4122_s0 = smov [#allocation27]  }
 0x1d8   : > { %p3936_p12 = scmp.ne.s32.totalorder %s800_s29, %s3935_s26  ;;  %s3940_s12 = sshll.u32 %s4122_s0, 4  ;;  %s3941_s12 = int_to_ptr.vmem [resolvable:$false] %s3940_s12 }
 0x1d9   : > { %s3942_s21 = scalar_lea.vmem %s3941_s12, 32  ;;  %p3943_p3 = scmp.lt.s32.totalorder %s800_s29, %s3941_s12 }
 0x1da   : > { %p3938_p5 = pnand %p3936_p12, %p5443_p9  ;;  %p3944_p11 = scmp.lt.s32.totalorder %s3942_s21, %s3935_s26 }
 0x1dc   : > { %p3939_p6 = pneg %p3938_p5  ;;  %p3945_p13 = por %p3944_p11, %p3943_p3 }
 0x1de   : > { %p3946_p1 = pnand %p3945_p13, %p3939_p6 }
 0x1e0   : > { %3949 = shalt.err (!%p3946_p1)
}
 0x1e1   : > { %p5457_p7 = scmp.ne.s32.totalorder %s5426_s1, 0  ;;  %s5458_s5 = scalar_lea.sflag [#allocation26], %s4324_s22 }
 0x1e2   : > { %s5459_s25 = sld [smem:[#allocation54_spill]] }
 0x1e3   : > { %3292 = dma.hbm_to_vmem [thread:$0]  (!%p5457_p7), %s4735_s15, 16, %s800_s29, %s5458_s5  }
 0x1e8   : > { %p5460_p0 = scmp.ne.s32.totalorder %s5459_s25, 0 }
 0x1e9   : > { %s5461_s24 = sld [smem:[#allocation50_spill]] (!%p5460_p0) }
 0x1ea   : > { %808 = sbr.rel (%p5460_p0) target bundleno = 2907 (0xb5b), region = 88 }
 0x1ef   : > { %p5462_p9 = scmp.eq.s32.totalorder (!%p5460_p0), %s5461_s24, 0 }
 0x1f1   : > { %4031 = dma.done.wait (%p5462_p9), [#allocation8], 256   ;;  %p5463_p4 = pmov %p5462_p9 }
 0x1f2   : > { %s5464_s18 = sld [smem:[#allocation48_spill]]  ;;  %s5465_s3 = sld [smem:[#allocation53_spill]] }
 0x1f3   : > { %4033 = vsyncadd (%p5463_p4), [#allocation8], 4294967040  ;;  %s4783_s19 = sand.u32 1, %s5461_s24  }
 0x1f4   : > { %s815_s22 = scalar_lea.sflag [#allocation11], %s4783_s19 }
 0x1f8   : > { %s4786_s1 = sand.u32 1, %s5464_s18   ;;  %p5466_p13 = scmp.ne.s32.totalorder %s5465_s3, 0 }
 0x1f9   : > { %s817_s15 = scalar_lea.vmem [#allocation10], %s4786_s1 }
 0x1fa   : > { %4035 = dma.done.wait (%p5466_p13), %s815_s22, 32  }
 0x1fb   : > { %4037 = vsyncadd (%p5466_p13), %s815_s22, 4294967264  ;;  %s3015_s29 = sshll.u32 %s4786_s1, 4  ;;  %s825_s28 = scalar_lea.vmem [#allocation12], %s4786_s1 }
 0x1fc   : > { %s831_s27 = scalar_lea.sflag [#allocation14], %s4783_s19  ;;  %s4797_s2 = scalar_lea.vmem [#allocation13], %s3015_s29 }
 0x1fd   : > { %4039 = dma.done.wait (%p5466_p13), %s831_s27, 272  }
 0x1fe   : > { %4041 = vsyncadd (%p5466_p13), %s831_s27, 4294967024  ;;  %s3016_s10 = sshll.u32 %s4786_s1, 2  ;;  %s842_s8 = scalar_lea.vmem [#allocation15], %s4786_s1 }
 0x1ff   : > { %s848_s30 = scalar_lea.sflag [#allocation17], %s4783_s19  ;;  %s4806_s26 = scalar_lea.vmem [#allocation16], %s3016_s10 }
 0x200   : > { %4043 = dma.done.wait (%p5466_p13), %s848_s30, 80  }
 0x201   : > { %4045 = vsyncadd (%p5466_p13), %s848_s30, 4294967216  ;;  %s3017_s0 = sshll.u32 %s4786_s1, 5  ;;  %s859_s12 = scalar_lea.vmem [#allocation18], %s4786_s1 }
 0x202   : > { %s865_s21 = scalar_lea.sflag [#allocation20], %s4783_s19  ;;  %s4815_s5 = scalar_lea.vmem [#allocation19], %s3017_s0 }
 0x203   : > { %4047 = dma.done.wait (%p5466_p13), %s865_s21, 528  }
 0x204   : > { %4049 = vsyncadd (%p5466_p13), %s865_s21, 4294966768  ;;  %s3018_s25 = sshll.u32 %s4786_s1, 3  ;;  %s876_s18 = scalar_lea.vmem [#allocation21], %s4786_s1 }
 0x205   : > { %s882_s22 = scalar_lea.sflag [#allocation23], %s4783_s19  ;;  %s4824_s29 = scalar_lea.vmem [#allocation22], %s3018_s25 }
 0x206   : > { %4051 = dma.done.wait (%p5466_p13), %s882_s22, 144  }
 0x207   : > { %4053 = vsyncadd (%p5466_p13), %s882_s22, 4294967152  ;;  %s893_s27 = scalar_lea.vmem [#allocation24], %s4786_s1  ;;  %s899_s10 = scalar_lea.sflag [#allocation26], %s4783_s19 }
 0x208   : > { %s4832_s30 = scalar_lea.vmem [#allocation25], %s3017_s0 }
 0x209   : > { %4055 = dma.done.wait (%p5466_p13), %s899_s10, 528  }
 0x20a   : > { %4057 = vsyncadd (%p5466_p13), %s899_s10, 4294966768  ;;  %s910_s21 = scalar_lea.vmem [#allocation27], %s4786_s1  ;;  %p5467_p2 = pmov %p5463_p4 }
 0x20c   : > { %4059 = dma.done.wait (%p5467_p2), [#allocation29], 32   ;;  %p5468_p8 = pmov %p5467_p2 }
 0x20d   : > { %p5469_p10 = pmov %p5467_p2 }
 0x20e   : > { %4061 = vsyncadd (%p5468_p8), [#allocation29], 4294967264 }
 0x20f   : > { %4063 = dma.done.wait (%p5469_p10), [#allocation32], 528   ;;  %p5470_p12 = pmov %p5467_p2 }
 0x210   : > { %p5471_p5 = scmp.ne.s32.totalorder %s5461_s24, 0 }
 0x211   : > { %4065 = vsyncadd (%p5470_p12), [#allocation32], 4294966768  ;;  %v1027_v0 = vld [vmem:[#allocation7] sm:$0xff] (!%p5471_p5)  ;;  %vm1029_vm0 = vcmask (!%p5471_p5), 261120   ;;  %v1028_v1 = vld [vmem:[#allocation7 + $0x8] sm:$0xff] (!%p5471_p5) }
 0x212   : > { %1026 = sbr.rel (%p5471_p5) target bundleno = 537 (0x219), region = 160  ;;  %1030 = vst.msk [vmem:[#allocation2] sm:$0xff] (!%p5471_p5), %vm1029_vm0, %v1027_v0  ;;  %1031 = vst.msk [vmem:[#allocation2 + $0x8] sm:$0xff] (!%p5471_p5), %vm1029_vm0, %v1028_v1 }
 0x219 PF: > { %v4849_v2 = vld [vmem:[#allocation2] sm:$0xff]  ;;  %vm1036_vm1 = vcmask 261120   ;;  %v4851_v3 = vld [vmem:[#allocation2 + $0x8] sm:$0xff]  ;;  %v4123_v17 = vmov 0.0   ;;  %vm4124_vm2 = vmmov 0   ;;  %v3388_v38 = vld [vmem:[%s4815_s5 + $0x10] sm:$0xff]   ;;  %v1149_v40 = vlaneseq }
 0x21a   : > { %v1037_v4 = vsel %vm1036_vm1, %v4849_v2, 0.0  ;;  %v1040_v5 = vsel %vm1036_vm1, %v4851_v3, 0.0  ;;  %v3384_v16 = vld [vmem:[%s4797_s2] sm:$0xff]   ;;  %3129 = vmatprep.subr.bf16.mxu0 %v4123_v17  ;;  %3137 = vmatprep.subr.bf16.mxu1 %v4123_v17  ;;  %v3385_v18 = vld [vmem:[%s4797_s2 + $0x8] sm:$0xff]   ;;  %vm1261_vm9 = vcmask 523264   ;;  %s5167_s24 = smov 0  }
 0x21b   : > { %1038 = vadd.xlane.f32.xlu0 %v1037_v4  ;;  %3130 = vmatpush3.bf16.msra.mxu0 %v3384_v16  ;;  %v3025_v27 = vld [vmem:[%s817_s15] ss:$0 sm:$0xff]  ;;  %v3387_v37 = vld [vmem:[%s4815_s5 + $0x8] sm:$0xff]   ;;  %v3389_v39 = vld [vmem:[%s4815_s5 + $0x18] sm:$0xff]   ;;  %v4883_v41 = vshrl.u32 %v1149_v40, 7 }
 0x21c   : > { %3133 = vmatprep.mubr.msk.bf16.mxu0 %vm4124_vm2, %v4123_v17  ;;  %3131 = vmatprep.subr.bf16.mxu0 %v4123_v17  ;;  %v3026_v31 = vld [vmem:[%s825_s28] ss:$0 sm:$0xff]  ;;  %v1148_v44 = vld [vmem:[%s4806_s26] sm:$0xf] }
 0x21d   : > { %3145 = vmatprep.mubr.msk.bf16.mxu1 %vm4124_vm2, %v4123_v17  ;;  %v3386_v36 = vld [vmem:[%s4815_s5] sm:$0xff]   ;;  %v4886_v42 = vsub.s32 3, %v4883_v41  ;;  %v4892_v45 = vsub.s32 2, %v4883_v41  ;;  %v4895_v47 = vsub.s32 1, %v4883_v41  ;;  %vm1169_vm3 = vcmp.lt.s32.totalorder %v4883_v41, 2 }
 0x21e   : > { %3138 = vmatpush3.bf16.msra.mxu1 %v3386_v36  ;;  %v3027_v43 = vld [vmem:[%s842_s8] ss:$0 sm:$0xff]  ;;  %v4903_v54 = vsub.s32 0, %v4883_v41  ;;  %vm1172_vm4 = vcmp.ge.s32.totalorder %v4883_v41, 2  ;;  %vm1186_vm5 = vcmp.lt.s32.totalorder %v4883_v41, 4  ;;  %vm1203_vm6 = vcmp.lt.s32.totalorder %v4883_v41, 6 }
 0x21f   : > { %1041 = vadd.xlane.f32.xlu0 %v1040_v5  ;;  %3132 = vmatpush3.bf16.msra.mxu0 %v3385_v18  ;;  %v1156_v49 = vrot.slane %v1148_v44, %v4886_v42  ;;  %v1179_v52 = vrot.slane %v1148_v44, %v4892_v45  ;;  %v1196_v56 = vrot.slane %v1148_v44, %v4895_v47  ;;  %v3031_v60 = vld [vmem:[%s859_s12] ss:$0 sm:$0xff]  ;;  %vm1189_vm7 = vcmp.ge.s32.totalorder %v4883_v41, 4 }
 0x220   : > { %3139 = vmatprep.subr.bf16.mxu1 %v4123_v17  ;;  %vm1206_vm8 = vcmp.ge.s32.totalorder %v4883_v41, 6  ;;  %v1213_v4 = vrot.slane %v1148_v44, %v4903_v54 }
 0x222   : > { %3140 = vmatpush3.bf16.msra.mxu1 %v3387_v37 }
 0x223   : > { %3141 = vmatprep.subr.bf16.mxu1 %v4123_v17 }
 0x226   : > { %3142 = vmatpush3.bf16.msra.mxu1 %v3388_v38 }
 0x227   : > { %3143 = vmatprep.subr.bf16.mxu1 %v4123_v17 }
 0x22a   : > { %3144 = vmatpush3.bf16.msra.mxu1 %v3389_v39 }
 0x2a8   : > { %v1039_v6 = vpop.xlane.xlu0 %1038 }
 0x2a9   : > { %v1044_v7 = vmul.f32 0.03125, %v1039_v6 }
 0x2ab   : > { %v1046_v8 = vsub.f32 %v4849_v2, %v1044_v7 }
 0x2ac   : > { %v1042_v9 = vpop.xlane.xlu0 %1041 }
 0x2ad   : > { %v1045_v10 = vmul.f32 0.03125, %v1042_v9  ;;  %v1048_v11 = vmul.f32 %v1046_v8, %v1046_v8 }
 0x2af   : > { %v1047_v12 = vsub.f32 %v4851_v3, %v1045_v10  ;;  %v1050_v13 = vsel %vm1036_vm1, %v1048_v11, 0.0 }
 0x2b0   : > { %1051 = vadd.xlane.f32.xlu1 %v1050_v13 }
 0x2b1   : > { %v1049_v14 = vmul.f32 %v1047_v12, %v1047_v12 }
 0x2b3   : > { %v1053_v15 = vsel %vm1036_vm1, %v1049_v14, 0.0 }
 0x2b4   : > { %1054 = vadd.xlane.f32.xlu1 %v1053_v15 }
 0x33d   : > { %v1052_v19 = vpop.xlane.xlu1 %1051 }
 0x33e   : > { %v1056_v20 = vmul.f32 0.03125, %v1052_v19 }
 0x340   : > { %v1058_v21 = vadd.f32 1e-05, %v1056_v20 }
 0x341   : > { %v1055_v22 = vpop.xlane.xlu1 %1054 }
 0x342   : > { %3390 = vrsqrt.f32 %v1058_v21  ;;  %v1057_v23 = vmul.f32 0.03125, %v1055_v22 }
 0x344   : > { %v1059_v24 = vadd.f32 1e-05, %v1057_v23 }
 0x346   : > { %3392 = vrsqrt.f32 %v1059_v24 }
 0x34c   : > { %v3391_v25 = vpop.eup %3390 }
 0x34d   : > { %v1062_v26 = vmul.f32 %v3391_v25, %v1046_v8 }
 0x34f   : > { %v1070_v30 = vmul.f32 %v3025_v27, %v1062_v26 }
 0x350   : > { %v3393_v28 = vpop.eup %3392 }
 0x351   : > { %v1063_v29 = vmul.f32 %v3393_v28, %v1047_v12  ;;  %v1078_v33 = vadd.f32 %v3026_v31, %v1070_v30 }
 0x353   : > { %v1071_v32 = vmul.f32 %v3025_v27, %v1063_v29 }
 0x355   : > { %v1079_v34 = vadd.f32 %v3026_v31, %v1071_v32 }
 0x357   : > { %v1080_v35 = vpack.c.bf16 %v1079_v34, %v1078_v33 }
 0x359   : > { %3134 = vmatmul.mubr.msk.bf16.vlgmr.msra.gmra.mrb[0].mxu0 %vm1036_vm1, %v1080_v35 }
 0x42c   : > { %v1141_v46 = vpop.f32.mrb[0].mxu0 }
 0x42d   : > { %v4897_v48 = vadd.f32 %v3027_v43, %v1141_v46  ;;  %v3135_v50 = vpop.f32.mrb[1].mxu0 }
 0x42e   : > { %v1144_v51 = vpop.f32.mrb[2].mxu0  ;;  %v1714_v50 = vsub.s32 4, %v4883_v41 }
 0x42f   : > { %v3136_v53 = vpop.f32.mrb[3].mxu0  ;;  %v4905_v55 = vadd.f32 %v3027_v43, %v1144_v51  ;;  %v1157_v57 = vmul.f32 %v1156_v49, %v4897_v48  ;;  %v1167_v58 = vrot.slane %v4897_v48, 6  ;;  %v1184_v59 = vrot.slane %v4897_v48, 4 }
 0x430   : > { %v1201_v1 = vrot.slane %v4897_v48, 2 }
 0x431   : > { %v1158_v61 = vmul.f32 %v1156_v49, %v4905_v55  ;;  %v1168_v62 = vrot.slane %v4905_v55, 6  ;;  %v1185_v63 = vrot.slane %v4905_v55, 4  ;;  %v1202_v0 = vrot.slane %v4905_v55, 2 }
 0x432   : > { %v1165_v9 = vadd.f32 %v3031_v60, %v1157_v57 }
 0x433   : > { %v1166_v5 = vadd.f32 %v3031_v60, %v1158_v61  ;;  %v1170_v6 = vsel %vm1169_vm3, %v1167_v58, %v1168_v62  ;;  %v1171_v7 = vsel %vm1169_vm3, %v1168_v62, %v1167_v58  ;;  %v1187_v8 = vsel %vm1186_vm5, %v1184_v59, %v1185_v63 }
 0x434   : > { %v1174_v10 = vsel %vm1172_vm4, %v1171_v7, 0.0  ;;  %v1181_v11 = vmul.f32 %v1179_v52, %v1170_v6  ;;  %v1188_v12 = vsel %vm1186_vm5, %v1185_v63, %v1184_v59  ;;  %v1204_v15 = vsel %vm1203_vm6, %v1201_v1, %v1202_v0 }
 0x435   : > { %v1180_v13 = vmul.f32 %v1179_v52, %v1174_v10  ;;  %v1191_v14 = vsel %vm1189_vm7, %v1188_v12, 0.0  ;;  %v1205_v16 = vsel %vm1203_vm6, %v1202_v0, %v1201_v1  ;;  %v1198_v19 = vmul.f32 %v1196_v56, %v1187_v8  ;;  %v3037_v52 = vld [vmem:[%s876_s18] ss:$0 sm:$0xff] }
 0x436   : > { %v1183_v18 = vadd.f32 %v1181_v11, %v1166_v5  ;;  %v1208_v20 = vsel %vm1206_vm8, %v1205_v16, 0.0  ;;  %v1197_v21 = vmul.f32 %v1196_v56, %v1191_v14  ;;  %v1215_v24 = vmul.f32 %v1213_v4, %v1204_v15 }
 0x437   : > { %v1182_v22 = vadd.f32 %v1180_v13, %v1165_v9  ;;  %v1214_v26 = vmul.f32 %v1213_v4, %v1208_v20  ;;  %v1730_v56 = vsub.s32 6, %v4883_v41  ;;  %v1722_v1 = vsub.s32 5, %v4883_v41 }
 0x438   : > { %v1200_v23 = vadd.f32 %v1198_v19, %v1183_v18  ;;  %v1738_v10 = vsub.s32 7, %v4883_v41 }
 0x439   : > { %v1199_v25 = vadd.f32 %v1197_v21, %v1182_v22  ;;  %v4125_v21 = vmov 1966171168  }
 0x43a   : > { %v1217_v27 = vadd.f32 %v1215_v24, %v1200_v23  ;;  %v1340_v22 = vunpack.c.l.s4 %v4125_v21 }
 0x43b   : > { %v1216_v28 = vadd.f32 %v1214_v26, %v1199_v25 }
 0x43c   : > { %v1219_v29 = vmul.f32 0.5, %v1217_v27  ;;  %v1341_v24 = vunpack.c.0.s8 %v1340_v22 }
 0x43d   : > { %v1218_v30 = vmul.f32 0.5, %v1216_v28 }
 0x43e   : > { %3394 = vtanh.f32 %v1219_v29  ;;  %v5010_v26 = vsub.s32 %v1341_v24, %v4883_v41 }
 0x43f   : > { %3396 = vtanh.f32 %v1218_v30 }
 0x448   : > { %v3395_v31 = vpop.eup %3394 }
 0x449   : > { %v3397_v32 = vpop.eup %3396  ;;  %v1223_v33 = vadd.f32 1.0, %v3395_v31 }
 0x44a   : > { %v1222_v34 = vadd.f32 1.0, %v3397_v32 }
 0x44b   : > { %v1225_v35 = vmul.f32 0.5, %v1223_v33 }
 0x44c   : > { %v1224_v36 = vmul.f32 0.5, %v1222_v34 }
 0x44d   : > { %v4940_v37 = vmul.f32 %v1225_v35, %v1217_v27 }
 0x44e   : > { %v4942_v38 = vmul.f32 %v1224_v36, %v1216_v28 }
 0x450   : > { %v1228_v39 = vpack.c.bf16 %v4940_v37, %v4942_v38 }
 0x452   : > { %3146 = vmatmul.mubr.msk.bf16.vlgmr.msra.gmra.mrb[0].mxu1 %vm1261_vm9, %v1228_v39 }
 0x525   : > { %v1299_v43 = vpop.f32.mrb[0].mxu1 }
 0x526   : > { %v3147_v44 = vpop.f32.mrb[1].mxu1  ;;  %v4948_v46 = vrot.slane %v1299_v43, %v4895_v47  ;;  %v4951_v49 = vrot.slane %v1299_v43, %v4903_v54  ;;  %v4960_v57 = vrot.slane %v1299_v43, %v4892_v45  ;;  %v4962_v58 = vrot.slane %v1299_v43, %v1714_v50 }
 0x527   : > { %v1302_v51 = vpop.f32.mrb[2].mxu1  ;;  %v1313_v59 = vadd.f32 %v3037_v52, %v1299_v43  ;;  %v4967_v63 = vrot.slane %v1299_v43, %v4886_v42  ;;  %v4969_v0 = vrot.slane %v1299_v43, %v1730_v56  ;;  %v4974_v8 = vrot.slane %v1299_v43, %v1722_v1 }
 0x528   : > { %1694 = vbcast.lane.b32.xlu1 %v4948_v46, 320  ;;  %1686 = vbcast.lane.b32.xlu0 %v4951_v49, 320  ;;  %v3148_v53 = vpop.f32.mrb[3].mxu1  ;;  %v1314_v60 = vadd.f32 %v3037_v52, %v1302_v51  ;;  %v4977_v9 = vrot.slane %v1302_v51, %v4903_v54  ;;  %v4982_v11 = vrot.slane %v1299_v43, %v1738_v10 }
 0x529   : > { %v1317_v61 = vand.u32 2147483647, %v1313_v59  ;;  %v4985_v12 = vrot.slane %v1302_v51, %v4892_v45  ;;  %v4990_v13 = vrot.slane %v1302_v51, %v4895_v47  ;;  %v4992_v14 = vrot.slane %v1302_v51, %v1714_v50  ;;  %v5024_v53 = vld [vmem:[%s4824_s29] sm:$0xff] }
 0x52a   : > { %v1318_v62 = vand.u32 2147483647, %v1314_v60  ;;  %v4997_v19 = vrot.slane %v1302_v51, %v4886_v42  ;;  %v4999_v45 = vrot.slane %v1302_v51, %v1730_v56  ;;  %v5003_v47 = vrot.slane %v1302_v51, %v1722_v1 }
 0x52b   : > { %v1319_v4 = vsub.f32 0.0, %v1317_v61  ;;  %v5006_v23 = vrot.slane %v1302_v51, %v1738_v10  ;;  %v1315_v27 = vmax.f32 %v1313_v59, 0.0  ;;  %v1316_v29 = vmax.f32 %v1314_v60, 0.0 }
 0x52c   : > { %1702 = vbcast.lane.b32.xlu1 %v4960_v57, 320  ;;  %1718 = vbcast.lane.b32.xlu0 %v4962_v58, 320  ;;  %v1320_v5 = vsub.f32 0.0, %v1318_v62 }
 0x52d   : > { %v1321_v6 = vmul.f32 1.442695, %v1319_v4 }
 0x52e   : > { %v1323_v7 = vmul.f32 1.442695, %v1320_v5 }
 0x52f   : > { %3398 = vpow2.f32 %v1321_v6 }
 0x530   : > { %1710 = vbcast.lane.b32.xlu1 %v4967_v63, 320  ;;  %1734 = vbcast.lane.b32.xlu0 %v4969_v0, 320  ;;  %3400 = vpow2.f32 %v1323_v7 }
 0x534   : > { %1726 = vbcast.lane.b32.xlu1 %v4974_v8, 320  ;;  %1750 = vbcast.lane.b32.xlu0 %v4977_v9, 320 }
 0x538   : > { %1742 = vbcast.lane.b32.xlu1 %v4982_v11, 320  ;;  %1766 = vbcast.lane.b32.xlu0 %v4985_v12, 320 }
 0x539   : > { %v3399_v15 = vpop.eup %3398 }
 0x53a   : > { %v3401_v16 = vpop.eup %3400  ;;  %v1325_v18 = vadd.f32 1.0, %v3399_v15 }
 0x53b   : > { %v1326_v20 = vadd.f32 1.0, %v3401_v16 }
 0x53c   : > { %1758 = vbcast.lane.b32.xlu1 %v4990_v13, 320  ;;  %1782 = vbcast.lane.b32.xlu0 %v4992_v14, 320  ;;  %3402 = vlog2.f32 %v1325_v18 }
 0x53d   : > { %3404 = vlog2.f32 %v1326_v20 }
 0x540   : > { %1774 = vbcast.lane.b32.xlu1 %v4997_v19, 320  ;;  %1798 = vbcast.lane.b32.xlu0 %v4999_v45, 320 }
 0x544   : > { %1790 = vbcast.lane.b32.xlu1 %v5003_v47, 320 }
 0x546   : > { %v3403_v42 = vpop.eup %3402 }
 0x547   : > { %v3405_v25 = vpop.eup %3404  ;;  %v1328_v28 = vmul.f32 0.6931472, %v3403_v42 }
 0x548   : > { %1806 = vbcast.lane.b32.xlu1 %v5006_v23, 320  ;;  %v1330_v30 = vmul.f32 0.6931472, %v3405_v25 }
 0x549   : > { %v1331_v31 = vadd.f32 %v1328_v28, %v1315_v27 }
 0x54a   : > { %v5012_v32 = vadd.f32 %v1330_v30, %v1316_v29 }
 0x54b   : > { %v1334_v33 = vmul.f32 %v1331_v31, %v4942_v38  ;;  %v1338_v34 = vcombine.high %v1331_v31, %v1331_v31  ;;  %v1345_v35 = vrot.slane %v1331_v31, %v5010_v26 }
 0x54c   : > { %v1387_v51 = vcombine.high %v5012_v32, %v5012_v32  ;;  %v1394_v52 = vrot.slane %v5012_v32, %v5010_v26 }
 0x54d   : > { %v1352_v36 = vrot.slane %v1338_v34, %v5010_v26  ;;  %v1353_v39 = vcombine.high %v1345_v35, %v1345_v35  ;;  %v1361_v43 = vrot.slane %v1345_v35, %v5010_v26  ;;  %v1589_v44 = vrot.slane %v1334_v33, %v5010_v26 }
 0x54e   : > { %v1582_v50 = vcombine.high %v1334_v33, %v1334_v33 }
 0x54f   : > { %v1354_v56 = vcombine.high %v1352_v36, %v1352_v36  ;;  %v1368_v59 = vrot.slane %v1352_v36, %v5010_v26  ;;  %v1375_v60 = vrot.slane %v1353_v39, %v5010_v26  ;;  %v1383_v61 = vcombine.high %v1361_v43, %v1361_v43 }
 0x550   : > { %v1439_v62 = vrot.slane %v1361_v43, %v4903_v54  ;;  %v1597_v1 = vcombine.high %v1589_v44, %v1589_v44  ;;  %v5030_v4 = vrot.slane %v1589_v44, %v5010_v26  ;;  %v1596_v5 = vrot.slane %v1582_v50, %v5010_v26 }
 0x551   : > { %v1382_v6 = vrot.slane %v1354_v56, %v5010_v26  ;;  %v1384_v7 = vcombine.high %v1368_v59, %v1368_v59  ;;  %v1385_v10 = vcombine.high %v1375_v60, %v1375_v60  ;;  %v1443_v15 = vrot.slane %v1375_v60, %v4903_v54 }
 0x552   : > { %v1447_v16 = vrot.slane %v1383_v61, %v4903_v54  ;;  %v1455_v18 = vrot.slane %v1368_v59, %v4903_v54  ;;  %v1516_v20 = vmul.f32 %v1439_v62, %v5024_v53  ;;  %v5039_v21 = vrot.slane %v1597_v1, %v5010_v26 }
 0x553   : > { %v1386_v22 = vcombine.high %v1382_v6, %v1382_v6  ;;  %v1451_v24 = vrot.slane %v1385_v10, %v4903_v54  ;;  %v1459_v42 = vrot.slane %v1382_v6, %v4903_v54  ;;  %v1463_v25 = vrot.slane %v1384_v7, %v4903_v54 }
 0x554   : > { %v1517_v27 = vmul.f32 %v1443_v15, %v5024_v53  ;;  %v1518_v28 = vmul.f32 %v1447_v16, %v5024_v53  ;;  %v1520_v29 = vmul.f32 %v1455_v18, %v5024_v53  ;;  %v1532_v30 = vmul.f32 1.442695, %v1516_v20 }
 0x555   : > { %v1467_v31 = vrot.slane %v1386_v22, %v4903_v54  ;;  %v1519_v33 = vmul.f32 %v1451_v24, %v5024_v53  ;;  %v1521_v34 = vmul.f32 %v1459_v42, %v5024_v53  ;;  %v1522_v35 = vmul.f32 %v1463_v25, %v5024_v53 }
 0x556   : > { %3406 = vpow2.f32 %v1532_v30  ;;  %v1534_v36 = vmul.f32 1.442695, %v1517_v27  ;;  %v1536_v39 = vmul.f32 1.442695, %v1518_v28  ;;  %v1401_v43 = vrot.slane %v1387_v51, %v5010_v26 }
 0x557   : > { %v1523_v44 = vmul.f32 %v1467_v31, %v5024_v53  ;;  %v1538_v50 = vmul.f32 1.442695, %v1519_v33  ;;  %v1540_v56 = vmul.f32 1.442695, %v1520_v29  ;;  %v1542_v59 = vmul.f32 1.442695, %v1521_v34 }
 0x558   : > { %3408 = vpow2.f32 %v1534_v36  ;;  %v1402_v60 = vcombine.high %v1394_v52, %v1394_v52  ;;  %v1544_v61 = vmul.f32 1.442695, %v1522_v35  ;;  %v5054_v62 = vrot.slane %v1596_v5, %v5010_v26 }
 0x559   : > { %3410 = vpow2.f32 %v1536_v39  ;;  %v1410_v1 = vrot.slane %v1394_v52, %v5010_v26  ;;  %v1546_v6 = vmul.f32 1.442695, %v1523_v44  ;;  %v1598_v7 = vcombine.high %v1596_v5, %v1596_v5 }
 0x55a   : > { %3412 = vpow2.f32 %v1538_v50  ;;  %v1403_v10 = vcombine.high %v1401_v43, %v1401_v43  ;;  %v1417_v15 = vrot.slane %v1401_v43, %v5010_v26  ;;  %v1424_v16 = vrot.slane %v1402_v60, %v5010_v26 }
 0x55b   : > { %3414 = vpow2.f32 %v1540_v56  ;;  %v5058_v51 = vrot.slane %v1598_v7, %v5010_v26  ;;  %v1432_v20 = vcombine.high %v1410_v1, %v1410_v1  ;;  %v1335_v52 = vmul.f32 %v5012_v32, %v4940_v37 }
 0x55c   : > { %3416 = vpow2.f32 %v1542_v59  ;;  %v1431_v18 = vrot.slane %v1403_v10, %v5010_v26  ;;  %v1433_v22 = vcombine.high %v1417_v15, %v1417_v15  ;;  %v1434_v5 = vcombine.high %v1424_v16, %v1424_v16 }
 0x55d   : > { %3418 = vpow2.f32 %v1544_v61  ;;  %v1471_v42 = vrot.slane %v1410_v1, %v4903_v54  ;;  %v1475_v25 = vrot.slane %v1424_v16, %v4903_v54  ;;  %v1479_v27 = vrot.slane %v1432_v20, %v4903_v54 }
 0x55e   : > { %3420 = vpow2.f32 %v1546_v6  ;;  %v1435_v24 = vcombine.high %v1431_v18, %v1431_v18  ;;  %v1483_v29 = vrot.slane %v1434_v5, %v4903_v54  ;;  %v1487_v30 = vrot.slane %v1417_v15, %v4903_v54 }
 0x55f   : > { %v1491_v31 = vrot.slane %v1431_v18, %v4903_v54  ;;  %v1495_v33 = vrot.slane %v1433_v22, %v4903_v54  ;;  %v1524_v34 = vmul.f32 %v1471_v42, %v5024_v53  ;;  %v1525_v35 = vmul.f32 %v1475_v25, %v5024_v53 }
 0x560   : > { %v3407_v28 = vpop.eup %3406  ;;  %v1499_v32 = vrot.slane %v1435_v24, %v4903_v54  ;;  %v1526_v36 = vmul.f32 %v1479_v27, %v5024_v53  ;;  %v1527_v43 = vmul.f32 %v1483_v29, %v5024_v53  ;;  %v1528_v44 = vmul.f32 %v1487_v30, %v5024_v53 }
 0x561   : > { %1564 = vst.msk [vmem:[#allocation3] sm:$0xff] %vm1261_vm9, %v3407_v28  ;;  %v1529_v50 = vmul.f32 %v1491_v31, %v5024_v53  ;;  %v1530_v59 = vmul.f32 %v1495_v33, %v5024_v53  ;;  %v1548_v60 = vmul.f32 1.442695, %v1524_v34  ;;  %v1550_v61 = vmul.f32 1.442695, %v1525_v35 }
 0x562   : > { %v3409_v39 = vpop.eup %3408  ;;  %v1552_v1 = vmul.f32 1.442695, %v1526_v36  ;;  %v1531_v7 = vmul.f32 %v1499_v32, %v5024_v53  ;;  %v1554_v10 = vmul.f32 1.442695, %v1527_v43  ;;  %v1638_v15 = vrot.slane %v1335_v52, %v5010_v26 }
 0x563   : > { %v3411_v56 = vpop.eup %3410  ;;  %1565 = vst.msk [vmem:[#allocation3 + $0x8] sm:$0xff] %vm1261_vm9, %v3409_v39  ;;  %3422 = vpow2.f32 %v1548_v60  ;;  %v1556_v18 = vmul.f32 1.442695, %v1528_v44  ;;  %v1558_v20 = vmul.f32 1.442695, %v1529_v50  ;;  %v1631_v42 = vcombine.high %v1335_v52, %v1335_v52 }
 0x564   : > { %v3413_v6 = vpop.eup %3412  ;;  %1566 = vst.msk [vmem:[#allocation3 + $0x10] sm:$0xff] %vm1261_vm9, %v3411_v56  ;;  %3424 = vpow2.f32 %v1550_v61  ;;  %v5088_v5 = vrot.slane %v1638_v15, %v5010_v26  ;;  %v1646_v24 = vcombine.high %v1638_v15, %v1638_v15  ;;  %v1560_v53 = vmul.f32 1.442695, %v1530_v59 }
 0x565   : > { %v3415_v16 = vpop.eup %3414  ;;  %1567 = vst.msk [vmem:[#allocation3 + $0x18] sm:$0xff] %vm1261_vm9, %v3413_v6  ;;  %3426 = vpow2.f32 %v1552_v1  ;;  %v1562_v28 = vmul.f32 1.442695, %v1531_v7  ;;  %v1645_v30 = vrot.slane %v1631_v42, %v5010_v26  ;;  %v1815_v50 = vrot.slane %v5039_v21, %v4903_v54 }
 0x566   : > { %v3417_v22 = vpop.eup %3416  ;;  %1568 = vst.msk [vmem:[#allocation3 + $0x20] sm:$0xff] %vm1261_vm9, %v3415_v16  ;;  %3428 = vpow2.f32 %v1554_v10  ;;  %v5093_v29 = vrot.slane %v1646_v24, %v5010_v26  ;;  %v1811_v56 = vrot.slane %v5030_v4, %v4903_v54  ;;  %v1627_v59 = vcombine.high %v5030_v4, %v5030_v4 }
 0x567   : > { %v3419_v25 = vpop.eup %3418  ;;  %1569 = vst.msk [vmem:[#allocation3 + $0x28] sm:$0xff] %vm1261_vm9, %v3417_v22  ;;  %3430 = vpow2.f32 %v1556_v18  ;;  %v5098_v52 = vrot.slane %v1645_v30, %v5010_v26  ;;  %v1647_v31 = vcombine.high %v1645_v30, %v1645_v30  ;;  %v1827_v10 = vrot.slane %v5054_v62, %v4903_v54 }
 0x568   : > { %v3421_v27 = vpop.eup %3420  ;;  %1570 = vst.msk [vmem:[#allocation3 + $0x30] sm:$0xff] %vm1261_vm9, %v3419_v25  ;;  %3432 = vpow2.f32 %v1558_v20  ;;  %v1819_v7 = vrot.slane %v1627_v59, %v4903_v54  ;;  %v1629_v15 = vcombine.high %v5039_v21, %v5039_v21  ;;  %v1628_v16 = vcombine.high %v5054_v62, %v5054_v62 }
 0x569   : > { %1571 = vst.msk [vmem:[#allocation3 + $0x38] sm:$0xff] %vm1261_vm9, %v3421_v27  ;;  %3434 = vpow2.f32 %v1560_v53  ;;  %v5101_v33 = vrot.slane %v1647_v31, %v5010_v26  ;;  %v1831_v21 = vrot.slane %v5058_v51, %v4903_v54  ;;  %v1843_v62 = vrot.slane %v5088_v5, %v4903_v54 }
 0x56a   : > { %3436 = vpow2.f32 %v1562_v28  ;;  %v1823_v24 = vrot.slane %v1629_v15, %v4903_v54  ;;  %v1835_v42 = vrot.slane %v1628_v16, %v4903_v54  ;;  %v1630_v30 = vcombine.high %v5058_v51, %v5058_v51 }
 0x56b   : > { %v1676_v31 = vcombine.high %v5088_v5, %v5088_v5  ;;  %v1847_v51 = vrot.slane %v5093_v29, %v4903_v54  ;;  %v1859_v5 = vrot.slane %v5098_v52, %v4903_v54  ;;  %v1678_v59 = vcombine.high %v5093_v29, %v5093_v29 }
 0x56c   : > { %v1863_v29 = vrot.slane %v5101_v33, %v4903_v54 }
 0x56d   : > { %v3423_v32 = vpop.eup %3422 }
 0x56e   : > { %v3425_v34 = vpop.eup %3424  ;;  %1572 = vst.msk [vmem:[#allocation3 + $0x40] sm:$0xff] %vm1261_vm9, %v3423_v32 }
 0x56f   : > { %v3427_v35 = vpop.eup %3426  ;;  %1573 = vst.msk [vmem:[#allocation3 + $0x48] sm:$0xff] %vm1261_vm9, %v3425_v34 }
 0x570   : > { %v3429_v36 = vpop.eup %3428  ;;  %1574 = vst.msk [vmem:[#allocation3 + $0x50] sm:$0xff] %vm1261_vm9, %v3427_v35 }
 0x571   : > { %v3431_v39 = vpop.eup %3430  ;;  %1575 = vst.msk [vmem:[#allocation3 + $0x58] sm:$0xff] %vm1261_vm9, %v3429_v36 }
 0x572   : > { %v3433_v43 = vpop.eup %3432  ;;  %1576 = vst.msk [vmem:[#allocation3 + $0x60] sm:$0xff] %vm1261_vm9, %v3431_v39  ;;  %v1839_v39 = vrot.slane %v1630_v30, %v4903_v54 }
 0x573   : > { %v3435_v44 = vpop.eup %3434  ;;  %1577 = vst.msk [vmem:[#allocation3 + $0x68] sm:$0xff] %vm1261_vm9, %v3433_v43  ;;  %v1851_v43 = vrot.slane %v1676_v31, %v4903_v54 }
 0x574   : > { %v3437_v26 = vpop.eup %3436  ;;  %1578 = vst.msk [vmem:[#allocation3 + $0x70] sm:$0xff] %vm1261_vm9, %v3435_v44 }
 0x575   : > { %1579 = vst.msk [vmem:[#allocation3 + $0x78] sm:$0xff] %vm1261_vm9, %v3437_v26 }
 0x59a   : > { %v1695_v60 = vpop.permute.xlu1 %1694  ;;  %v1687_v61 = vpop.permute.xlu0 %1686 }
 0x59b   : > { %v1889_v1 = vmul.f32 %v1815_v50, %v1695_v60  ;;  %v1888_v6 = vmul.f32 %v1811_v56, %v1687_v61  ;;  %v1677_v60 = vcombine.high %v5098_v52, %v5098_v52  ;;  %v1679_v52 = vcombine.high %v5101_v33, %v5101_v33 }
 0x59d   : > { %1905 = vst.msk [vmem:[#allocation4 + $0x8] sm:$0xff] %vm1261_vm9, %v1889_v1  ;;  %1904 = vst.msk [vmem:[#allocation4] sm:$0xff] %vm1261_vm9, %v1888_v6  ;;  %v1867_v15 = vrot.slane %v1677_v60, %v4903_v54 }
 0x59e   : > { %v1703_v4 = vpop.permute.xlu1 %1702  ;;  %v1719_v18 = vpop.permute.xlu0 %1718 }
 0x59f   : > { %v1890_v20 = vmul.f32 %v1819_v7, %v1703_v4  ;;  %v1892_v22 = vmul.f32 %v1827_v10, %v1719_v18  ;;  %v1855_v10 = vrot.slane %v1678_v59, %v4903_v54 }
 0x5a1   : > { %1906 = vst.msk [vmem:[#allocation4 + $0x10] sm:$0xff] %vm1261_vm9, %v1890_v20  ;;  %1908 = vst.msk [vmem:[#allocation4 + $0x20] sm:$0xff] %vm1261_vm9, %v1892_v22 }
 0x5a2   : > { %v1711_v25 = vpop.permute.xlu1 %1710  ;;  %v1735_v53 = vpop.permute.xlu0 %1734 }
 0x5a3   : > { %v1891_v27 = vmul.f32 %v1823_v24, %v1711_v25  ;;  %v1894_v28 = vmul.f32 %v1835_v42, %v1735_v53  ;;  %v1871_v42 = vrot.slane %v1679_v52, %v4903_v54 }
 0x5a5   : > { %1907 = vst.msk [vmem:[#allocation4 + $0x18] sm:$0xff] %vm1261_vm9, %v1891_v27  ;;  %1910 = vst.msk [vmem:[#allocation4 + $0x30] sm:$0xff] %vm1261_vm9, %v1894_v28  ;;  %v4090_v27 = vmov 0.0   ;;  %v4094_v28 = vmov 0.0  }
 0x5a6   : > { %v1727_v32 = vpop.permute.xlu1 %1726  ;;  %v1751_v34 = vpop.permute.xlu0 %1750 }
 0x5a7   : > { %v1893_v35 = vmul.f32 %v1831_v21, %v1727_v32  ;;  %v1896_v36 = vmul.f32 %v1843_v62, %v1751_v34 }
 0x5a9   : > { %1909 = vst.msk [vmem:[#allocation4 + $0x28] sm:$0xff] %vm1261_vm9, %v1893_v35  ;;  %1912 = vst.msk [vmem:[#allocation4 + $0x40] sm:$0xff] %vm1261_vm9, %v1896_v36 }
 0x5aa   : > { %v1743_v44 = vpop.permute.xlu1 %1742  ;;  %v1767_v26 = vpop.permute.xlu0 %1766 }
 0x5ab   : > { %v1895_v50 = vmul.f32 %v1839_v39, %v1743_v44  ;;  %v1898_v56 = vmul.f32 %v1851_v43, %v1767_v26 }
 0x5ad   : > { %1911 = vst.msk [vmem:[#allocation4 + $0x38] sm:$0xff] %vm1261_vm9, %v1895_v50  ;;  %1914 = vst.msk [vmem:[#allocation4 + $0x50] sm:$0xff] %vm1261_vm9, %v1898_v56 }
 0x5ae   : > { %v1759_v61 = vpop.permute.xlu1 %1758  ;;  %v1783_v1 = vpop.permute.xlu0 %1782 }
 0x5af   : > { %v1897_v6 = vmul.f32 %v1847_v51, %v1759_v61  ;;  %v1900_v7 = vmul.f32 %v1859_v5, %v1783_v1 }
 0x5b1   : > { %1913 = vst.msk [vmem:[#allocation4 + $0x48] sm:$0xff] %vm1261_vm9, %v1897_v6  ;;  %1916 = vst.msk [vmem:[#allocation4 + $0x60] sm:$0xff] %vm1261_vm9, %v1900_v7 }
 0x5b2   : > { %v1775_v16 = vpop.permute.xlu1 %1774  ;;  %v1799_v4 = vpop.permute.xlu0 %1798 }
 0x5b3   : > { %v1899_v18 = vmul.f32 %v1855_v10, %v1775_v16  ;;  %v1902_v20 = vmul.f32 %v1867_v15, %v1799_v4 }
 0x5b5   : > { %1915 = vst.msk [vmem:[#allocation4 + $0x58] sm:$0xff] %vm1261_vm9, %v1899_v18  ;;  %1918 = vst.msk [vmem:[#allocation4 + $0x70] sm:$0xff] %vm1261_vm9, %v1902_v20 }
 0x5b6   : > { %v1791_v22 = vpop.permute.xlu1 %1790 }
 0x5b7   : > { %v1901_v24 = vmul.f32 %v1863_v29, %v1791_v22 }
 0x5b9   : > { %1917 = vst.msk [vmem:[#allocation4 + $0x68] sm:$0xff] %vm1261_vm9, %v1901_v24 }
 0x5ba   : > { %v1807_v25 = vpop.permute.xlu1 %1806 }
 0x5bb   : > { %v1903_v53 = vmul.f32 %v1871_v42, %v1807_v25 }
 0x5bd   : > { %1919 = vst.msk [vmem:[#allocation4 + $0x78] sm:$0xff] %vm1261_vm9, %v1903_v53 }
 0x5be LB: >> { %s3098_s3 = sshll.u32 %s4100_s24, 6  ;;  %s1925_s24 = sadd.s32 1, %s4100_s24   ;;  %s4100_s24 = sphi %s5167_s24, %s1925_s24   ;;  %v4096_v28 = vphi %v4094_v28, %v1983_v28   ;;  %v4092_v27 = vphi %v4090_v27, %v1984_v27  }
 0x5bf   : >> { %s1930_s19 = scalar_lea.vmem [#allocation3], %s3098_s3  ;;  %s5173_s15 = scalar_lea.vmem [#allocation4], %s3098_s3 }
 0x5c0   : >> { %v1931_v33 = vld [vmem:[%s1930_s19] sm:$0xff]  ;;  %v1932_v21 = vld [vmem:[%s1930_s19 + $0x8] sm:$0xff]  ;;  %v3042_v32 = vld [vmem:[%s1930_s19 + $0x10] sm:$0xff]  ;;  %s1940_s28 = scalar_lea.vmem [#allocation5], %s3098_s3  ;;  %p1922_p6 = scmp.ge.s32.totalorder %s1925_s24, 2  }
 0x5c1   : >> { %v1933_v62 = vmul.f32 %v4096_v28, %v1931_v33  ;;  %v1934_v30 = vmul.f32 %v4092_v27, %v1932_v21  ;;  %v3043_v34 = vld [vmem:[%s1930_s19 + $0x18] sm:$0xff]  ;;  %v3054_v50 = vld [vmem:[%s1930_s19 + $0x20] sm:$0xff]  ;;  %v3055_v56 = vld [vmem:[%s1930_s19 + $0x28] sm:$0xff]  ;;  %2038 = vbcast.lane.b32.xlu1 (%p1922_p6), %v4977_v9, 328  ;;  %2006 = vbcast.lane.b32.xlu0 (%p1922_p6), %v4951_v49, 328  ;;  %vm2212_vm10 = vcmask (%p1922_p6), 1041409  }
 0x5c2   : >> { %v3066_v6 = vld [vmem:[%s1930_s19 + $0x30] sm:$0xff]  ;;  %v3067_v7 = vld [vmem:[%s1930_s19 + $0x38] sm:$0xff]  ;;  %3149 = vmatprep.subr.bf16.mxu0 (%p1922_p6), %v4123_v17  ;;  %3157 = vmatprep.mubr.msk.bf16.mxu0 (%p1922_p6), %vm4124_vm2, %v4123_v17  ;;  %vm2214_vm11 = vcmask (%p1922_p6), 1042434   ;;  %vm2216_vm12 = vcmask (%p1922_p6), 1043459   ;;  %vm2218_vm13 = vcmask (%p1922_p6), 1044484   ;;  %vm2220_vm14 = vcmask (%p1922_p6), 1045509  }
 0x5c3   : > { %vm2222_vm15 = vcmask (%p1922_p6), 1046534   ;;  %vm2224_vm0 = vcmask (%p1922_p6), 1047559   ;;  %s4126_s2 = smov (%p1922_p6), 64   ;;  %s5472_s8 = sld [smem:[#allocation50_spill]] (%p1922_p6) }
 0x5c4   : >> { %v1936_v54 = vld [vmem:[%s5173_s15] sm:$0xff]  ;;  %v1937_v31 = vld [vmem:[%s5173_s15 + $0x8] sm:$0xff]  ;;  %v3046_v39 = vld [vmem:[%s5173_s15 + $0x10] sm:$0xff] }
 0x5c5   : >> { %v1938_v35 = vadd.f32 %v1936_v54, %v1933_v62  ;;  %v1939_v36 = vadd.f32 %v1937_v31, %v1934_v30  ;;  %v3047_v43 = vld [vmem:[%s5173_s15 + $0x18] sm:$0xff]  ;;  %v3058_v59 = vld [vmem:[%s5173_s15 + $0x20] sm:$0xff]  ;;  %v3059_v60 = vld [vmem:[%s5173_s15 + $0x28] sm:$0xff]  ;;  %2042 = vbcast.lane.b32.xlu1 (%p1922_p6), %v4990_v13, 328  ;;  %2010 = vbcast.lane.b32.xlu0 (%p1922_p6), %v4948_v46, 328 }
 0x5c6   : >> { %v3070_v16 = vld [vmem:[%s5173_s15 + $0x30] sm:$0xff]  ;;  %v3071_v4 = vld [vmem:[%s5173_s15 + $0x38] sm:$0xff] }
 0x5c7   : >> { %1941 = vst.msk [vmem:[%s1940_s28] sm:$0xff] %vm1261_vm9, %v1938_v35  ;;  %1942 = vst.msk [vmem:[%s1940_s28 + $0x8] sm:$0xff] %vm1261_vm9, %v1939_v36  ;;  %v1948_v44 = vmul.f32 %v3042_v32, %v1938_v35  ;;  %v1949_v26 = vmul.f32 %v3043_v34, %v1939_v36 }
 0x5c9   : >> { %v1953_v51 = vadd.f32 %v3046_v39, %v1948_v44  ;;  %v1954_v5 = vadd.f32 %v3047_v43, %v1949_v26  ;;  %2046 = vbcast.lane.b32.xlu1 (%p1922_p6), %v4985_v12, 328  ;;  %2014 = vbcast.lane.b32.xlu0 (%p1922_p6), %v4960_v57, 328  ;;  %p3083_p3 = scmp.ne.s32.totalorder (%p1922_p6), %s5472_s8, 1 }
 0x5cb   : >> { %3050 = vst.msk [vmem:[%s1940_s28 + $0x10] sm:$0xff] %vm1261_vm9, %v1953_v51  ;;  %3051 = vst.msk [vmem:[%s1940_s28 + $0x18] sm:$0xff] %vm1261_vm9, %v1954_v5  ;;  %v1963_v61 = vmul.f32 %v3054_v50, %v1953_v51  ;;  %v1964_v1 = vmul.f32 %v3055_v56, %v1954_v5 }
 0x5cd   : >> { %v1968_v10 = vadd.f32 %v3058_v59, %v1963_v61  ;;  %v1969_v15 = vadd.f32 %v3059_v60, %v1964_v1  ;;  %1924 = sbr.rel (!%p1922_p6) target bundleno = 1470 (0x5be), region = 312  ;;  %2050 = vbcast.lane.b32.xlu1 (%p1922_p6), %v4997_v19, 328  ;;  %2018 = vbcast.lane.b32.xlu0 (%p1922_p6), %v4967_v63, 328 }
 0x5cf   : >> { %3062 = vst.msk [vmem:[%s1940_s28 + $0x20] sm:$0xff] %vm1261_vm9, %v1968_v10  ;;  %3063 = vst.msk [vmem:[%s1940_s28 + $0x28] sm:$0xff] %vm1261_vm9, %v1969_v15  ;;  %v1978_v18 = vmul.f32 %v3066_v6, %v1968_v10  ;;  %v1979_v20 = vmul.f32 %v3067_v7, %v1969_v15 }
 0x5d1   : >> { %v1983_v28 = vadd.f32 %v3070_v16, %v1978_v18   ;;  %v1984_v27 = vadd.f32 %v3071_v4, %v1979_v20   ;;  %2054 = vbcast.lane.b32.xlu1 (%p1922_p6), %v4992_v14, 328  ;;  %2022 = vbcast.lane.b32.xlu0 (%p1922_p6), %v4962_v58, 328 }
 0x5d3   : >> { %3074 = vst.msk [vmem:[%s1940_s28 + $0x30] sm:$0xff] %vm1261_vm9, %v1983_v28  ;;  %3075 = vst.msk [vmem:[%s1940_s28 + $0x38] sm:$0xff] %vm1261_vm9, %v1984_v27 }
 0x5d4   : > { %vm4128_vm2 = vmmov (!%p3083_p3), 0   ;;  %vm2427_vm6 = vcmask (!%p3083_p3), 130048   ;;  %vm2585_vm7 = vcmask (!%p3083_p3), 9216  }
 0x5d5   : > { %2058 = vbcast.lane.b32.xlu1 %v5003_v47, 328  ;;  %2026 = vbcast.lane.b32.xlu0 %v4974_v8, 328 }
 0x5d9   : > { %2062 = vbcast.lane.b32.xlu1 %v4999_v45, 328  ;;  %2030 = vbcast.lane.b32.xlu0 %v4969_v0, 328 }
 0x5da   : > { %v1996_v46 = vld [vmem:[#allocation5 + $0x40] sm:$0xff]  ;;  %v1997_v13 = vld [vmem:[#allocation5 + $0x48] sm:$0xff]  ;;  %v1998_v22 = vld [vmem:[#allocation5 + $0x50] sm:$0xff] }
 0x5db   : > { %v1988_v49 = vld [vmem:[#allocation5] sm:$0xff]  ;;  %v1989_v58 = vld [vmem:[#allocation5 + $0x8] sm:$0xff]  ;;  %v1990_v24 = vld [vmem:[#allocation5 + $0x10] sm:$0xff] }
 0x5dc   : > { %v1999_v31 = vld [vmem:[#allocation5 + $0x58] sm:$0xff]  ;;  %v2000_v5 = vld [vmem:[#allocation5 + $0x60] sm:$0xff] }
 0x5dd   : > { %2066 = vbcast.lane.b32.xlu1 %v5006_v23, 328  ;;  %2034 = vbcast.lane.b32.xlu0 %v4982_v11, 328  ;;  %v1991_v32 = vld [vmem:[#allocation5 + $0x18] sm:$0xff]  ;;  %v1992_v59 = vld [vmem:[#allocation5 + $0x20] sm:$0xff] }
 0x633   : > { %v2039_v57 = vpop.permute.xlu1 %2038  ;;  %v2007_v63 = vpop.permute.xlu0 %2006 }
 0x634   : > { %v2076_v9 = vmul.f32 %v2039_v57, %v1996_v46  ;;  %v2068_v12 = vmul.f32 %v2007_v63, %v1988_v49 }
 0x636   : > { %v2140_v14 = vsel %vm1261_vm9, %v2076_v9, 0.0  ;;  %v2084_v8 = vsel %vm1261_vm9, %v2068_v12, 0.0  ;;  %v2001_v12 = vld [vmem:[#allocation5 + $0x68] sm:$0xff] }
 0x637   : > { %v2141_v19 = vrot.slane %v2140_v14, 4  ;;  %v2085_v45 = vrot.slane %v2084_v8, 4  ;;  %v2043_v47 = vpop.permute.xlu1 %2042  ;;  %v2011_v0 = vpop.permute.xlu0 %2010 }
 0x638   : > { %v2077_v29 = vmul.f32 %v2043_v47, %v1997_v13  ;;  %v2069_v23 = vmul.f32 %v2011_v0, %v1989_v58  ;;  %v1993_v13 = vld [vmem:[#allocation5 + $0x28] sm:$0xff] }
 0x639   : > { %v2142_v42 = vadd.f32 %v2141_v19, %v2140_v14  ;;  %v2086_v25 = vadd.f32 %v2085_v45, %v2084_v8 }
 0x63a   : > { %v2147_v11 = vsel %vm1261_vm9, %v2077_v29, 0.0  ;;  %v2091_v52 = vsel %vm1261_vm9, %v2069_v23, 0.0 }
 0x63b   : > { %v2148_v53 = vrot.slane %v2147_v11, 4  ;;  %v2092_v27 = vrot.slane %v2091_v52, 4  ;;  %v2047_v28 = vpop.permute.xlu1 %2046  ;;  %v2015_v33 = vpop.permute.xlu0 %2014  ;;  %v2143_v34 = vrot.slane %v2142_v42, 2  ;;  %v2087_v35 = vrot.slane %v2086_v25, 2 }
 0x63c   : > { %v2078_v62 = vmul.f32 %v2047_v28, %v1998_v22  ;;  %v2070_v30 = vmul.f32 %v2015_v33, %v1990_v24 }
 0x63d   : > { %v2149_v54 = vadd.f32 %v2148_v53, %v2147_v11  ;;  %v2093_v21 = vadd.f32 %v2092_v27, %v2091_v52  ;;  %v2144_v60 = vadd.f32 %v2143_v34, %v2142_v42  ;;  %v2088_v61 = vadd.f32 %v2087_v35, %v2086_v25 }
 0x63e   : > { %v2154_v56 = vsel %vm1261_vm9, %v2078_v62, 0.0  ;;  %v2098_v51 = vsel %vm1261_vm9, %v2070_v30, 0.0  ;;  %v1994_v62 = vld [vmem:[#allocation5 + $0x30] sm:$0xff] }
 0x63f   : > { %v2051_v36 = vpop.permute.xlu1 %2050  ;;  %v2019_v39 = vpop.permute.xlu0 %2018  ;;  %v2150_v26 = vrot.slane %v2149_v54, 2  ;;  %v2094_v50 = vrot.slane %v2093_v21, 2  ;;  %v2155_v15 = vrot.slane %v2154_v56, 4  ;;  %v2099_v16 = vrot.slane %v2098_v51, 4 }
 0x640   : > { %v2079_v43 = vmul.f32 %v2051_v36, %v1999_v31  ;;  %v2071_v44 = vmul.f32 %v2019_v39, %v1991_v32  ;;  %v2145_v58 = vrot.slane %v2144_v60, 1  ;;  %v2089_v14 = vrot.slane %v2088_v61, 1 }
 0x641   : > { %v2151_v20 = vadd.f32 %v2150_v26, %v2149_v54  ;;  %v2095_v46 = vadd.f32 %v2094_v50, %v2093_v21  ;;  %v2156_v45 = vadd.f32 %v2155_v15, %v2154_v56  ;;  %v2100_v47 = vadd.f32 %v2099_v16, %v2098_v51  ;;  %v2002_v54 = vld [vmem:[#allocation5 + $0x70] sm:$0xff] }
 0x642   : > { %v2161_v1 = vsel %vm1261_vm9, %v2079_v43, 0.0  ;;  %v2105_v6 = vsel %vm1261_vm9, %v2071_v44, 0.0  ;;  %v5225_v30 = vadd.f32 %v2145_v58, %v2144_v60  ;;  %v5227_v31 = vadd.f32 %v2089_v14, %v2088_v61 }
 0x643   : > { %v2055_v7 = vpop.permute.xlu1 %2054  ;;  %v2023_v10 = vpop.permute.xlu0 %2022  ;;  %v2162_v49 = vrot.slane %v2161_v1, 4  ;;  %v2106_v57 = vrot.slane %v2105_v6, 4  ;;  %v2152_v23 = vrot.slane %v2151_v20, 1  ;;  %v2096_v11 = vrot.slane %v2095_v46, 1 }
 0x644   : > { %v2080_v4 = vmul.f32 %v2055_v7, %v2000_v5  ;;  %v2072_v18 = vmul.f32 %v2023_v10, %v1992_v59  ;;  %v2157_v32 = vrot.slane %v2156_v45, 2  ;;  %v2101_v34 = vrot.slane %v2100_v47, 2  ;;  %v1995_v7 = vld [vmem:[#allocation5 + $0x38] sm:$0xff] }
 0x645   : > { %v2163_v24 = vadd.f32 %v2162_v49, %v2161_v1  ;;  %v2107_v42 = vadd.f32 %v2106_v57, %v2105_v6  ;;  %v5229_v35 = vadd.f32 %v2152_v23, %v2151_v20  ;;  %v5231_v36 = vadd.f32 %v2096_v11, %v2095_v46  ;;  %v2003_v6 = vld [vmem:[#allocation5 + $0x78] sm:$0xff] }
 0x646   : > { %v2168_v63 = vsel %vm1261_vm9, %v2080_v4, 0.0  ;;  %v2112_v9 = vsel %vm1261_vm9, %v2072_v18, 0.0  ;;  %v2158_v10 = vadd.f32 %v2157_v32, %v2156_v45  ;;  %v2102_v15 = vadd.f32 %v2101_v34, %v2100_v47 }
 0x647   : > { %v2059_v8 = vpop.permute.xlu1 %2058  ;;  %v2027_v19 = vpop.permute.xlu0 %2026  ;;  %v2169_v0 = vrot.slane %v2168_v63, 4  ;;  %v2113_v29 = vrot.slane %v2112_v9, 4  ;;  %v2164_v44 = vrot.slane %v2163_v24, 2  ;;  %v2108_v26 = vrot.slane %v2107_v42, 2 }
 0x648   : > { %v2081_v52 = vmul.f32 %v2059_v8, %v2001_v12  ;;  %v2073_v22 = vmul.f32 %v2027_v19, %v1993_v13  ;;  %v2103_v23 = vrot.slane %v2102_v15, 1 }
 0x649   : > { %v2170_v25 = vadd.f32 %v2169_v0, %v2168_v63  ;;  %v2114_v53 = vadd.f32 %v2113_v29, %v2112_v9  ;;  %v2165_v57 = vadd.f32 %v2164_v44, %v2163_v24  ;;  %v2109_v63 = vadd.f32 %v2108_v26, %v2107_v42 }
 0x64a   : > { %v2175_v27 = vsel %vm1261_vm9, %v2081_v52, 0.0  ;;  %v2119_v28 = vsel %vm1261_vm9, %v2073_v22, 0.0  ;;  %v2159_v29 = vrot.slane %v2158_v10, 1 }
 0x64b   : > { %v2063_v33 = vpop.permute.xlu1 %2062  ;;  %v2031_v21 = vpop.permute.xlu0 %2030  ;;  %v2176_v39 = vrot.slane %v2175_v27, 4  ;;  %v2120_v43 = vrot.slane %v2119_v28, 4  ;;  %v2171_v51 = vrot.slane %v2170_v25, 2  ;;  %v2115_v5 = vrot.slane %v2114_v53, 2 }
 0x64c   : > { %v2082_v50 = vmul.f32 %v2063_v33, %v2002_v54  ;;  %v2074_v56 = vmul.f32 %v2031_v21, %v1994_v62  ;;  %v2166_v22 = vrot.slane %v2165_v57, 1  ;;  %v2110_v24 = vrot.slane %v2109_v63, 1 }
 0x64d   : > { %v2177_v59 = vadd.f32 %v2176_v39, %v2175_v27  ;;  %v2121_v1 = vadd.f32 %v2120_v43, %v2119_v28  ;;  %v2172_v13 = vadd.f32 %v2171_v51, %v2170_v25  ;;  %v2116_v58 = vadd.f32 %v2115_v5, %v2114_v53 }
 0x64e   : > { %v2182_v16 = vsel %vm1261_vm9, %v2082_v50, 0.0  ;;  %v2126_v4 = vsel %vm1261_vm9, %v2074_v56, 0.0  ;;  %v2160_v34 = vadd.f32 %v2159_v29, %v2158_v10  ;;  %v2104_v39 = vadd.f32 %v2103_v23, %v2102_v15 }
 0x64f   : > { %v2067_v60 = vpop.permute.xlu1 %2066  ;;  %v2035_v61 = vpop.permute.xlu0 %2034  ;;  %v2178_v18 = vrot.slane %v2177_v59, 2  ;;  %v2122_v20 = vrot.slane %v2121_v1, 2  ;;  %v2183_v46 = vrot.slane %v2182_v16, 4  ;;  %v2127_v49 = vrot.slane %v2126_v4, 4 }
 0x650   : > { %v2083_v9 = vmul.f32 %v2067_v60, %v2003_v6  ;;  %v2075_v12 = vmul.f32 %v2035_v61, %v1995_v7  ;;  %v2173_v53 = vrot.slane %v2172_v13, 1  ;;  %v2117_v27 = vrot.slane %v2116_v58, 1 }
 0x651   : > { %v2184_v14 = vadd.f32 %v2183_v46, %v2182_v16  ;;  %v2128_v8 = vadd.f32 %v2127_v49, %v2126_v4  ;;  %v2179_v19 = vadd.f32 %v2178_v18, %v2177_v59  ;;  %v2123_v45 = vadd.f32 %v2122_v20, %v2121_v1 }
 0x652   : > { %v2189_v47 = vsel %vm1261_vm9, %v2083_v9, 0.0  ;;  %v2133_v0 = vsel %vm1261_vm9, %v2075_v12, 0.0  ;;  %v2167_v26 = vadd.f32 %v2166_v22, %v2165_v57  ;;  %v2111_v50 = vadd.f32 %v2110_v24, %v2109_v63  ;;  %v3441_v24 = vld [vmem:[%s4832_s30 + $0x18] sm:$0xff]  }
 0x653   : > { %v2185_v11 = vrot.slane %v2184_v14, 2  ;;  %v2129_v52 = vrot.slane %v2128_v8, 2  ;;  %v2190_v42 = vrot.slane %v2189_v47, 4  ;;  %v2134_v25 = vrot.slane %v2133_v0, 4 }
 0x654   : > { %v2180_v54 = vrot.slane %v2179_v19, 1  ;;  %v2124_v21 = vrot.slane %v2123_v45, 1  ;;  %v2226_v5 = vsel %vm2212_vm10, %v5229_v35, %v5225_v30  ;;  %v2213_v59 = vsel %vm2212_vm10, %v5231_v36, %v5227_v31 }
 0x655   : > { %v2186_v28 = vadd.f32 %v2185_v11, %v2184_v14  ;;  %v2130_v33 = vadd.f32 %v2129_v52, %v2128_v8  ;;  %v2191_v62 = vadd.f32 %v2190_v42, %v2189_v47  ;;  %v2135_v32 = vadd.f32 %v2134_v25, %v2133_v0  ;;  %v3076_v8 = vld [vmem:[%s893_s27] ss:$0 sm:$0xff]  ;;  %v3440_v11 = vld [vmem:[%s4832_s30 + $0x10] sm:$0xff]  }
 0x656   : > { %v2174_v1 = vadd.f32 %v2173_v53, %v2172_v13  ;;  %v2118_v60 = vadd.f32 %v2117_v27, %v2116_v58  ;;  %v2181_v6 = vadd.f32 %v2180_v54, %v2179_v19  ;;  %v2125_v61 = vadd.f32 %v2124_v21, %v2123_v45  ;;  %v3438_v19 = vld [vmem:[%s4832_s30] sm:$0xff]   ;;  %v3439_v45 = vld [vmem:[%s4832_s30 + $0x8] sm:$0xff]  }
 0x657   : > { %v2187_v43 = vrot.slane %v2186_v28, 1  ;;  %v2131_v44 = vrot.slane %v2130_v33, 1  ;;  %v2192_v56 = vrot.slane %v2191_v62, 2  ;;  %v2136_v51 = vrot.slane %v2135_v32, 2  ;;  %3150 = vmatpush3.bf16.msra.mxu0 %v3438_v19 }
 0x658   : > { %v2227_v15 = vsel %vm2214_vm11, %v2160_v34, %v2226_v5  ;;  %v2215_v16 = vsel %vm2214_vm11, %v2104_v39, %v2213_v59  ;;  %v2247_v47 = vmul.f32 %v3076_v8, %v4940_v37  ;;  %v2246_v0 = vmul.f32 %v3076_v8, %v4942_v38  ;;  %3151 = vmatprep.subr.bf16.mxu0 %v4123_v17  ;;  %v3084_v8 = vld [vmem:[#allocation28] ss:$0 sm:$0xff] (!%p3083_p3) }
 0x659   : > { %v2193_v7 = vadd.f32 %v2192_v56, %v2191_v62  ;;  %v2137_v10 = vadd.f32 %v2136_v51, %v2135_v32  ;;  %v2188_v4 = vadd.f32 %v2187_v43, %v2186_v28  ;;  %v2132_v18 = vadd.f32 %v2131_v44, %v2130_v33 }
 0x65a   : > { %v2228_v20 = vsel %vm2216_vm12, %v2167_v26, %v2227_v15  ;;  %v2217_v30 = vsel %vm2216_vm12, %v2111_v50, %v2215_v16  ;;  %v2251_v37 = vmul.f32 0.5, %v4905_v55  ;;  %v2250_v38 = vmul.f32 0.5, %v4897_v48  ;;  %v3077_v48 = vld [vmem:[%s910_s21] ss:$0 sm:$0xff] }
 0x65b   : > { %v2194_v35 = vrot.slane %v2193_v7, 1  ;;  %v2138_v31 = vrot.slane %v2137_v10, 1  ;;  %v2229_v36 = vsel %vm2218_vm13, %v2174_v1, %v2228_v20  ;;  %v2219_v46 = vsel %vm2218_vm13, %v2118_v60, %v2217_v30  ;;  %3152 = vmatpush3.bf16.msra.mxu0 %v3439_v45  ;;  %v2501_v20 = vld [vmem:[#allocation31] sm:$0xff] (!%p3083_p3)  ;;  %v2502_v30 = vld [vmem:[#allocation31 + $0x8] sm:$0xff] (!%p3083_p3)  ;;  %v3085_v45 = vld [vmem:[#allocation30] ss:$0 sm:$0xff] (!%p3083_p3) }
 0x65c   : > { %v2230_v49 = vsel %vm2220_vm14, %v2181_v6, %v2229_v36  ;;  %v2221_v57 = vsel %vm2220_vm14, %v2125_v61, %v2219_v46  ;;  %3153 = vmatprep.subr.bf16.mxu0 %v4123_v17  ;;  %3442 = vtanh.f32 %v2251_v37  ;;  %v2504_v36 = vld [vmem:[#allocation31 + $0x18] sm:$0xff] (!%p3083_p3) }
 0x65d   : > { %v2195_v63 = vadd.f32 %v2194_v35, %v2193_v7  ;;  %v2139_v9 = vadd.f32 %v2138_v31, %v2137_v10  ;;  %v2231_v12 = vsel %vm2222_vm15, %v2188_v4, %v2230_v49  ;;  %v2223_v13 = vsel %vm2222_vm15, %v2132_v18, %v2221_v57  ;;  %v2503_v35 = vld [vmem:[#allocation31 + $0x10] sm:$0xff] (!%p3083_p3) }
 0x65e   : > { %3444 = vtanh.f32 %v2250_v38  ;;  %v4127_v4 = vmov (!%p3083_p3), 0.0|0.0   ;;  %v4129_v18 = vmov (!%p3083_p3), 0.0   ;;  %v3183_v31 = vpack.c.bf16 (!%p3083_p3), %v2502_v30, %v2501_v20 }
 0x65f   : > { %v2232_v58 = vsel %vm2224_vm0, %v2195_v63, %v2231_v12  ;;  %v2225_v14 = vsel %vm2224_vm0, %v2139_v9, %v2223_v13  ;;  %3154 = vmatpush3.bf16.msra.mxu0 %v3440_v11  ;;  %3182 = vmatprep.subr.bf16.mxu1 (!%p3083_p3), %v4127_v4  ;;  %v3186_v46 = vpack.c.bf16 (!%p3083_p3), %v2504_v36, %v2503_v35 }
 0x660   : > { %2236 = vst.msk [vmem:[#allocation6 + $0x8] sm:$0xff] %vm1261_vm9, %v2232_v58  ;;  %2235 = vst.msk [vmem:[#allocation6] sm:$0xff] %vm1261_vm9, %v2225_v14  ;;  %3155 = vmatprep.subr.bf16.mxu0 %v4123_v17  ;;  %3176 = vmatprep.mubr.msk.f32.mxu1 (!%p3083_p3), %vm4128_vm2, %v4129_v18  ;;  %v2410_v58 = vand.u32 (!%p3083_p3), 127, %v1149_v40 }
 0x661   : > { %3184 = vmatpush3.bf16.msra.mxu1 (!%p3083_p3), %v3183_v31 }
 0x662   : > { %3185 = vmatprep.subr.bf16.mxu1 (!%p3083_p3), %v4127_v4  ;;  %vm2424_vm4 = vcmp.lt.s32.totalorder (!%p3083_p3), %v2410_v58, 16 }
 0x663   : > { %3156 = vmatpush3.bf16.msra.mxu0 %v3441_v24 }
 0x664   : > { %3179 = vmatprep.subr.bf16.mxu0 (!%p3083_p3), %v4127_v4 }
 0x665   : > { %3187 = vmatpush3.bf16.msra.mxu1 (!%p3083_p3), %v3186_v46 }
 0x666   : > { %v3443_v42 = vpop.eup %3442 }
 0x667   : > { %v2238_v29 = vld [vmem:[#allocation6 + $0x8] sm:$0xff]  ;;  %v2237_v23 = vld [vmem:[#allocation6] sm:$0xff]  ;;  %v2255_v53 = vadd.f32 1.0, %v3443_v42 }
 0x668   : > { %v2249_v52 = vadd.f32 %v2247_v47, %v2238_v29  ;;  %v2248_v22 = vadd.f32 %v2246_v0, %v2237_v23  ;;  %v3445_v25 = vpop.eup %3444  ;;  %v2415_v0 = vand.u32 (!%p3083_p3), 1, %v2410_v58  ;;  %v3087_v42 = vld [vmem:[#allocation33] ss:$0 sm:$0xff] (!%p3083_p3) }
 0x669   : > { %v2254_v27 = vadd.f32 1.0, %v3445_v25  ;;  %v2257_v28 = vmul.f32 0.5, %v2255_v53 }
 0x66a   : > { %2262 = vrot.lane.b32.xlu1 %v2249_v52, %s4126_s2  ;;  %2260 = vrot.lane.b32.xlu0 %v2248_v22, %s4126_s2  ;;  %vm2423_vm3 = vcmp.eq.s32.totalorder (!%p3083_p3), %v2415_v0, %v4883_v41 }
 0x66b   : > { %v2256_v33 = vmul.f32 0.5, %v2254_v27  ;;  %vm2425_vm5 = vmand (!%p3083_p3), %vm2423_vm3, %vm2424_vm4 }
 0x66c   : > { %v2426_v24 = vsel (!%p3083_p3), %vm2425_vm5, 0.125, %v4129_v18 }
 0x6dc   : > { %v2263_v54 = vpop.permute.xlu1 %2262  ;;  %v2261_v21 = vpop.permute.xlu0 %2260 }
 0x6dd   : > { %v2267_v62 = vmul.f32 %v2263_v54, %v2257_v28  ;;  %v2266_v32 = vmul.f32 %v2261_v21, %v2256_v33 }
 0x6df   : > { %v2268_v34 = vpack.c.bf16 %v2267_v62, %v2266_v32 }
 0x6e1   : > { %2285 = vrot.lane.b32.xlu0 %v2268_v34, %s4126_s2 }
 0x753   : > { %v2286_v17 = vpop.permute.xlu0 %2285 }
 0x754   : > { %3158 = vmatmul.mubr.msk.bf16.vlgmr.msra.gmra.mrb[4].mxu0 %vm1261_vm9, %v2286_v17 }
 0x755   : > { %3165 = vmatprep.mubr.msk.f32.mxu0 (!%p3083_p3), %vm4128_vm2, %v4129_v18 }
 0x827   : > { %v2348_v55 = vpop.f32.mrb[4].mxu0 }
 0x828   : > { %v2349_v39 = vadd.f32 %v3077_v48, %v2348_v55  ;;  %v3159_v43 = vpop.f32.mrb[5].mxu0  ;;  %2362 = sbr.rel (%p3083_p3) target bundleno = 2841 (0xb19), region = 171 }
 0x829   : > { %v2351_v44 = vpop.f32.mrb[6].mxu0 }
 0x82a   : > { %v2355_v26 = vadd.f32 %v2349_v39, %v4849_v2  ;;  %v2352_v50 = vadd.f32 %v3077_v48, %v2351_v44  ;;  %v3160_v56 = vpop.f32.mrb[7].mxu0 }
 0x82c   : > { %2357 = vst.msk [vmem:[#allocation2] sm:$0xff] %vm1036_vm1, %v2355_v26  ;;  %v2356_v51 = vadd.f32 %v2352_v50, %v4851_v3  ;;  %v2365_v5 = vsel (!%p3083_p3), %vm1036_vm1, %v2355_v26, 0.0 }
 0x82d   : > { %2366 = vadd.xlane.f32.xlu0 (!%p3083_p3), %v2365_v5 }
 0x82e   : > { %2358 = vst.msk [vmem:[#allocation2 + $0x8] sm:$0xff] %vm1036_vm1, %v2356_v51  ;;  %v2368_v59 = vsel (!%p3083_p3), %vm1036_vm1, %v2356_v51, 0.0 }
 0x831   : > { %2369 = vadd.xlane.f32.xlu0 %v2368_v59 }
 0x8ba   : > { %v2367_v1 = vpop.xlane.xlu0 %2366 }
 0x8bb   : > { %v2371_v60 = vmul.f32 0.03125, %v2367_v1 }
 0x8bd   : > { %v2373_v2 = vsub.f32 %v2355_v26, %v2371_v60 }
 0x8be   : > { %v2370_v6 = vpop.xlane.xlu0 %2369 }
 0x8bf   : > { %v2372_v61 = vmul.f32 0.03125, %v2370_v6  ;;  %v2375_v7 = vmul.f32 %v2373_v2, %v2373_v2 }
 0x8c1   : > { %v2374_v10 = vsub.f32 %v2356_v51, %v2372_v61  ;;  %v2377_v3 = vsel %vm1036_vm1, %v2375_v7, 0.0 }
 0x8c2   : > { %2378 = vadd.xlane.f32.xlu1 %v2377_v3 }
 0x8c3   : > { %v2376_v15 = vmul.f32 %v2374_v10, %v2374_v10 }
 0x8c5   : > { %v2380_v16 = vsel %vm1036_vm1, %v2376_v15, 0.0 }
 0x8c6   : > { %2381 = vadd.xlane.f32.xlu1 %v2380_v16 }
 0x94f   : > { %v2379_v49 = vpop.xlane.xlu1 %2378 }
 0x950   : > { %v2383_v57 = vmul.f32 0.03125, %v2379_v49 }
 0x952   : > { %v2385_v63 = vadd.f32 1e-05, %v2383_v57 }
 0x953   : > { %v2382_v9 = vpop.xlane.xlu1 %2381 }
 0x954   : > { %3446 = vrsqrt.f32 %v2385_v63  ;;  %v2384_v12 = vmul.f32 0.03125, %v2382_v9 }
 0x956   : > { %v2386_v13 = vadd.f32 1e-05, %v2384_v12 }
 0x958   : > { %3448 = vrsqrt.f32 %v2386_v13 }
 0x95e   : > { %v3447_v14 = vpop.eup %3446 }
 0x95f   : > { %v2389_v19 = vmul.f32 %v3447_v14, %v2373_v2 }
 0x961   : > { %v2397_v47 = vmul.f32 %v3084_v8, %v2389_v19 }
 0x962   : > { %v3449_v29 = vpop.eup %3448 }
 0x963   : > { %v2390_v23 = vmul.f32 %v3449_v29, %v2374_v10  ;;  %v2405_v11 = vadd.f32 %v3085_v45, %v2397_v47 }
 0x965   : > { %v2398_v52 = vmul.f32 %v3084_v8, %v2390_v23  ;;  %2407 = vst.msk [vmem:[#allocation34] sm:$0xff] %vm1036_vm1, %v2405_v11 }
 0x967   : > { %v2406_v22 = vadd.f32 %v3085_v45, %v2398_v52 }
 0x969   : > { %2408 = vst.msk [vmem:[#allocation34 + $0x8] sm:$0xff] %vm1036_vm1, %v2406_v22  ;;  %v3180_v40 = vpack.c.bf16 %v2406_v22, %v2405_v11 }
 0x96b   : > { %3181 = vmatpush3.bf16.msra.mxu0 %v3180_v40 }
 0x96e   : > { %3166 = vmatmul.mubr.msk.f32.vlgmr.msra.gmra.mrb[0].mxu0 %vm2427_vm6, %v2426_v24 }
 0xa41   : > { %v2497_v37 = vpop.f32.mrb[0].mxu0 }
 0xa42   : > { %v3167_v38 = vpop.f32.mrb[1].mxu0  ;;  %3177 = vmatmul.mubr.msk.f32.vlgmr.msra.gmra.mrb[0].mxu1 %vm1036_vm1, %v2497_v37 }
 0xb15   : > { %v2581_v25 = vpop.f32.mrb[0].mxu1 }
 0xb16   : > { %v2582_v53 = vadd.f32 %v3087_v42, %v2581_v25  ;;  %v3178_v27 = vpop.f32.mrb[1].mxu1 }
 0xb18   : > { %2586 = vst.msk [vmem:[#allocation35] sm:$0x3] %vm2585_vm7, %v2582_v53 }
 0xb19 PF: > { %s5473_s1 = sld [smem:[#allocation50_spill]]  ;;  %s4130_s26 = smov [#allocation34]  }
 0xb1a   : > { %s2593_s0 = sshll.u32 %s4130_s26, 4  ;;  %s2594_s0 = int_to_ptr.vmem [resolvable:$true] %s2593_s0 }
 0xb1b   : > { %s3950_s12 = scalar_lea.vmem %s2594_s0, 256  ;;  %p3957_p9 = scmp.lt.s32.totalorder %s2594_s0, %s2594_s0 }
 0xb1c   : > { %p3951_p1 = scmp.ne.s32.totalorder %s2594_s0, %s3950_s12  ;;  %p3958_p4 = scmp.lt.s32.totalorder %s3950_s12, %s3950_s12 }
 0xb1e   : > { %p3959_p13 = por %p3958_p4, %p3957_p9 }
 0xb1f   : > { %p3304_p11 = scmp.eq.s32.totalorder %s5473_s1, 1 }
 0xb21   : > { %p3952_p7 = pnand %p3951_p1, %p3304_p11 }
 0xb23   : > { %p3953_p0 = pneg %p3952_p7 }
 0xb25   : > { %p3960_p2 = pnand %p3959_p13, %p3953_p0 }
 0xb27   : > { %3963 = shalt.err (!%p3960_p2)
}
 0xb28   : > { %s5474_s18 = sld [smem:[#allocation65_spill]] }
 0xb2e   : > { %s3964_s22 = scalar_lea.hbm %s5474_s18, 256 }
 0xb2f   : > { %p3965_p8 = scmp.ne.s32.totalorder %s5474_s18, %s3964_s22  ;;  %p3970_p5 = scmp.lt.u32.totalorder %s3964_s22, %s5474_s18 }
 0xb31   : > { %p3966_p10 = pnand %p3965_p8, %p3304_p11 }
 0xb33   : > { %p3967_p12 = pneg %p3966_p10 }
 0xb35   : > { %p3972_p6 = pnand %p3970_p5, %p3967_p12 }
 0xb37   : > { %3975 = shalt.err (!%p3972_p6)
}
 0xb38   : > { %s4131_s21 = smov 128   ;;  %s4132_s24 = smov 8  }
 0xb39   : > { %3233 = dma.vmem_to_hbm [thread:$0]  (%p3304_p11), %s2594_s0, 256, %s5474_s18, [#allocation9], %s4131_s21, %s4131_s21, %s4132_s24  }
 0xb3a   : > { %s4133_s15 = smov [#allocation35]  }
 0xb3b   : > { %s2607_s28 = sshll.u32 %s4133_s15, 4  ;;  %s2608_s28 = int_to_ptr.vmem [resolvable:$true] %s2607_s28 }
 0xb3c   : > { %s3976_s2 = scalar_lea.vmem %s2608_s28, 32  ;;  %p3983_p0 = scmp.lt.s32.totalorder %s2608_s28, %s2608_s28 }
 0xb3d   : > { %p3977_p3 = scmp.ne.s32.totalorder %s2608_s28, %s3976_s2  ;;  %p3984_p9 = scmp.lt.s32.totalorder %s3976_s2, %s3976_s2 }
 0xb3f   : > { %p3978_p1 = pnand %p3977_p3, %p3304_p11  ;;  %p3985_p4 = por %p3984_p9, %p3983_p0 }
 0xb41   : > { %p3979_p7 = pneg %p3978_p1 }
 0xb43   : > { %p3986_p13 = pnand %p3985_p4, %p3979_p7 }
 0xb45   : > { %3989 = shalt.err (!%p3986_p13)
}
 0xb46   : > { %s5475_s12 = sld [smem:[#allocation66_spill]] }
 0xb4c   : > { %s3990_s5 = scalar_lea.hbm %s5475_s12, 32 }
 0xb4d   : > { %p3991_p2 = scmp.ne.s32.totalorder %s5475_s12, %s3990_s5  ;;  %p3996_p12 = scmp.lt.u32.totalorder %s3990_s5, %s5475_s12 }
 0xb4f   : > { %p3992_p8 = pnand %p3991_p2, %p3304_p11 }
 0xb51   : > { %p3993_p10 = pneg %p3992_p8 }
 0xb53   : > { %p3998_p5 = pnand %p3996_p12, %p3993_p10 }
 0xb55   : > { %4001 = shalt.err (!%p3998_p5)
}
 0xb56   : > { %3235 = dma.vmem_to_hbm [thread:$0]  (%p3304_p11), %s2608_s28, 32, %s5475_s12, [#allocation36]  }
 0xb57   : > { %4067 = dma.done.wait (%p3304_p11), [#allocation9], 256  }
 0xb58   : > { %4069 = vsyncadd (%p3304_p11), [#allocation9], 4294967040 }
 0xb59   : > { %4071 = dma.done.wait (%p3304_p11), [#allocation36], 32  }
 0xb5a   : > { %4073 = vsyncadd (%p3304_p11), [#allocation36], 4294967264 }
 0xb5b PF: > { %s5476_s30 = sld [smem:[#allocation51_spill]]  ;;  %s5477_s27 = sld [smem:[#allocation48_spill]] }
 0xb5c   : > { %s5478_s28 = sld [smem:[#allocation49_spill]]  ;;  %s5479_s29 = sld [smem:[#allocation52_spill]] }
 0xb61   : > { %p49_p6 = scmp.ge.s32.totalorder %s5476_s30, 4  }
 0xb63   :  { %51 = sbr.rel (!%p49_p6) target bundleno = 31 (0x1f), region = 323 }
 0xb6a   :  { %2624 = vsyncpa [#allocation8], 1 }
 0xb6b   :  { %2626 = vsyncpa [#allocation8 + $0x1], 1 }
 0xb6c   :  { %2627 = vsyncpa [#allocation11], 1 }
 0xb6d   :  { %2629 = vsyncpa [#allocation11 + $0x1], 1 }
 0xb6e   :  { %2630 = vsyncpa [#allocation14], 1 }
 0xb6f   :  { %2632 = vsyncpa [#allocation14 + $0x1], 1 }
 0xb70   :  { %2633 = vsyncpa [#allocation17], 1 }
 0xb71   :  { %2635 = vsyncpa [#allocation17 + $0x1], 1 }
 0xb72   :  { %2636 = vsyncpa [#allocation20], 1 }
 0xb73   :  { %2638 = vsyncpa [#allocation20 + $0x1], 1 }
 0xb74   :  { %2639 = vsyncpa [#allocation23], 1 }
 0xb75   :  { %2641 = vsyncpa [#allocation23 + $0x1], 1 }
 0xb76   :  { %2642 = vsyncpa [#allocation26], 1 }
 0xb77   :  { %2644 = vsyncpa [#allocation26 + $0x1], 1 }
 0xb78   :  { %2645 = vsyncpa [#allocation29], 1 }
 0xb79   :  { %2646 = vsyncpa [#allocation32], 1 }
 0xb7a   :  { %2647 = vsyncpa [#allocation9], 1 }
 0xb7b   :  { %2649 = vsyncpa [#allocation9 + $0x1], 1 }
 0xb7c   :  { %2650 = vsyncpa [#allocation36], 1 }

</bundles_post_ra>
